<compile_context>
chip_gen: v5e
topology: v5e:2x2
jax: 0.10.0
libtpu: 0.0.40
codegen_flags: <defaults>
</compile_context>

<pallas_src>
import functools

import jax
import jax.numpy as jnp
from jax.experimental import pallas as pl
from jax.experimental.pallas import tpu as pltpu

N_ENCODE = 6
IN_DIM = 3 + 3 * 2 * N_ENCODE          # 39
IN_PAD = 128                           # lane-padded input feature width
FILTER = 128
SKIP_IN = 2 * FILTER                   # 256: fused layer-5 contraction width
OUT_DIM = 4
MAX_TILE = 2048                        # rows per grid step (multiple of 256)

_PARAM_ORDER = ("w1", "b1", "w2", "b2", "w3", "b3", "w4", "b4",
                "w5", "b5", "w6", "b6", "w7", "b7", "w8", "b8",
                "w9", "b9")


# --------------------------------------------------------------------------- #
# Kernel
# --------------------------------------------------------------------------- #
def _tnerf_kernel(x_ref,
                  w1, b1, w2, b2, w3, b3, w4, b4,
                  w5, b5, w6, b6, w7, b7, w8, b8,
                  w9, b9,
                  o_ref, *, fuse_skip, bf16_epilogue):
    x = x_ref[...]                                        # (TILE_N, IN_PAD) bf16

    def epilogue(acc_f32, b_ref):
        # bias-add + ReLU.  v6e/v7x: bf16 math (half the VPU work, bf16 spills);
        # v5e: f32 math (no bf16 VALU), only the bf16 copy crosses layers.
        if bf16_epilogue:
            return jnp.maximum(acc_f32.astype(jnp.bfloat16)
                               + b_ref[...].astype(jnp.bfloat16), 0.0)
        return jnp.maximum(acc_f32 + b_ref[...], 0.0).astype(jnp.bfloat16)

    def lin_act(h_bf16, w_ref, b_ref):
        # bf16 x bf16 MXU matmul with f32 accumulation.
        return epilogue(jnp.dot(h_bf16, w_ref[...],
                                preferred_element_type=jnp.float32), b_ref)

    h = lin_act(x, w1, b1)
    h = lin_act(h, w2, b2)
    h = lin_act(h, w3, b3)
    h = lin_act(h, w4, b4)

    # layer 5: relu(cat([h, x], -1) @ W5 + b5)
    w5_all = w5[...]                                      # (256, 128) bf16
    if fuse_skip:
        # single K=256 pass — fills the 256-deep MXU of v6e/v7x.
        acc5 = jnp.dot(jnp.concatenate([h, x], axis=-1), w5_all,
                       preferred_element_type=jnp.float32)
    else:
        # two K=128 passes — v5e MXU is 128-deep; avoids the concat copy.
        acc5 = (jnp.dot(h, w5_all[:FILTER, :], preferred_element_type=jnp.float32)
                + jnp.dot(x, w5_all[FILTER:, :], preferred_element_type=jnp.float32))
    h = epilogue(acc5, b5)

    h = lin_act(h, w6, b6)
    h = lin_act(h, w7, b7)
    h = lin_act(h, w8, b8)

    # layer 9, no activation: narrow OUT_DIM-wide f32 output block (no 32x HBM
    # write amplification from lane padding).
    o_ref[...] = (jnp.dot(h, w9[...], preferred_element_type=jnp.float32)
                  + b9[...]).astype(o_ref.dtype)


# --------------------------------------------------------------------------- #
# Wrapper
# --------------------------------------------------------------------------- #
def _pick_tile(n):
    """Multiple of 256, <= MAX_TILE, and <= half the (rounded-up) batch so the
    grid has >= 2 near-equal tiles (v7x megacore load balance)."""
    return int(min(MAX_TILE, max(256, 256 * pl.cdiv(n, 2 * 256))))


def _wide_mxu_chip():
    """True on chips with a 256-deep MXU and bf16 VALUs (v6e / v7x)."""
    try:
        kind = jax.devices()[0].device_kind.lower()
    except Exception:
        return True
    return ("v6" in kind) or ("v7" in kind) or ("tpu7" in kind)


def tnerf_forward(x, prepared, *, fuse_skip=None, bf16_epilogue=None):
    """x: (N, 39) float32.  prepared: dict from prepare_params()."""
    N, d = x.shape
    assert d == IN_DIM

    wide = _wide_mxu_chip()
    if fuse_skip is None:
        fuse_skip = wide
    if bf16_epilogue is None:
        bf16_epilogue = wide

    tile_n = _pick_tile(N)
    n_pad = int(pl.cdiv(N, tile_n)) * tile_n

    # Single fused pad + cast: batch -> tile multiple, features 39 -> 128 lanes.
    x_p = jnp.pad(x.astype(jnp.bfloat16),
                  ((0, n_pad - N), (0, IN_PAD - IN_DIM)))

    ordered = [prepared[k] for k in _PARAM_ORDER]

    def full_spec(arr):
        ndim = arr.ndim
        return pl.BlockSpec(arr.shape, lambda i, _n=ndim: (0,) * _n)

    in_specs = [pl.BlockSpec((tile_n, IN_PAD), lambda i: (i, 0))]
    in_specs += [full_spec(p) for p in ordered]

    # Advisory cost: ~10 effective 128-wide matmuls per row.
    flops = 2 * n_pad * FILTER * (IN_PAD + 6 * FILTER + SKIP_IN + OUT_DIM)
    bytes_accessed = (int(x_p.size) * 2 + n_pad * OUT_DIM * 4
                      + sum(int(p.size) * p.dtype.itemsize for p in ordered))

    kern = functools.partial(_tnerf_kernel, fuse_skip=fuse_skip,
                             bf16_epilogue=bf16_epilogue)

    out = pl.pallas_call(
        kern,
        out_shape=jax.ShapeDtypeStruct((n_pad, OUT_DIM), jnp.float32),
        grid_spec=pltpu.PrefetchScalarGridSpec(
            num_scalar_prefetch=0,
            grid=(n_pad // tile_n,),
            in_specs=in_specs,
            out_specs=pl.BlockSpec((tile_n, OUT_DIM), lambda i: (i, 0)),
        ),
        compiler_params=pltpu.CompilerParams(
            dimension_semantics=("parallel",)),
        cost_estimate=pl.CostEstimate(flops=flops, transcendentals=0,
                                      bytes_accessed=bytes_accessed),
    )(x_p, *ordered)

    # Rows [N:] are padding garbage — only this slice is valid.
    return out[:N]


# --------------------------------------------------------------------------- #
# Parameters
# --------------------------------------------------------------------------- #
def init_params(key):
    """Deterministic synthetic parameters (same shapes as the PyTorch module),
    stored pre-transposed as (in, out), f32."""
    dims = [(IN_DIM, FILTER), (FILTER, FILTER), (FILTER, FILTER), (FILTER, FILTER),
            (FILTER + IN_DIM, FILTER), (FILTER, FILTER), (FILTER, FILTER),
            (FILTER, FILTER), (FILTER, OUT_DIM)]
    keys = jax.random.split(key, 2 * len(dims))
    p = {}
    for li, (fi, fo) in enumerate(dims, start=1):
        bound = float(fi) ** -0.5
        p[f"w{li}"] = jax.random.uniform(keys[2 * (li - 1)], (fi, fo),
                                         jnp.float32, -bound, bound)
        p[f"b{li}"] = jax.random.uniform(keys[2 * (li - 1) + 1], (1, fo),
                                         jnp.float32, -bound, bound)
    return p


def prepare_params(params):
    """Pad to lane-friendly shapes; weights -> bf16, biases stay f32."""
    def pad_rows(w, rows):
        return jnp.pad(w, ((0, rows - w.shape[0]), (0, 0)))

    pp = dict(params)
    pp["w1"] = pad_rows(params["w1"], IN_PAD)                       # (128, 128)
    # w5 rows [:128] multiply h, rows [128:167] multiply the 39 real features of
    # x; pad the x-part to 128 rows so one (256,128) weight serves both the
    # fused K=256 path and the split two-K=128 path.
    w5 = params["w5"]
    pp["w5"] = jnp.concatenate([w5[:FILTER], pad_rows(w5[FILTER:], IN_PAD)],
                               axis=0)                              # (256, 128)

    prepared = {}
    for k in _PARAM_ORDER:
        v = pp[k]
        prepared[k] = v.astype(jnp.bfloat16) if k.startswith("w") \
            else v.astype(jnp.float32)
    return prepared


# --------------------------------------------------------------------------- #
# Reference (mirrors the kernel's dtype flow; padding rows/cols are zero, so the
# raw un-padded params give the same math)
# --------------------------------------------------------------------------- #
def tnerf_reference(x, params, *, bf16_epilogue):
    xb = x.astype(jnp.bfloat16)

    def epi(acc, b):
        if bf16_epilogue:
            return jnp.maximum(acc.astype(jnp.bfloat16) + b.astype(jnp.bfloat16),
                               0.0)
        return jnp.maximum(acc + b, 0.0).astype(jnp.bfloat16)

    def lin(h, w):
        return jnp.dot(h, w.astype(jnp.bfloat16),
                       preferred_element_type=jnp.float32)

    h = epi(lin(xb, params["w1"]), params["b1"])
    h = epi(lin(h, params["w2"]), params["b2"])
    h = epi(lin(h, params["w3"]), params["b3"])
    h = epi(lin(h, params["w4"]), params["b4"])
    h = epi(lin(jnp.concatenate([h, xb], axis=-1), params["w5"]), params["b5"])
    h = epi(lin(h, params["w6"]), params["b6"])
    h = epi(lin(h, params["w7"]), params["b7"])
    h = epi(lin(h, params["w8"]), params["b8"])
    return lin(h, params["w9"]) + params["b9"]


# --------------------------------------------------------------------------- #
if __name__ == "__main__":
    key = jax.random.PRNGKey(0)
    k_param, k_x = jax.random.split(key)

    params = init_params(k_param)
    prepared = prepare_params(params)

    # Batch of positional-encoded points (dim 39).  N is deliberately NOT a
    # multiple of the tile size: exercises padding and the 2-tile megacore split
    # (tile = 512, grid = 2 here).
    N = 1000
    x = jax.random.normal(k_x, (N, IN_DIM), jnp.float32)

    out = jax.block_until_ready(tnerf_forward(x, prepared))

    ref = tnerf_reference(x, params, bf16_epilogue=_wide_mxu_chip())
    assert out.shape == (N, OUT_DIM)
    assert jnp.allclose(out, ref, atol=1e-2, rtol=1e-2), \
        "Pallas output mismatch vs reference"
    # TODO(synk): bf16 activations across 9 layers can drift ~1e-2 relative vs
    # the true f32 PyTorch tNerf; keep activations f32 if that accuracy matters.

    print("KERNEL_OK")
</pallas_src>

<mosaic_0001>
module attributes {stable_mosaic.version = 11 : i64} {
  func.func @_tnerf_kernel(%arg0: i32, %arg1: memref<512x128xbf16, #tpu.memory_space<vmem>>, %arg2: memref<128x128xbf16, #tpu.memory_space<vmem>>, %arg3: memref<1x128xf32, #tpu.memory_space<vmem>>, %arg4: memref<128x128xbf16, #tpu.memory_space<vmem>>, %arg5: memref<1x128xf32, #tpu.memory_space<vmem>>, %arg6: memref<128x128xbf16, #tpu.memory_space<vmem>>, %arg7: memref<1x128xf32, #tpu.memory_space<vmem>>, %arg8: memref<128x128xbf16, #tpu.memory_space<vmem>>, %arg9: memref<1x128xf32, #tpu.memory_space<vmem>>, %arg10: memref<256x128xbf16, #tpu.memory_space<vmem>>, %arg11: memref<1x128xf32, #tpu.memory_space<vmem>>, %arg12: memref<128x128xbf16, #tpu.memory_space<vmem>>, %arg13: memref<1x128xf32, #tpu.memory_space<vmem>>, %arg14: memref<128x128xbf16, #tpu.memory_space<vmem>>, %arg15: memref<1x128xf32, #tpu.memory_space<vmem>>, %arg16: memref<128x128xbf16, #tpu.memory_space<vmem>>, %arg17: memref<1x128xf32, #tpu.memory_space<vmem>>, %arg18: memref<128x4xbf16, #tpu.memory_space<vmem>>, %arg19: memref<1x4xf32, #tpu.memory_space<vmem>>, %arg20: memref<512x4xf32, #tpu.memory_space<vmem>>) attributes {dimension_semantics = [#tpu.dimension_semantics<parallel>], iteration_bounds = array<i64: 2>, scalar_prefetch = 0 : i64, scratch_operands = 0 : i64, tpu.core_type = #tpu.core_type<tc>, window_params = [{transform_indices = @transform_0, window_bounds = array<i64: 512, 128>}, {pipeline_mode = #tpu.pipeline_mode<synchronous>, transform_indices = @transform_1, window_bounds = array<i64: 128, 128>}, {pipeline_mode = #tpu.pipeline_mode<synchronous>, transform_indices = @transform_2, window_bounds = array<i64: 1, 128>}, {pipeline_mode = #tpu.pipeline_mode<synchronous>, transform_indices = @transform_3, window_bounds = array<i64: 128, 128>}, {pipeline_mode = #tpu.pipeline_mode<synchronous>, transform_indices = @transform_4, window_bounds = array<i64: 1, 128>}, {pipeline_mode = #tpu.pipeline_mode<synchronous>, transform_indices = @transform_5, window_bounds = array<i64: 128, 128>}, {pipeline_mode = #tpu.pipeline_mode<synchronous>, transform_indices = @transform_6, window_bounds = array<i64: 1, 128>}, {pipeline_mode = #tpu.pipeline_mode<synchronous>, transform_indices = @transform_7, window_bounds = array<i64: 128, 128>}, {pipeline_mode = #tpu.pipeline_mode<synchronous>, transform_indices = @transform_8, window_bounds = array<i64: 1, 128>}, {pipeline_mode = #tpu.pipeline_mode<synchronous>, transform_indices = @transform_9, window_bounds = array<i64: 256, 128>}, {pipeline_mode = #tpu.pipeline_mode<synchronous>, transform_indices = @transform_10, window_bounds = array<i64: 1, 128>}, {pipeline_mode = #tpu.pipeline_mode<synchronous>, transform_indices = @transform_11, window_bounds = array<i64: 128, 128>}, {pipeline_mode = #tpu.pipeline_mode<synchronous>, transform_indices = @transform_12, window_bounds = array<i64: 1, 128>}, {pipeline_mode = #tpu.pipeline_mode<synchronous>, transform_indices = @transform_13, window_bounds = array<i64: 128, 128>}, {pipeline_mode = #tpu.pipeline_mode<synchronous>, transform_indices = @transform_14, window_bounds = array<i64: 1, 128>}, {pipeline_mode = #tpu.pipeline_mode<synchronous>, transform_indices = @transform_15, window_bounds = array<i64: 128, 128>}, {pipeline_mode = #tpu.pipeline_mode<synchronous>, transform_indices = @transform_16, window_bounds = array<i64: 1, 128>}, {pipeline_mode = #tpu.pipeline_mode<synchronous>, transform_indices = @transform_17, window_bounds = array<i64: 128, 4>}, {pipeline_mode = #tpu.pipeline_mode<synchronous>, transform_indices = @transform_18, window_bounds = array<i64: 1, 4>}, {transform_indices = @transform_19, window_bounds = array<i64: 512, 4>}]} {
    %c0 = arith.constant 0 : index
    %c0_0 = arith.constant 0 : index
    %0 = vector.load %arg1[%c0, %c0_0] : memref<512x128xbf16, #tpu.memory_space<vmem>>, vector<512x128xbf16>
    %c0_1 = arith.constant 0 : index
    %c0_2 = arith.constant 0 : index
    %1 = vector.load %arg2[%c0_1, %c0_2] : memref<128x128xbf16, #tpu.memory_space<vmem>>, vector<128x128xbf16>
    %cst = arith.constant dense<0.000000e+00> : vector<512x128xf32>
    %2 = tpu.matmul %0, %1, %cst {dimension_numbers = #tpu.dot_dimension_numbers<[1], [0], [0], [1], [0, 0, 1, 1], [], []>} : vector<512x128xbf16>, vector<128x128xbf16>, vector<512x128xf32> -> vector<512x128xf32>
    %c0_3 = arith.constant 0 : index
    %c0_4 = arith.constant 0 : index
    %3 = vector.load %arg3[%c0_3, %c0_4] : memref<1x128xf32, #tpu.memory_space<vmem>>, vector<1x128xf32>
    %4 = vector.broadcast %3 : vector<1x128xf32> to vector<512x128xf32>
    %5 = arith.addf %2, %4 : vector<512x128xf32>
    %cst_5 = arith.constant 0.000000e+00 : f32
    %6 = vector.broadcast %cst_5 : f32 to vector<512x128xf32>
    %7 = arith.maximumf %5, %6 : vector<512x128xf32>
    %8 = arith.truncf %7 : vector<512x128xf32> to vector<512x128xbf16>
    %c0_6 = arith.constant 0 : index
    %c0_7 = arith.constant 0 : index
    %9 = vector.load %arg4[%c0_6, %c0_7] : memref<128x128xbf16, #tpu.memory_space<vmem>>, vector<128x128xbf16>
    %cst_8 = arith.constant dense<0.000000e+00> : vector<512x128xf32>
    %10 = tpu.matmul %8, %9, %cst_8 {dimension_numbers = #tpu.dot_dimension_numbers<[1], [0], [0], [1], [0, 0, 1, 1], [], []>} : vector<512x128xbf16>, vector<128x128xbf16>, vector<512x128xf32> -> vector<512x128xf32>
    %c0_9 = arith.constant 0 : index
    %c0_10 = arith.constant 0 : index
    %11 = vector.load %arg5[%c0_9, %c0_10] : memref<1x128xf32, #tpu.memory_space<vmem>>, vector<1x128xf32>
    %12 = vector.broadcast %11 : vector<1x128xf32> to vector<512x128xf32>
    %13 = arith.addf %10, %12 : vector<512x128xf32>
    %cst_11 = arith.constant 0.000000e+00 : f32
    %14 = vector.broadcast %cst_11 : f32 to vector<512x128xf32>
    %15 = arith.maximumf %13, %14 : vector<512x128xf32>
    %16 = arith.truncf %15 : vector<512x128xf32> to vector<512x128xbf16>
    %c0_12 = arith.constant 0 : index
    %c0_13 = arith.constant 0 : index
    %17 = vector.load %arg6[%c0_12, %c0_13] : memref<128x128xbf16, #tpu.memory_space<vmem>>, vector<128x128xbf16>
    %cst_14 = arith.constant dense<0.000000e+00> : vector<512x128xf32>
    %18 = tpu.matmul %16, %17, %cst_14 {dimension_numbers = #tpu.dot_dimension_numbers<[1], [0], [0], [1], [0, 0, 1, 1], [], []>} : vector<512x128xbf16>, vector<128x128xbf16>, vector<512x128xf32> -> vector<512x128xf32>
    %c0_15 = arith.constant 0 : index
    %c0_16 = arith.constant 0 : index
    %19 = vector.load %arg7[%c0_15, %c0_16] : memref<1x128xf32, #tpu.memory_space<vmem>>, vector<1x128xf32>
    %20 = vector.broadcast %19 : vector<1x128xf32> to vector<512x128xf32>
    %21 = arith.addf %18, %20 : vector<512x128xf32>
    %cst_17 = arith.constant 0.000000e+00 : f32
    %22 = vector.broadcast %cst_17 : f32 to vector<512x128xf32>
    %23 = arith.maximumf %21, %22 : vector<512x128xf32>
    %24 = arith.truncf %23 : vector<512x128xf32> to vector<512x128xbf16>
    %c0_18 = arith.constant 0 : index
    %c0_19 = arith.constant 0 : index
    %25 = vector.load %arg8[%c0_18, %c0_19] : memref<128x128xbf16, #tpu.memory_space<vmem>>, vector<128x128xbf16>
    %cst_20 = arith.constant dense<0.000000e+00> : vector<512x128xf32>
    %26 = tpu.matmul %24, %25, %cst_20 {dimension_numbers = #tpu.dot_dimension_numbers<[1], [0], [0], [1], [0, 0, 1, 1], [], []>} : vector<512x128xbf16>, vector<128x128xbf16>, vector<512x128xf32> -> vector<512x128xf32>
    %c0_21 = arith.constant 0 : index
    %c0_22 = arith.constant 0 : index
    %27 = vector.load %arg9[%c0_21, %c0_22] : memref<1x128xf32, #tpu.memory_space<vmem>>, vector<1x128xf32>
    %28 = vector.broadcast %27 : vector<1x128xf32> to vector<512x128xf32>
    %29 = arith.addf %26, %28 : vector<512x128xf32>
    %cst_23 = arith.constant 0.000000e+00 : f32
    %30 = vector.broadcast %cst_23 : f32 to vector<512x128xf32>
    %31 = arith.maximumf %29, %30 : vector<512x128xf32>
    %32 = arith.truncf %31 : vector<512x128xf32> to vector<512x128xbf16>
    %c0_24 = arith.constant 0 : index
    %c0_25 = arith.constant 0 : index
    %33 = vector.load %arg10[%c0_24, %c0_25] : memref<256x128xbf16, #tpu.memory_space<vmem>>, vector<256x128xbf16>
    %34 = vector.extract_strided_slice %33 {offsets = [0, 0], sizes = [128, 128], strides = [1, 1]} : vector<256x128xbf16> to vector<128x128xbf16>
    %cst_26 = arith.constant dense<0.000000e+00> : vector<512x128xf32>
    %35 = tpu.matmul %32, %34, %cst_26 {dimension_numbers = #tpu.dot_dimension_numbers<[1], [0], [0], [1], [0, 0, 1, 1], [], []>} : vector<512x128xbf16>, vector<128x128xbf16>, vector<512x128xf32> -> vector<512x128xf32>
    %36 = vector.extract_strided_slice %33 {offsets = [128, 0], sizes = [128, 128], strides = [1, 1]} : vector<256x128xbf16> to vector<128x128xbf16>
    %cst_27 = arith.constant dense<0.000000e+00> : vector<512x128xf32>
    %37 = tpu.matmul %0, %36, %cst_27 {dimension_numbers = #tpu.dot_dimension_numbers<[1], [0], [0], [1], [0, 0, 1, 1], [], []>} : vector<512x128xbf16>, vector<128x128xbf16>, vector<512x128xf32> -> vector<512x128xf32>
    %38 = arith.addf %35, %37 : vector<512x128xf32>
    %c0_28 = arith.constant 0 : index
    %c0_29 = arith.constant 0 : index
    %39 = vector.load %arg11[%c0_28, %c0_29] : memref<1x128xf32, #tpu.memory_space<vmem>>, vector<1x128xf32>
    %40 = vector.broadcast %39 : vector<1x128xf32> to vector<512x128xf32>
    %41 = arith.addf %38, %40 : vector<512x128xf32>
    %cst_30 = arith.constant 0.000000e+00 : f32
    %42 = vector.broadcast %cst_30 : f32 to vector<512x128xf32>
    %43 = arith.maximumf %41, %42 : vector<512x128xf32>
    %44 = arith.truncf %43 : vector<512x128xf32> to vector<512x128xbf16>
    %c0_31 = arith.constant 0 : index
    %c0_32 = arith.constant 0 : index
    %45 = vector.load %arg12[%c0_31, %c0_32] : memref<128x128xbf16, #tpu.memory_space<vmem>>, vector<128x128xbf16>
    %cst_33 = arith.constant dense<0.000000e+00> : vector<512x128xf32>
    %46 = tpu.matmul %44, %45, %cst_33 {dimension_numbers = #tpu.dot_dimension_numbers<[1], [0], [0], [1], [0, 0, 1, 1], [], []>} : vector<512x128xbf16>, vector<128x128xbf16>, vector<512x128xf32> -> vector<512x128xf32>
    %c0_34 = arith.constant 0 : index
    %c0_35 = arith.constant 0 : index
    %47 = vector.load %arg13[%c0_34, %c0_35] : memref<1x128xf32, #tpu.memory_space<vmem>>, vector<1x128xf32>
    %48 = vector.broadcast %47 : vector<1x128xf32> to vector<512x128xf32>
    %49 = arith.addf %46, %48 : vector<512x128xf32>
    %cst_36 = arith.constant 0.000000e+00 : f32
    %50 = vector.broadcast %cst_36 : f32 to vector<512x128xf32>
    %51 = arith.maximumf %49, %50 : vector<512x128xf32>
    %52 = arith.truncf %51 : vector<512x128xf32> to vector<512x128xbf16>
    %c0_37 = arith.constant 0 : index
    %c0_38 = arith.constant 0 : index
    %53 = vector.load %arg14[%c0_37, %c0_38] : memref<128x128xbf16, #tpu.memory_space<vmem>>, vector<128x128xbf16>
    %cst_39 = arith.constant dense<0.000000e+00> : vector<512x128xf32>
    %54 = tpu.matmul %52, %53, %cst_39 {dimension_numbers = #tpu.dot_dimension_numbers<[1], [0], [0], [1], [0, 0, 1, 1], [], []>} : vector<512x128xbf16>, vector<128x128xbf16>, vector<512x128xf32> -> vector<512x128xf32>
    %c0_40 = arith.constant 0 : index
    %c0_41 = arith.constant 0 : index
    %55 = vector.load %arg15[%c0_40, %c0_41] : memref<1x128xf32, #tpu.memory_space<vmem>>, vector<1x128xf32>
    %56 = vector.broadcast %55 : vector<1x128xf32> to vector<512x128xf32>
    %57 = arith.addf %54, %56 : vector<512x128xf32>
    %cst_42 = arith.constant 0.000000e+00 : f32
    %58 = vector.broadcast %cst_42 : f32 to vector<512x128xf32>
    %59 = arith.maximumf %57, %58 : vector<512x128xf32>
    %60 = arith.truncf %59 : vector<512x128xf32> to vector<512x128xbf16>
    %c0_43 = arith.constant 0 : index
    %c0_44 = arith.constant 0 : index
    %61 = vector.load %arg16[%c0_43, %c0_44] : memref<128x128xbf16, #tpu.memory_space<vmem>>, vector<128x128xbf16>
    %cst_45 = arith.constant dense<0.000000e+00> : vector<512x128xf32>
    %62 = tpu.matmul %60, %61, %cst_45 {dimension_numbers = #tpu.dot_dimension_numbers<[1], [0], [0], [1], [0, 0, 1, 1], [], []>} : vector<512x128xbf16>, vector<128x128xbf16>, vector<512x128xf32> -> vector<512x128xf32>
    %c0_46 = arith.constant 0 : index
    %c0_47 = arith.constant 0 : index
    %63 = vector.load %arg17[%c0_46, %c0_47] : memref<1x128xf32, #tpu.memory_space<vmem>>, vector<1x128xf32>
    %64 = vector.broadcast %63 : vector<1x128xf32> to vector<512x128xf32>
    %65 = arith.addf %62, %64 : vector<512x128xf32>
    %cst_48 = arith.constant 0.000000e+00 : f32
    %66 = vector.broadcast %cst_48 : f32 to vector<512x128xf32>
    %67 = arith.maximumf %65, %66 : vector<512x128xf32>
    %68 = arith.truncf %67 : vector<512x128xf32> to vector<512x128xbf16>
    %c0_49 = arith.constant 0 : index
    %c0_50 = arith.constant 0 : index
    %69 = vector.load %arg18[%c0_49, %c0_50] : memref<128x4xbf16, #tpu.memory_space<vmem>>, vector<128x4xbf16>
    %cst_51 = arith.constant dense<0.000000e+00> : vector<512x4xf32>
    %70 = tpu.matmul %68, %69, %cst_51 {dimension_numbers = #tpu.dot_dimension_numbers<[1], [0], [0], [1], [0, 0, 1, 1], [], []>} : vector<512x128xbf16>, vector<128x4xbf16>, vector<512x4xf32> -> vector<512x4xf32>
    %c0_52 = arith.constant 0 : index
    %c0_53 = arith.constant 0 : index
    %71 = vector.load %arg19[%c0_52, %c0_53] : memref<1x4xf32, #tpu.memory_space<vmem>>, vector<1x4xf32>
    %72 = vector.broadcast %71 : vector<1x4xf32> to vector<512x4xf32>
    %73 = arith.addf %70, %72 : vector<512x4xf32>
    %c0_54 = arith.constant 0 : index
    %c0_55 = arith.constant 0 : index
    %74 = vector.load %arg20[%c0_54, %c0_55] : memref<512x4xf32, #tpu.memory_space<vmem>>, vector<512x4xf32>
    tpu.vector_store %arg20[%c0_54, %c0_55], %73 {strides = array<i32>} : memref<512x4xf32, #tpu.memory_space<vmem>>, vector<512x4xf32>,
    return
  }
  func.func @transform_0(%arg0: i32) -> (i32, i32) {
    %c0_i32 = arith.constant 0 : i32
    %c0_i32_0 = arith.constant 0 : i32
    return %arg0, %c0_i32 : i32, i32
  }
  func.func @transform_1(%arg0: i32) -> (i32, i32) {
    %c0_i32 = arith.constant 0 : i32
    %c0_i32_0 = arith.constant 0 : i32
    %c0_i32_1 = arith.constant 0 : i32
    return %c0_i32, %c0_i32_0 : i32, i32
  }
  func.func @transform_2(%arg0: i32) -> (i32, i32) {
    %c0_i32 = arith.constant 0 : i32
    %c0_i32_0 = arith.constant 0 : i32
    %c0_i32_1 = arith.constant 0 : i32
    return %c0_i32, %c0_i32_0 : i32, i32
  }
  func.func @transform_3(%arg0: i32) -> (i32, i32) {
    %c0_i32 = arith.constant 0 : i32
    %c0_i32_0 = arith.constant 0 : i32
    %c0_i32_1 = arith.constant 0 : i32
    return %c0_i32, %c0_i32_0 : i32, i32
  }
  func.func @transform_4(%arg0: i32) -> (i32, i32) {
    %c0_i32 = arith.constant 0 : i32
    %c0_i32_0 = arith.constant 0 : i32
    %c0_i32_1 = arith.constant 0 : i32
    return %c0_i32, %c0_i32_0 : i32, i32
  }
  func.func @transform_5(%arg0: i32) -> (i32, i32) {
    %c0_i32 = arith.constant 0 : i32
    %c0_i32_0 = arith.constant 0 : i32
    %c0_i32_1 = arith.constant 0 : i32
    return %c0_i32, %c0_i32_0 : i32, i32
  }
  func.func @transform_6(%arg0: i32) -> (i32, i32) {
    %c0_i32 = arith.constant 0 : i32
    %c0_i32_0 = arith.constant 0 : i32
    %c0_i32_1 = arith.constant 0 : i32
    return %c0_i32, %c0_i32_0 : i32, i32
  }
  func.func @transform_7(%arg0: i32) -> (i32, i32) {
    %c0_i32 = arith.constant 0 : i32
    %c0_i32_0 = arith.constant 0 : i32
    %c0_i32_1 = arith.constant 0 : i32
    return %c0_i32, %c0_i32_0 : i32, i32
  }
  func.func @transform_8(%arg0: i32) -> (i32, i32) {
    %c0_i32 = arith.constant 0 : i32
    %c0_i32_0 = arith.constant 0 : i32
    %c0_i32_1 = arith.constant 0 : i32
    return %c0_i32, %c0_i32_0 : i32, i32
  }
  func.func @transform_9(%arg0: i32) -> (i32, i32) {
    %c0_i32 = arith.constant 0 : i32
    %c0_i32_0 = arith.constant 0 : i32
    %c0_i32_1 = arith.constant 0 : i32
    return %c0_i32, %c0_i32_0 : i32, i32
  }
  func.func @transform_10(%arg0: i32) -> (i32, i32) {
    %c0_i32 = arith.constant 0 : i32
    %c0_i32_0 = arith.constant 0 : i32
    %c0_i32_1 = arith.constant 0 : i32
    return %c0_i32, %c0_i32_0 : i32, i32
  }
  func.func @transform_11(%arg0: i32) -> (i32, i32) {
    %c0_i32 = arith.constant 0 : i32
    %c0_i32_0 = arith.constant 0 : i32
    %c0_i32_1 = arith.constant 0 : i32
    return %c0_i32, %c0_i32_0 : i32, i32
  }
  func.func @transform_12(%arg0: i32) -> (i32, i32) {
    %c0_i32 = arith.constant 0 : i32
    %c0_i32_0 = arith.constant 0 : i32
    %c0_i32_1 = arith.constant 0 : i32
    return %c0_i32, %c0_i32_0 : i32, i32
  }
  func.func @transform_13(%arg0: i32) -> (i32, i32) {
    %c0_i32 = arith.constant 0 : i32
    %c0_i32_0 = arith.constant 0 : i32
    %c0_i32_1 = arith.constant 0 : i32
    return %c0_i32, %c0_i32_0 : i32, i32
  }
  func.func @transform_14(%arg0: i32) -> (i32, i32) {
    %c0_i32 = arith.constant 0 : i32
    %c0_i32_0 = arith.constant 0 : i32
    %c0_i32_1 = arith.constant 0 : i32
    return %c0_i32, %c0_i32_0 : i32, i32
  }
  func.func @transform_15(%arg0: i32) -> (i32, i32) {
    %c0_i32 = arith.constant 0 : i32
    %c0_i32_0 = arith.constant 0 : i32
    %c0_i32_1 = arith.constant 0 : i32
    return %c0_i32, %c0_i32_0 : i32, i32
  }
  func.func @transform_16(%arg0: i32) -> (i32, i32) {
    %c0_i32 = arith.constant 0 : i32
    %c0_i32_0 = arith.constant 0 : i32
    %c0_i32_1 = arith.constant 0 : i32
    return %c0_i32, %c0_i32_0 : i32, i32
  }
  func.func @transform_17(%arg0: i32) -> (i32, i32) {
    %c0_i32 = arith.constant 0 : i32
    %c0_i32_0 = arith.constant 0 : i32
    %c0_i32_1 = arith.constant 0 : i32
    return %c0_i32, %c0_i32_0 : i32, i32
  }
  func.func @transform_18(%arg0: i32) -> (i32, i32) {
    %c0_i32 = arith.constant 0 : i32
    %c0_i32_0 = arith.constant 0 : i32
    %c0_i32_1 = arith.constant 0 : i32
    return %c0_i32, %c0_i32_0 : i32, i32
  }
  func.func @transform_19(%arg0: i32) -> (i32, i32) {
    %c0_i32 = arith.constant 0 : i32
    %c0_i32_0 = arith.constant 0 : i32
    return %arg0, %c0_i32 : i32, i32
  }
}

</mosaic_0001>

<bundles_post_ra>
// kernel: tpu_custom_call.1
= control target key start
LH: loop header
LB: loop body
LE: loop exit
PB: predicated region body
PF: predicated region fallthrough
CT: control target
= control target key end

     0   :  { %s7035_s0 = inlined_call_operand.hbm [shape: bf16[1024,128], index: 0, kind: input, shape index: {}]   ;;  %s7036_s1 = inlined_call_operand.vmem [shape: bf16[128,128], index: 1, kind: input, shape index: {}]   ;;  %s7037_s2 = inlined_call_operand.vmem [shape: f32[1,128], index: 2, kind: input, shape index: {}]   ;;  %s7038_s3 = inlined_call_operand.hbm [shape: bf16[128,128], index: 3, kind: input, shape index: {}]   ;;  %s7039_s4 = inlined_call_operand.vmem [shape: f32[1,128], index: 4, kind: input, shape index: {}]   ;;  %s7040_s5 = inlined_call_operand.hbm [shape: bf16[128,128], index: 5, kind: input, shape index: {}]   ;;  %s7041_s6 = inlined_call_operand.vmem [shape: f32[1,128], index: 6, kind: input, shape index: {}]   ;;  %s7042_s7 = inlined_call_operand.hbm [shape: bf16[128,128], index: 7, kind: input, shape index: {}]   ;;  %s7043_s8 = inlined_call_operand.vmem [shape: f32[1,128], index: 8, kind: input, shape index: {}]   ;;  %s7044_s9 = inlined_call_operand.hbm [shape: bf16[256,128], index: 9, kind: input, shape index: {}]   ;;  %s7045_s10 = inlined_call_operand.vmem [shape: f32[1,128], index: 10, kind: input, shape index: {}]   ;;  %s7046_s11 = inlined_call_operand.hbm [shape: bf16[128,128], index: 11, kind: input, shape index: {}]   ;;  %s7047_s12 = inlined_call_operand.vmem [shape: f32[1,128], index: 12, kind: input, shape index: {}]   ;;  %s7048_s13 = inlined_call_operand.hbm [shape: bf16[128,128], index: 13, kind: input, shape index: {}]   ;;  %s7049_s14 = inlined_call_operand.vmem [shape: f32[1,128], index: 14, kind: input, shape index: {}]   ;;  %s7050_s15 = inlined_call_operand.hbm [shape: bf16[128,128], index: 15, kind: input, shape index: {}]   ;;  %s7051_s16 = inlined_call_operand.vmem [shape: f32[1,128], index: 16, kind: input, shape index: {}]   ;;  %s7052_s17 = inlined_call_operand.vmem [shape: bf16[128,4], index: 17, kind: input, shape index: {}]   ;;  %s7053_s18 = inlined_call_operand.vmem [shape: f32[1,4], index: 18, kind: input, shape index: {}]   ;;  %s7054_s19 = inlined_call_operand.vmem [shape: f32[1024,4], index: 19, kind: output, shape index: {}]  }
   0x1   :  { %7063 = sst [smem:[#allocation20_spill]] %s7035_s0 }
   0x2   :  { %7064 = sst [smem:[#allocation21_spill]] %s7036_s1 }
   0x3   :  { %7065 = sst [smem:[#allocation22_spill]] %s7037_s2 }
   0x4   :  { %7066 = sst [smem:[#allocation23_spill]] %s7038_s3 }
   0x5   :  { %7067 = sst [smem:[#allocation24_spill]] %s7040_s5 }
   0x6   :  { %7068 = sst [smem:[#allocation25_spill]] %s7042_s7 }
   0x7   :  { %7069 = sst [smem:[#allocation26_spill]] %s7044_s9 }
   0x8   :  { %7070 = sst [smem:[#allocation27_spill]] %s7046_s11 }
   0x9   :  { %7071 = sst [smem:[#allocation28_spill]] %s7049_s14 }
   0xa   :  { %7072 = sst [smem:[#allocation29_spill]] %s7051_s16 }
   0xb   :  { %7073 = sst [smem:[#allocation30_spill]] %s7053_s18 }
   0xc   :  { %7074 = sst [smem:[#allocation31_spill]] %s7054_s19 }
   0xd   :  { %24 = vsyncpa [#allocation3], 0 }
   0xe   :  { %26 = vsyncpa [#allocation3 + $0x1], 0 }
   0xf   :  { %27 = vsyncpa [#allocation5], 0 }
  0x10   :  { %28 = vsyncpa [#allocation8], 0 }
  0x11   :  { %29 = vsyncpa [#allocation11], 0 }
  0x12   :  { %30 = vsyncpa [#allocation14], 0  ;;  %s5563_s0 = smov 0   ;;  %s5565_s30 = smov 0  }
  0x13   :  { %s5567_s20 = smov 0   ;;  %s5569_s21 = smov 0  }
  0x14 LB: > { %s7075_s2 = sld [smem:[#allocation23_spill]]  ;;  %s7057_s24 = sadd.s32 4294967295, %s5452_s21   ;;  %s5452_s21 = sphi %s5569_s21, %s7098_s21   ;;  %s5448_s20 = sphi %s5567_s20, %s7097_s20   ;;  %s5444_s30 = sphi %s5565_s30, %s7096_s30   ;;  %s5440_s0 = sphi %s5563_s0, %s7095_s0  }
  0x15   : > { %p4398_p0 = scmp.ge.s32.totalorder %s5452_s21, 1  ;;  %p5590_p1 = scmp.eq.s32.totalorder %s7057_s24, 0 }
  0x16   : > { %p471_p2 = scmp.lt.s32.totalorder %s5452_s21, 3  ;;  %s5454_s26 = smov [#allocation4]  }
  0x17   : > { %s490_s27 = sshll.u32 %s5454_s26, 4  ;;  %s7078_s7 = sld [smem:[#allocation25_spill]]  ;;  %s491_s27 = int_to_ptr.vmem [resolvable:$true] %s490_s27 }
  0x18   : > { %p5595_p3 = pnand %p4398_p0, %p471_p2  ;;  %s7080_s11 = sld [smem:[#allocation27_spill]] }
  0x19   : > { %s5455_s19 = smov [#allocation7]   ;;  %s7061_s16 = smov 64  }
  0x1a   : > { %s488_s23 = sshll.u32 %s7075_s2, 4  ;;  %p5030_p4 = pneg %p5595_p3  ;;  %s489_s23 = int_to_ptr.hbm [resolvable:$true] %s488_s23 }
  0x1b   : > { %s524_s18 = sshll.u32 %s5455_s19, 4  ;;  %s7062_s14 = smov 4   ;;  %s525_s18 = int_to_ptr.vmem [resolvable:$true] %s524_s18 }
  0x1c   : > { %p5606_p5 = pnand %p5030_p4, %p5590_p1  ;;  %s7081_s5 = sld [smem:[#allocation24_spill]] }
  0x1d   : > { %s522_s1 = sshll.u32 %s7078_s7, 4  ;;  %s5458_s19 = smov [#allocation10]   ;;  %s523_s1 = int_to_ptr.hbm [resolvable:$true] %s522_s1 }
  0x1e   : > { %s556_s26 = sshll.u32 %s7080_s11, 4  ;;  %s558_s2 = sshll.u32 %s5458_s19, 4  ;;  %s557_s26 = int_to_ptr.hbm [resolvable:$true] %s556_s26  ;;  %s559_s2 = int_to_ptr.vmem [resolvable:$true] %s558_s2 }
  0x1f   : > { %5033 = dma.hbm_to_vmem [thread:$0]  (!%p5606_p5), %s489_s23, 1024, %s491_s27, [#allocation5], %s7061_s16, %s7061_s16, %s7062_s14  }
  0x20   : > { %5039 = dma.hbm_to_vmem [thread:$0]  (!%p5606_p5), %s523_s1, 1024, %s525_s18, [#allocation8], %s7061_s16, %s7061_s16, %s7062_s14  }
  0x21   : > { %5045 = dma.hbm_to_vmem [thread:$0]  (!%p5606_p5), %s557_s26, 1024, %s559_s2, [#allocation11], %s7061_s16, %s7061_s16, %s7062_s14  }
  0x22   : > { %s505_s29 = sshll.u32 %s7081_s5, 4  ;;  %s5459_s23 = smov [#allocation6]   ;;  %s506_s29 = int_to_ptr.hbm [resolvable:$true] %s505_s29 }
  0x23   : > { %s507_s27 = sshll.u32 %s5459_s23, 4  ;;  %s7082_s9 = sld [smem:[#allocation26_spill]]  ;;  %s508_s27 = int_to_ptr.vmem [resolvable:$true] %s507_s27 }
  0x24   : > { %5036 = dma.hbm_to_vmem [thread:$0]  (!%p5606_p5), %s506_s29, 1024, %s508_s27, [#allocation5], %s7061_s16, %s7061_s16, %s7062_s14  }
  0x25   : > { %s573_s24 = sshll.u32 %s7048_s13, 4  ;;  %s5460_s26 = smov [#allocation9]   ;;  %s574_s24 = int_to_ptr.hbm [resolvable:$true] %s573_s24 }
  0x26   : > { %s541_s19 = sshll.u32 %s5460_s26, 4  ;;  %s5461_s7 = smov [#allocation12]   ;;  %s542_s19 = int_to_ptr.vmem [resolvable:$true] %s541_s19 }
  0x27   : > { %s575_s11 = sshll.u32 %s5461_s7, 4  ;;  %s590_s23 = sshll.u32 %s7050_s15, 4  ;;  %s576_s11 = int_to_ptr.vmem [resolvable:$true] %s575_s11  ;;  %s591_s23 = int_to_ptr.hbm [resolvable:$true] %s590_s23 }
  0x28   : > { %5048 = dma.hbm_to_vmem [thread:$0]  (!%p5606_p5), %s574_s24, 1024, %s576_s11, [#allocation11], %s7061_s16, %s7061_s16, %s7062_s14  }
  0x29   : > { %s539_s18 = sshll.u32 %s7082_s9, 4  ;;  %s5462_s27 = smov [#allocation13]   ;;  %s540_s18 = int_to_ptr.hbm [resolvable:$true] %s539_s18 }
  0x2a   : > { %5042 = dma.hbm_to_vmem [thread:$0]  (!%p5606_p5), %s540_s18, 2048, %s542_s19, [#allocation8], %s7061_s16, %s7061_s16, %s7062_s14  }
  0x2b   : > { %s592_s18 = sshll.u32 %s5462_s27, 4  ;;  %s5661_s1 = sadd.s32 1, %s5452_s21   ;;  %s593_s18 = int_to_ptr.vmem [resolvable:$true] %s592_s18 }
  0x2c   : > { %5051 = dma.hbm_to_vmem [thread:$0]  (!%p5606_p5), %s591_s23, 1024, %s593_s18, [#allocation14], %s7061_s16, %s7061_s16, %s7062_s14  }
  0x2d   : > { %s40_s28 = ssub.s32 %s5452_s21, %s5661_s1  ;;  %s43_s26 = sadd.s32 1, %s5448_s20 }
  0x2e   : > { %p41_p6 = scmp.eq.s32.totalorder %s40_s28, 0  ;;  %p50_p7 = scmp.ne.s32.totalorder %s5448_s20, %s5444_s30 }
  0x2f   : > { %p51_p8 = scmp.eq.s32.totalorder %s5452_s21, 0  ;;  %p56_p9 = scmp.ne.s32.totalorder %s5444_s30, %s5440_s0 }
  0x30   : > { %s5672_s24 = scalar_select %p41_p6, %s5448_s20, %s43_s26  }
  0x31   : > { %p52_p10 = por %p51_p8, %p50_p7  ;;  %p5676_p11 = por %p5590_p1, %p56_p9 }
  0x32   : > { %p5063_p12 = scmp.lt.s32.totalorder %s5452_s21, 2  ;;  %s615_s22 = sand.u32 1, %s5448_s20  }
  0x33   : > { %s4407_s7 = sshll.u32 %s615_s22, 8  ;;  %s4871_s11 = sshll.u32 %s5452_s21, 8 }
  0x34   : > { %s7084_s23 = sld [smem:[#allocation20_spill]]  ;;  %s619_s18 = scalar_lea.vmem [#allocation2], %s4407_s7 }
  0x35   : > { %s627_s28 = sshll.u32 %s619_s18, 4  ;;  %p5686_p13 = pnand %p5063_p12, %p52_p10  ;;  %s628_s28 = int_to_ptr.vmem [resolvable:$true] %s627_s28 }
  0x36   : > { %s616_s26 = scalar_lea.sflag [#allocation3], %s615_s22 }
  0x37   : > { %p5376_p2 = pneg %p5686_p13 }
  0x3a   : > { %s624_s27 = scalar_lea.hbm %s7084_s23, %s4871_s11  ;;  %s5379_s29 = scalar_lea.hbm %s7084_s23, 512 }
  0x3b   : > { %s625_s16 = sshll.u32 %s624_s27, 4  ;;  %s626_s16 = int_to_ptr.hbm [resolvable:$true] %s625_s16 }
  0x3c   : > { %s5372_s14 = sshra.s32 %s626_s16, 4  ;;  %s5373_s14 = int_to_ptr.hbm [resolvable:$true] %s5372_s14 }
  0x3d   : > { %s5374_s5 = scalar_lea.hbm %s5373_s14, 256  ;;  %p5380_p6 = scmp.lt.s32.totalorder %s5373_s14, %s7084_s23 }
  0x3e   : > { %p5375_p0 = scmp.ne.s32.totalorder %s5373_s14, %s5374_s5  ;;  %p5381_p7 = scmp.lt.s32.totalorder %s5379_s29, %s5374_s5 }
  0x40   : > { %p5377_p4 = pnand %p5376_p2, %p5375_p0  ;;  %p5382_p8 = por %p5381_p7, %p5380_p6 }
  0x42   : > { %p5378_p5 = pneg %p5377_p4 }
  0x44   : > { %p5383_p9 = pnand %p5382_p8, %p5378_p5 }
  0x46   : > { %5386 = shalt.err (!%p5383_p9)
}
  0x47   : > { %s7086_s22 = smov 4   ;;  %s7087_s18 = smov 64  }
  0x48   : > { %5055 = dma.hbm_to_vmem [thread:$0]  (!%p5686_p13), %s626_s16, 4096, %s628_s28, %s616_s26, %s7087_s18, %s7087_s18, %s7086_s22  }
  0x49   : > { %639 = sbr.rel (%p5595_p3) target bundleno = 1982 (0x7be), region = 96  ;;  %s641_s11 = sand.u32 (!%p5595_p3), 1, %s5444_s30  }
  0x4a   : > { %s4411_s7 = sshll.u32 (!%p5595_p3), %s641_s11, 8  ;;  %s642_s9 = scalar_lea.sflag (!%p5595_p3), [#allocation3], %s641_s11 }
  0x4b   : > { %s5706_s2 = scalar_lea.vmem (!%p5595_p3), [#allocation2], %s4411_s7 }
  0x4e   : > { %5419 = dma.done.wait (%p5676_p11), %s642_s9, 4096  }
  0x4f   : > { %5421 = vsyncadd (%p5676_p11), %s642_s9, 4294963200 }
  0x50   : > { %5423 = dma.done.wait (%p5590_p1), [#allocation5], 2048  }
  0x51   : > { %5425 = vsyncadd (%p5590_p1), [#allocation5], 4294965248 }
  0x52   : > { %5427 = dma.done.wait (%p5590_p1), [#allocation8], 3072  }
  0x53   : > { %5429 = vsyncadd (%p5590_p1), [#allocation8], 4294964224 }
  0x54   : > { %5431 = dma.done.wait (%p5590_p1), [#allocation11], 2048  }
  0x55   : > { %5433 = vsyncadd (%p5590_p1), [#allocation11], 4294965248 }
  0x56   : > { %5435 = dma.done.wait (%p5590_p1), [#allocation14], 1024  }
  0x57   : > { %5437 = vsyncadd (%p5590_p1), [#allocation14], 4294966272  ;;  %s7088_s14 = sld [smem:[#allocation21_spill]]  ;;  %v4927_v8 = vld [vmem:[#allocation6 + $0x38] sm:$0xff]  ;;  %v4872_v9 = vld [vmem:[%s5706_s2] sm:$0xff]  ;;  %s7092_s16 = sadd.s32 4294967295, %s5452_s21  }
  0x58   : > { %v4888_v10 = vld [vmem:[%s5706_s2 + $0x80] sm:$0xff]  ;;  %v4873_v11 = vld [vmem:[%s5706_s2 + $0x8] sm:$0xff]  ;;  %v4926_v13 = vld [vmem:[#allocation6 + $0x30] sm:$0xff]  ;;  %s7089_s3 = sld [smem:[#allocation22_spill]]  ;;  %vm4197_vm0 = vcmask 31744  }
  0x59   : > { %v4889_v12 = vld [vmem:[%s5706_s2 + $0x88] sm:$0xff]  ;;  %v4874_v14 = vld [vmem:[%s5706_s2 + $0x10] sm:$0xff]  ;;  %v4875_v16 = vld [vmem:[%s5706_s2 + $0x18] sm:$0xff]  ;;  %s7090_s25 = sld [smem:[#allocation28_spill]] }
  0x5a   : > { %v4890_v15 = vld [vmem:[%s5706_s2 + $0x90] sm:$0xff]  ;;  %v4891_v17 = vld [vmem:[%s5706_s2 + $0x98] sm:$0xff]  ;;  %v4925_v18 = vld [vmem:[#allocation6 + $0x28] sm:$0xff]  ;;  %s7091_s18 = sld [smem:[#allocation29_spill]] }
  0x5b   : > { %v4876_v19 = vld [vmem:[%s5706_s2 + $0x20] sm:$0xff]  ;;  %v4919_v21 = vld [vmem:[#allocation4 + $0x38] sm:$0xff]  ;;  %v4877_v22 = vld [vmem:[%s5706_s2 + $0x28] sm:$0xff]  ;;  %s7093_s28 = sld [smem:[#allocation30_spill]] }
  0x5c   : > { %v4892_v20 = vld [vmem:[%s5706_s2 + $0xa0] sm:$0xff]  ;;  %1400 = vmatpush.bf16.msra.mxu1 %v4919_v21  ;;  %4992 = vmatpush.bf16.msra.mxu3 %v4919_v21  ;;  %v4893_v23 = vld [vmem:[%s5706_s2 + $0xa8] sm:$0xff]  ;;  %v4918_v24 = vld [vmem:[#allocation4 + $0x30] sm:$0xff]  ;;  %s7094_s29 = sld [smem:[#allocation31_spill]] }
  0x5d   : > { %v4911_v0 = vld [vmem:[%s7088_s14 + $0x38] sm:$0xff]  ;;  %v4910_v1 = vld [vmem:[%s7088_s14 + $0x30] sm:$0xff]  ;;  %v4909_v2 = vld [vmem:[%s7088_s14 + $0x28] sm:$0xff] }
  0x5e   : > { %1067 = vmatpush.bf16.msra.mxu0 %v4911_v0  ;;  %4984 = vmatpush.bf16.msra.mxu2 %v4911_v0  ;;  %v4908_v3 = vld [vmem:[%s7088_s14 + $0x20] sm:$0xff]  ;;  %v4907_v4 = vld [vmem:[%s7088_s14 + $0x18] sm:$0xff]  ;;  %v4906_v5 = vld [vmem:[%s7088_s14 + $0x10] sm:$0xff] }
  0x5f   : > { %v4905_v6 = vld [vmem:[%s7088_s14 + $0x8] sm:$0xff]  ;;  %v4904_v7 = vld [vmem:[%s7088_s14] sm:$0xff]  ;;  %v4915_v28 = vld [vmem:[#allocation4 + $0x18] sm:$0xff] }
  0x60   : > { %v4924_v25 = vld [vmem:[#allocation6 + $0x20] sm:$0xff]  ;;  %1401 = vmatpush.bf16.msra.mxu1 %v4918_v24  ;;  %v4917_v26 = vld [vmem:[#allocation4 + $0x28] sm:$0xff]  ;;  %4993 = vmatpush.bf16.msra.mxu3 %v4918_v24  ;;  %v4878_v29 = vld [vmem:[%s5706_s2 + $0x30] sm:$0xff] }
  0x61   : > { %v4916_v27 = vld [vmem:[#allocation4 + $0x20] sm:$0xff]  ;;  %v4894_v30 = vld [vmem:[%s5706_s2 + $0xb0] sm:$0xff]  ;;  %v4913_v32 = vld [vmem:[#allocation4 + $0x8] sm:$0xff] }
  0x62   : > { %1068 = vmatpush.bf16.msra.mxu0 %v4910_v1  ;;  %4985 = vmatpush.bf16.msra.mxu2 %v4910_v1  ;;  %v4914_v31 = vld [vmem:[#allocation4 + $0x10] sm:$0xff]  ;;  %v4912_v33 = vld [vmem:[#allocation4] sm:$0xff]  ;;  %v4879_v34 = vld [vmem:[%s5706_s2 + $0x38] sm:$0xff] }
  0x63   : > { %v4895_v35 = vld [vmem:[%s5706_s2 + $0xb8] sm:$0xff]  ;;  %v4880_v37 = vld [vmem:[%s5706_s2 + $0x40] sm:$0xff]  ;;  %v4881_v52 = vld [vmem:[%s5706_s2 + $0x48] sm:$0xff] }
  0x64   : > { %1402 = vmatpush.bf16.msra.mxu1 %v4917_v26  ;;  %4994 = vmatpush.bf16.msra.mxu3 %v4917_v26  ;;  %v4923_v36 = vld [vmem:[#allocation6 + $0x18] sm:$0xff]  ;;  %v4896_v38 = vld [vmem:[%s5706_s2 + $0xc0] sm:$0xff]  ;;  %v4897_v54 = vld [vmem:[%s5706_s2 + $0xc8] sm:$0xff] }
  0x65   : > { %v5773_v40 = vld [vmem:[%s7089_s3] ss:$0 sm:$0xff]  ;;  %v4935_v48 = vld [vmem:[#allocation7 + $0x38] sm:$0xff]  ;;  %v4922_v1 = vld [vmem:[#allocation6 + $0x10] sm:$0xff]  ;;  %s4419_s3 = sshll.u32 %s7092_s16, 6 }
  0x66   : > { %1069 = vmatpush.bf16.msra.mxu0 %v4909_v2  ;;  %4986 = vmatpush.bf16.msra.mxu2 %v4909_v2  ;;  %v4899_v24 = vld [vmem:[%s5706_s2 + $0xd8] sm:$0xff]  ;;  %p738_p1 = scmp.lt.s32.totalorder %s4419_s3, 127 }
  0x68   : > { %1403 = vmatpush.bf16.msra.mxu1 %v4916_v27  ;;  %4995 = vmatpush.bf16.msra.mxu3 %v4916_v27  ;;  %s7100_s3 = smov (!%p738_p1, %s4419_s3), 127 }
  0x69   : > { %s4420_s21 = sshll.u32 %s7100_s3, 3 }
  0x6a   : > { %1070 = vmatpush.bf16.msra.mxu0 %v4908_v3  ;;  %4987 = vmatpush.bf16.msra.mxu2 %v4908_v3  ;;  %s6742_s27 = scalar_lea.vmem %s7094_s29, %s4420_s21 }
  0x6c   : > { %1404 = vmatpush.bf16.msra.mxu1 %v4915_v28  ;;  %4996 = vmatpush.bf16.msra.mxu3 %v4915_v28 }
  0x6e   : > { %1071 = vmatpush.bf16.msra.mxu0 %v4907_v4  ;;  %4988 = vmatpush.bf16.msra.mxu2 %v4907_v4 }
  0x70   : > { %1405 = vmatpush.bf16.msra.mxu1 %v4914_v31  ;;  %4997 = vmatpush.bf16.msra.mxu3 %v4914_v31 }
  0x72   : > { %1072 = vmatpush.bf16.msra.mxu0 %v4906_v5  ;;  %4989 = vmatpush.bf16.msra.mxu2 %v4906_v5  ;;  %v4882_v5 = vld [vmem:[%s5706_s2 + $0x50] sm:$0xff] }
  0x74   : > { %1406 = vmatpush.bf16.msra.mxu1 %v4913_v32  ;;  %4998 = vmatpush.bf16.msra.mxu3 %v4913_v32 }
  0x76   : > { %1073 = vmatpush.bf16.msra.mxu0 %v4905_v6  ;;  %4990 = vmatpush.bf16.msra.mxu2 %v4905_v6 }
  0x78   : > { %1407 = vmatpush.bf16.msra.mxu1 %v4912_v33  ;;  %4999 = vmatpush.bf16.msra.mxu3 %v4912_v33 }
  0x7a   : > { %1074 = vmatpush.bf16.msra.mxu0 %v4904_v7  ;;  %4991 = vmatpush.bf16.msra.mxu2 %v4904_v7  ;;  %v4898_v7 = vld [vmem:[%s5706_s2 + $0xd0] sm:$0xff] }
  0x7c   : > { %2066 = vmatpush.bf16.msrb.mxu3 %v4935_v48 }
  0x7d   : > { %1075 = vmatmul.bf16.vlgmr.msra.gmra.mxu0 %v4872_v9  ;;  %1155 = vmatmul.bf16.vlgmr.msra.gmra.mxu2 %v4888_v10 }
  0x7e   : > { %1733 = vmatpush.bf16.msrb.mxu2 %v4927_v8 }
  0x82   : > { %1734 = vmatpush.bf16.msrb.mxu2 %v4926_v13 }
  0x86   : > { %1735 = vmatpush.bf16.msrb.mxu2 %v4925_v18  ;;  %v4934_v18 = vld [vmem:[#allocation7 + $0x30] sm:$0xff] }
  0x87   : > { %2067 = vmatpush.bf16.msrb.mxu3 %v4934_v18 }
  0x8a   : > { %1736 = vmatpush.bf16.msrb.mxu2 %v4924_v25 }
  0x8d   : > { %1080 = vmatmul.bf16.gmra.mxu0 %v4873_v11  ;;  %1160 = vmatmul.bf16.gmra.mxu2 %v4889_v12 }
  0x8e   : > { %1737 = vmatpush.bf16.msrb.mxu2 %v4923_v36 }
  0x92   : > { %1738 = vmatpush.bf16.msrb.mxu2 %v4922_v1 }
  0x9d   : > { %1085 = vmatmul.bf16.gmra.mxu0 %v4874_v14  ;;  %1165 = vmatmul.bf16.gmra.mxu2 %v4890_v15 }
  0xad   : > { %1090 = vmatmul.bf16.gmra.mxu0 %v4875_v16  ;;  %1170 = vmatmul.bf16.gmra.mxu2 %v4891_v17 }
  0xbd   : > { %1095 = vmatmul.bf16.gmra.mxu0 %v4876_v19  ;;  %1175 = vmatmul.bf16.gmra.mxu2 %v4892_v20 }
  0xcd   : > { %1100 = vmatmul.bf16.gmra.mxu0 %v4877_v22  ;;  %1180 = vmatmul.bf16.gmra.mxu2 %v4893_v23  ;;  %v4883_v22 = vld [vmem:[%s5706_s2 + $0x58] sm:$0xff] }
  0xdd   : > { %1105 = vmatmul.bf16.gmra.mxu0 %v4878_v29  ;;  %1185 = vmatmul.bf16.gmra.mxu2 %v4894_v30 }
  0xed   : > { %1110 = vmatmul.bf16.gmra.mxu0 %v4879_v34  ;;  %1190 = vmatmul.bf16.gmra.mxu2 %v4895_v35  ;;  %v4921_v35 = vld [vmem:[#allocation6 + $0x8] sm:$0xff] }
  0xee   : > { %1739 = vmatpush.bf16.msrb.mxu2 %v4921_v35 }
  0xfa   : > { %v1076_v39 = vpop.f32.mrf.mxu0 }
  0xfb   : > { %v1077_v42 = vadd.f32 %v5773_v40, %v1076_v39  ;;  %v4884_v39 = vld [vmem:[%s5706_s2 + $0x60] sm:$0xff] }
  0xfd   : > { %1115 = vmatmul.bf16.gmra.mxu0 %v4880_v37  ;;  %1195 = vmatmul.bf16.gmra.mxu2 %v4896_v38  ;;  %v1236_v45 = vmax.f32 %v1077_v42, 0.0  ;;  %v4900_v42 = vld [vmem:[%s5706_s2 + $0xe0] sm:$0xff] }
 0x100   : > { %v1156_v41 = vpop.f32.mrf.mxu2 }
 0x101   : > { %v1157_v47 = vadd.f32 %v5773_v40, %v1156_v41 }
 0x102   : > { %v1078_v43 = vpop.f32.mrf.mxu0 }
 0x103   : > { %v1079_v44 = vadd.f32 %v5773_v40, %v1078_v43  ;;  %v1268_v51 = vmax.f32 %v1157_v47, 0.0 }
 0x105   : > { %v1237_v46 = vmax.f32 %v1079_v44, 0.0 }
 0x107   : > { %v1300_v49 = vpack.c.bf16 %v1237_v46, %v1236_v45 }
 0x108   : > { %v1158_v50 = vpop.f32.mrf.mxu2 }
 0x109   : > { %1408 = vmatmul.bf16.vlgmr.msra.gmra.mxu1 %v1300_v49  ;;  %v1159_v53 = vadd.f32 %v5773_v40, %v1158_v50 }
 0x10a   : > { %v1081_v55 = vpop.f32.mrf.mxu0 }
 0x10b   : > { %v1269_v56 = vmax.f32 %v1159_v53, 0.0  ;;  %v1082_v59 = vadd.f32 %v5773_v40, %v1081_v55  ;;  %v4933_v53 = vld [vmem:[#allocation7 + $0x28] sm:$0xff] }
 0x10c   : > { %2068 = vmatpush.bf16.msrb.mxu3 %v4933_v53 }
 0x10d   : > { %1120 = vmatmul.bf16.gmra.mxu0 %v4881_v52  ;;  %1200 = vmatmul.bf16.gmra.mxu2 %v4897_v54  ;;  %v1316_v57 = vpack.c.bf16 %v1269_v56, %v1268_v51  ;;  %v1238_v62 = vmax.f32 %v1082_v59, 0.0  ;;  %v4901_v59 = vld [vmem:[%s5706_s2 + $0xe8] sm:$0xff] }
 0x10f   : > { %1488 = vmatmul.bf16.vlgmr.msra.gmra.mxu3 %v1316_v57  ;;  %v4885_v57 = vld [vmem:[%s5706_s2 + $0x68] sm:$0xff] }
 0x110   : > { %v1161_v58 = vpop.f32.mrf.mxu2 }
 0x111   : > { %v1162_v0 = vadd.f32 %v5773_v40, %v1161_v58 }
 0x112   : > { %v1083_v60 = vpop.f32.mrf.mxu0 }
 0x113   : > { %v1084_v61 = vadd.f32 %v5773_v40, %v1083_v60  ;;  %v1270_v4 = vmax.f32 %v1162_v0, 0.0 }
 0x115   : > { %v1239_v63 = vmax.f32 %v1084_v61, 0.0 }
 0x117   : > { %v1301_v2 = vpack.c.bf16 %v1239_v63, %v1238_v62 }
 0x118   : > { %v1163_v3 = vpop.f32.mrf.mxu2 }
 0x119   : > { %1413 = vmatmul.bf16.gmra.mxu1 %v1301_v2  ;;  %v1164_v6 = vadd.f32 %v5773_v40, %v1163_v3 }
 0x11a   : > { %v1086_v8 = vpop.f32.mrf.mxu0 }
 0x11b   : > { %v1271_v9 = vmax.f32 %v1164_v6, 0.0  ;;  %v1087_v12 = vadd.f32 %v5773_v40, %v1086_v8  ;;  %v4920_v6 = vld [vmem:[#allocation6] sm:$0xff] }
 0x11c   : > { %1740 = vmatpush.bf16.msrb.mxu2 %v4920_v6 }
 0x11d   : > { %1125 = vmatmul.bf16.gmra.mxu0 %v4882_v5  ;;  %1205 = vmatmul.bf16.gmra.mxu2 %v4898_v7  ;;  %v1317_v10 = vpack.c.bf16 %v1271_v9, %v1270_v4  ;;  %v1240_v15 = vmax.f32 %v1087_v12, 0.0  ;;  %v4902_v12 = vld [vmem:[%s5706_s2 + $0xf0] sm:$0xff] }
 0x11f   : > { %1493 = vmatmul.bf16.gmra.mxu3 %v1317_v10  ;;  %v4886_v10 = vld [vmem:[%s5706_s2 + $0x70] sm:$0xff] }
 0x120   : > { %v1166_v11 = vpop.f32.mrf.mxu2 }
 0x121   : > { %v1167_v17 = vadd.f32 %v5773_v40, %v1166_v11 }
 0x122   : > { %v1088_v13 = vpop.f32.mrf.mxu0 }
 0x123   : > { %v1089_v14 = vadd.f32 %v5773_v40, %v1088_v13  ;;  %v1272_v21 = vmax.f32 %v1167_v17, 0.0 }
 0x125   : > { %v1241_v16 = vmax.f32 %v1089_v14, 0.0 }
 0x127   : > { %v1302_v19 = vpack.c.bf16 %v1241_v16, %v1240_v15 }
 0x128   : > { %v1168_v20 = vpop.f32.mrf.mxu2 }
 0x129   : > { %1418 = vmatmul.bf16.gmra.mxu1 %v1302_v19  ;;  %v1169_v23 = vadd.f32 %v5773_v40, %v1168_v20 }
 0x12a   : > { %v1091_v25 = vpop.f32.mrf.mxu0 }
 0x12b   : > { %v1273_v26 = vmax.f32 %v1169_v23, 0.0  ;;  %v1092_v29 = vadd.f32 %v5773_v40, %v1091_v25 }
 0x12d   : > { %1130 = vmatmul.bf16.gmra.mxu0 %v4883_v22  ;;  %1210 = vmatmul.bf16.gmra.mxu2 %v4899_v24  ;;  %v1318_v27 = vpack.c.bf16 %v1273_v26, %v1272_v21  ;;  %v1242_v32 = vmax.f32 %v1092_v29, 0.0  ;;  %v4887_v26 = vld [vmem:[%s5706_s2 + $0x78] sm:$0xff]  ;;  %v4932_v29 = vld [vmem:[#allocation7 + $0x20] sm:$0xff] }
 0x12e   : > { %2069 = vmatpush.bf16.msrb.mxu3 %v4932_v29 }
 0x12f   : > { %1498 = vmatmul.bf16.gmra.mxu3 %v1318_v27 }
 0x130   : > { %v1171_v28 = vpop.f32.mrf.mxu2 }
 0x131   : > { %v1172_v34 = vadd.f32 %v5773_v40, %v1171_v28  ;;  %v4903_v28 = vld [vmem:[%s5706_s2 + $0xf8] sm:$0xff] }
 0x132   : > { %v1093_v30 = vpop.f32.mrf.mxu0 }
 0x133   : > { %v1094_v31 = vadd.f32 %v5773_v40, %v1093_v30  ;;  %v1274_v38 = vmax.f32 %v1172_v34, 0.0 }
 0x135   : > { %v1243_v33 = vmax.f32 %v1094_v31, 0.0 }
 0x137   : > { %v1303_v36 = vpack.c.bf16 %v1243_v33, %v1242_v32 }
 0x138   : > { %v1173_v37 = vpop.f32.mrf.mxu2 }
 0x139   : > { %1423 = vmatmul.bf16.gmra.mxu1 %v1303_v36  ;;  %v1174_v41 = vadd.f32 %v5773_v40, %v1173_v37 }
 0x13a   : > { %v1096_v43 = vpop.f32.mrf.mxu0 }
 0x13b   : > { %v1275_v44 = vmax.f32 %v1174_v41, 0.0  ;;  %v1097_v47 = vadd.f32 %v5773_v40, %v1096_v43  ;;  %v4959_v41 = vld [vmem:[#allocation10 + $0x38] sm:$0xff] }
 0x13c   : > { %3029 = vmatpush.bf16.msra.mxu2 %v4959_v41 }
 0x13d   : > { %1135 = vmatmul.bf16.gmra.mxu0 %v4884_v39  ;;  %1215 = vmatmul.bf16.gmra.mxu2 %v4900_v42  ;;  %v1319_v45 = vpack.c.bf16 %v1275_v44, %v1274_v38  ;;  %v1244_v50 = vmax.f32 %v1097_v47, 0.0 }
 0x13f   : > { %1503 = vmatmul.bf16.gmra.mxu3 %v1319_v45 }
 0x140   : > { %v1176_v46 = vpop.f32.mrf.mxu2 }
 0x141   : > { %v1177_v52 = vadd.f32 %v5773_v40, %v1176_v46 }
 0x142   : > { %v1098_v48 = vpop.f32.mrf.mxu0 }
 0x143   : > { %v1099_v49 = vadd.f32 %v5773_v40, %v1098_v48  ;;  %v1276_v56 = vmax.f32 %v1177_v52, 0.0 }
 0x145   : > { %v1245_v51 = vmax.f32 %v1099_v49, 0.0 }
 0x147   : > { %v1304_v54 = vpack.c.bf16 %v1245_v51, %v1244_v50 }
 0x148   : > { %v1178_v55 = vpop.f32.mrf.mxu2 }
 0x149   : > { %1428 = vmatmul.bf16.gmra.mxu1 %v1304_v54  ;;  %v1179_v58 = vadd.f32 %v5773_v40, %v1178_v55 }
 0x14a   : > { %v1101_v60 = vpop.f32.mrf.mxu0 }
 0x14b   : > { %v1277_v61 = vmax.f32 %v1179_v58, 0.0  ;;  %v1102_v0 = vadd.f32 %v5773_v40, %v1101_v60 }
 0x14d   : > { %1140 = vmatmul.bf16.gmra.mxu0 %v4885_v57  ;;  %1220 = vmatmul.bf16.gmra.mxu2 %v4901_v59  ;;  %v1320_v62 = vpack.c.bf16 %v1277_v61, %v1276_v56  ;;  %v1246_v3 = vmax.f32 %v1102_v0, 0.0  ;;  %v5827_v59 = vld [vmem:[%s7039_s4] ss:$0 sm:$0xff] }
 0x14f   : > { %1508 = vmatmul.bf16.gmra.mxu3 %v1320_v62  ;;  %v4931_v62 = vld [vmem:[#allocation7 + $0x18] sm:$0xff] }
 0x150   : > { %v1181_v63 = vpop.f32.mrf.mxu2  ;;  %2070 = vmatpush.bf16.msrb.mxu3 %v4931_v62 }
 0x151   : > { %v1182_v5 = vadd.f32 %v5773_v40, %v1181_v63 }
 0x152   : > { %v1103_v1 = vpop.f32.mrf.mxu0 }
 0x153   : > { %v1104_v2 = vadd.f32 %v5773_v40, %v1103_v1  ;;  %v1278_v9 = vmax.f32 %v1182_v5, 0.0 }
 0x155   : > { %v1247_v4 = vmax.f32 %v1104_v2, 0.0 }
 0x157   : > { %v1305_v7 = vpack.c.bf16 %v1247_v4, %v1246_v3 }
 0x158   : > { %v1183_v8 = vpop.f32.mrf.mxu2 }
 0x159   : > { %1433 = vmatmul.bf16.gmra.mxu1 %v1305_v7  ;;  %v1184_v11 = vadd.f32 %v5773_v40, %v1183_v8 }
 0x15a   : > { %v1106_v13 = vpop.f32.mrf.mxu0 }
 0x15b   : > { %v1279_v14 = vmax.f32 %v1184_v11, 0.0  ;;  %v1107_v17 = vadd.f32 %v5773_v40, %v1106_v13 }
 0x15d   : > { %1145 = vmatmul.bf16.gmra.mxu0 %v4886_v10  ;;  %1225 = vmatmul.bf16.gmra.mxu2 %v4902_v12  ;;  %v1321_v15 = vpack.c.bf16 %v1279_v14, %v1278_v9  ;;  %v1248_v20 = vmax.f32 %v1107_v17, 0.0 }
 0x15f   : > { %1513 = vmatmul.bf16.gmra.mxu3 %v1321_v15 }
 0x160   : > { %v1186_v16 = vpop.f32.mrf.mxu2 }
 0x161   : > { %v1187_v22 = vadd.f32 %v5773_v40, %v1186_v16 }
 0x162   : > { %v1108_v18 = vpop.f32.mrf.mxu0 }
 0x163   : > { %v1109_v19 = vadd.f32 %v5773_v40, %v1108_v18  ;;  %v1280_v25 = vmax.f32 %v1187_v22, 0.0  ;;  %v4951_v22 = vld [vmem:[#allocation9 + $0x78] sm:$0xff] }
 0x164   : > { %2411 = vmatpush.bf16.msrb.mxu0 %v4951_v22 }
 0x165   : > { %v1249_v21 = vmax.f32 %v1109_v19, 0.0 }
 0x167   : > { %v1306_v23 = vpack.c.bf16 %v1249_v21, %v1248_v20 }
 0x168   : > { %v1188_v24 = vpop.f32.mrf.mxu2 }
 0x169   : > { %1438 = vmatmul.bf16.gmra.mxu1 %v1306_v23  ;;  %v1189_v27 = vadd.f32 %v5773_v40, %v1188_v24 }
 0x16a   : > { %v1111_v30 = vpop.f32.mrf.mxu0 }
 0x16b   : > { %v1281_v31 = vmax.f32 %v1189_v27, 0.0  ;;  %v1112_v34 = vadd.f32 %v5773_v40, %v1111_v30 }
 0x16d   : > { %1150 = vmatmul.bf16.gmra.mxu0 %v4887_v26  ;;  %1230 = vmatmul.bf16.gmra.mxu2 %v4903_v28  ;;  %v1322_v32 = vpack.c.bf16 %v1281_v31, %v1280_v25  ;;  %v1250_v37 = vmax.f32 %v1112_v34, 0.0 }
 0x16f   : > { %1518 = vmatmul.bf16.gmra.mxu3 %v1322_v32 }
 0x170   : > { %v1191_v33 = vpop.f32.mrf.mxu2 }
 0x171   : > { %v1192_v39 = vadd.f32 %v5773_v40, %v1191_v33 }
 0x172   : > { %v1113_v35 = vpop.f32.mrf.mxu0 }
 0x173   : > { %v1114_v36 = vadd.f32 %v5773_v40, %v1113_v35  ;;  %v1282_v44 = vmax.f32 %v1192_v39, 0.0 }
 0x175   : > { %v1251_v38 = vmax.f32 %v1114_v36, 0.0 }
 0x177   : > { %v1307_v42 = vpack.c.bf16 %v1251_v38, %v1250_v37 }
 0x178   : > { %v1193_v43 = vpop.f32.mrf.mxu2 }
 0x179   : > { %1443 = vmatmul.bf16.gmra.mxu1 %v1307_v42  ;;  %v1194_v45 = vadd.f32 %v5773_v40, %v1193_v43 }
 0x17a   : > { %v1116_v46 = vpop.f32.mrf.mxu0 }
 0x17b   : > { %v1283_v47 = vmax.f32 %v1194_v45, 0.0  ;;  %v1117_v50 = vadd.f32 %v5773_v40, %v1116_v46 }
 0x17d   : > { %v1323_v48 = vpack.c.bf16 %v1283_v47, %v1282_v44  ;;  %v1252_v53 = vmax.f32 %v1117_v50, 0.0 }
 0x17f   : > { %1523 = vmatmul.bf16.gmra.mxu3 %v1323_v48 }
 0x180   : > { %v1196_v49 = vpop.f32.mrf.mxu2 }
 0x181   : > { %v1197_v55 = vadd.f32 %v5773_v40, %v1196_v49 }
 0x182   : > { %v1118_v51 = vpop.f32.mrf.mxu0 }
 0x183   : > { %v1119_v52 = vadd.f32 %v5773_v40, %v1118_v51  ;;  %v1284_v60 = vmax.f32 %v1197_v55, 0.0 }
 0x185   : > { %v1253_v54 = vmax.f32 %v1119_v52, 0.0  ;;  %v4930_v52 = vld [vmem:[#allocation7 + $0x10] sm:$0xff] }
 0x186   : > { %v1409_v56 = vpop.f32.mrf.mxu1  ;;  %2071 = vmatpush.bf16.msrb.mxu3 %v4930_v52 }
 0x187   : > { %v1308_v57 = vpack.c.bf16 %v1253_v54, %v1252_v53  ;;  %v1410_v1 = vadd.f32 %v5827_v59, %v1409_v56 }
 0x188   : > { %v1198_v58 = vpop.f32.mrf.mxu2 }
 0x189   : > { %1448 = vmatmul.bf16.gmra.mxu1 %v1308_v57  ;;  %v1199_v61 = vadd.f32 %v5773_v40, %v1198_v58  ;;  %v1569_v6 = vmax.f32 %v1410_v1, 0.0 }
 0x18a   : > { %v1121_v63 = vpop.f32.mrf.mxu0 }
 0x18b   : > { %v1285_v0 = vmax.f32 %v1199_v61, 0.0  ;;  %v1122_v7 = vadd.f32 %v5773_v40, %v1121_v63 }
 0x18d   : > { %v1324_v2 = vpack.c.bf16 %v1285_v0, %v1284_v60  ;;  %v1254_v13 = vmax.f32 %v1122_v7, 0.0 }
 0x18e   : > { %v1411_v3 = vpop.f32.mrf.mxu1 }
 0x18f   : > { %v1412_v4 = vadd.f32 %v5827_v59, %v1411_v3  ;;  %1528 = vmatmul.bf16.gmra.mxu3 %v1324_v2 }
 0x190   : > { %v1201_v5 = vpop.f32.mrf.mxu2 }
 0x191   : > { %v1570_v8 = vmax.f32 %v1412_v4, 0.0  ;;  %v1202_v15 = vadd.f32 %v5773_v40, %v1201_v5 }
 0x192   : > { %v1123_v9 = vpop.f32.mrf.mxu0  ;;  %v1489_v10 = vpop.f32.mrf.mxu3 }
 0x193   : > { %v1633_v11 = vpack.c.bf16 %v1570_v8, %v1569_v6  ;;  %v1124_v12 = vadd.f32 %v5773_v40, %v1123_v9  ;;  %v1490_v18 = vadd.f32 %v5827_v59, %v1489_v10  ;;  %v1286_v20 = vmax.f32 %v1202_v15, 0.0 }
 0x195   : > { %v1255_v14 = vmax.f32 %v1124_v12, 0.0  ;;  %1741 = vmatmul.bf16.vlgmr.msrb.gmra.mxu2 %v1633_v11  ;;  %v1601_v25 = vmax.f32 %v1490_v18, 0.0  ;;  %v4958_v12 = vld [vmem:[#allocation10 + $0x30] sm:$0xff] }
 0x196   : > { %v1414_v16 = vpop.f32.mrf.mxu1  ;;  %3030 = vmatpush.bf16.msra.mxu2 %v4958_v12 }
 0x197   : > { %v1309_v17 = vpack.c.bf16 %v1255_v14, %v1254_v13  ;;  %v1415_v28 = vadd.f32 %v5827_v59, %v1414_v16 }
 0x198   : > { %v1203_v19 = vpop.f32.mrf.mxu2 }
 0x199   : > { %1453 = vmatmul.bf16.gmra.mxu1 %v1309_v17  ;;  %v1204_v21 = vadd.f32 %v5773_v40, %v1203_v19  ;;  %v1571_v35 = vmax.f32 %v1415_v28, 0.0  ;;  %v4950_v19 = vld [vmem:[#allocation9 + $0x70] sm:$0xff] }
 0x19a   : > { %v1126_v23 = vpop.f32.mrf.mxu0  ;;  %v1491_v24 = vpop.f32.mrf.mxu3  ;;  %2412 = vmatpush.bf16.msrb.mxu0 %v4950_v19 }
 0x19b   : > { %v1287_v26 = vmax.f32 %v1204_v21, 0.0  ;;  %v1492_v27 = vadd.f32 %v5827_v59, %v1491_v24  ;;  %v1127_v36 = vadd.f32 %v5773_v40, %v1126_v23 }
 0x19d   : > { %v1602_v29 = vmax.f32 %v1492_v27, 0.0  ;;  %v1325_v30 = vpack.c.bf16 %v1287_v26, %v1286_v20  ;;  %v1256_v43 = vmax.f32 %v1127_v36, 0.0 }
 0x19e   : > { %v1416_v31 = vpop.f32.mrf.mxu1 }
 0x19f   : > { %v1417_v32 = vadd.f32 %v5827_v59, %v1416_v31  ;;  %1533 = vmatmul.bf16.gmra.mxu3 %v1325_v30  ;;  %v5840_v33 = vpack.c.bf16 %v1602_v29, %v1601_v25 }
 0x1a0   : > { %v1206_v34 = vpop.f32.mrf.mxu2 }
 0x1a1   : > { %v1572_v37 = vmax.f32 %v1417_v32, 0.0  ;;  %v1207_v45 = vadd.f32 %v5773_v40, %v1206_v34 }
 0x1a2   : > { %v1128_v38 = vpop.f32.mrf.mxu0  ;;  %v1494_v39 = vpop.f32.mrf.mxu3 }
 0x1a3   : > { %v1129_v41 = vadd.f32 %v5773_v40, %v1128_v38  ;;  %v1634_v42 = vpack.c.bf16 %v1572_v37, %v1571_v35  ;;  %v1495_v48 = vadd.f32 %v5827_v59, %v1494_v39  ;;  %v1288_v50 = vmax.f32 %v1207_v45, 0.0 }
 0x1a5   : > { %v1257_v44 = vmax.f32 %v1129_v41, 0.0  ;;  %1746 = vmatmul.bf16.gmra.mxu2 %v1634_v42  ;;  %v1603_v55 = vmax.f32 %v1495_v48, 0.0 }
 0x1a6   : > { %v1419_v46 = vpop.f32.mrf.mxu1 }
 0x1a7   : > { %v1310_v47 = vpack.c.bf16 %v1257_v44, %v1256_v43  ;;  %v1420_v58 = vadd.f32 %v5827_v59, %v1419_v46 }
 0x1a8   : > { %v1208_v49 = vpop.f32.mrf.mxu2 }
 0x1a9   : > { %1458 = vmatmul.bf16.gmra.mxu1 %v1310_v47  ;;  %v1209_v51 = vadd.f32 %v5773_v40, %v1208_v49  ;;  %v1573_v2 = vmax.f32 %v1420_v58, 0.0 }
 0x1aa   : > { %v1131_v53 = vpop.f32.mrf.mxu0  ;;  %v1496_v54 = vpop.f32.mrf.mxu3 }
 0x1ab   : > { %v1289_v56 = vmax.f32 %v1209_v51, 0.0  ;;  %v1497_v57 = vadd.f32 %v5827_v59, %v1496_v54  ;;  %v1132_v3 = vadd.f32 %v5773_v40, %v1131_v53 }
 0x1ad   : > { %v1604_v60 = vmax.f32 %v1497_v57, 0.0  ;;  %v1326_v61 = vpack.c.bf16 %v1289_v56, %v1288_v50  ;;  %v1258_v9 = vmax.f32 %v1132_v3, 0.0  ;;  %v4929_v50 = vld [vmem:[#allocation7 + $0x8] sm:$0xff] }
 0x1ae   : > { %v1421_v62 = vpop.f32.mrf.mxu1  ;;  %2072 = vmatpush.bf16.msrb.mxu3 %v4929_v50 }
 0x1af   : > { %v1422_v63 = vadd.f32 %v5827_v59, %v1421_v62  ;;  %1538 = vmatmul.bf16.gmra.mxu3 %v1326_v61  ;;  %v5850_v0 = vpack.c.bf16 %v1604_v60, %v1603_v55 }
 0x1b0   : > { %v1211_v1 = vpop.f32.mrf.mxu2 }
 0x1b1   : > { %v1574_v4 = vmax.f32 %v1422_v63, 0.0  ;;  %v1212_v11 = vadd.f32 %v5773_v40, %v1211_v1 }
 0x1b2   : > { %v1133_v5 = vpop.f32.mrf.mxu0  ;;  %v1499_v6 = vpop.f32.mrf.mxu3 }
 0x1b3   : > { %v1134_v7 = vadd.f32 %v5773_v40, %v1133_v5  ;;  %v1635_v8 = vpack.c.bf16 %v1574_v4, %v1573_v2  ;;  %v1500_v15 = vadd.f32 %v5827_v59, %v1499_v6  ;;  %v1290_v17 = vmax.f32 %v1212_v11, 0.0 }
 0x1b5   : > { %v1259_v10 = vmax.f32 %v1134_v7, 0.0  ;;  %1751 = vmatmul.bf16.gmra.mxu2 %v1635_v8  ;;  %v1605_v22 = vmax.f32 %v1500_v15, 0.0 }
 0x1b6   : > { %v1424_v13 = vpop.f32.mrf.mxu1 }
 0x1b7   : > { %v1311_v14 = vpack.c.bf16 %v1259_v10, %v1258_v9  ;;  %v1425_v25 = vadd.f32 %v5827_v59, %v1424_v13 }
 0x1b8   : > { %v1213_v16 = vpop.f32.mrf.mxu2 }
 0x1b9   : > { %1463 = vmatmul.bf16.gmra.mxu1 %v1311_v14  ;;  %v1214_v18 = vadd.f32 %v5773_v40, %v1213_v16  ;;  %v1575_v32 = vmax.f32 %v1425_v25, 0.0  ;;  %v4949_v16 = vld [vmem:[#allocation9 + $0x68] sm:$0xff] }
 0x1ba   : > { %v1136_v20 = vpop.f32.mrf.mxu0  ;;  %v1501_v21 = vpop.f32.mrf.mxu3  ;;  %2413 = vmatpush.bf16.msrb.mxu0 %v4949_v16 }
 0x1bb   : > { %v1291_v23 = vmax.f32 %v1214_v18, 0.0  ;;  %v1502_v24 = vadd.f32 %v5827_v59, %v1501_v21  ;;  %v1137_v34 = vadd.f32 %v5773_v40, %v1136_v20 }
 0x1bd   : > { %v1606_v26 = vmax.f32 %v1502_v24, 0.0  ;;  %v1327_v27 = vpack.c.bf16 %v1291_v23, %v1290_v17  ;;  %v1260_v41 = vmax.f32 %v1137_v34, 0.0 }
 0x1be   : > { %v1426_v28 = vpop.f32.mrf.mxu1 }
 0x1bf   : > { %v1427_v29 = vadd.f32 %v5827_v59, %v1426_v28  ;;  %1543 = vmatmul.bf16.gmra.mxu3 %v1327_v27  ;;  %v5860_v30 = vpack.c.bf16 %v1606_v26, %v1605_v22 }
 0x1c0   : > { %v1216_v31 = vpop.f32.mrf.mxu2 }
 0x1c1   : > { %v1576_v35 = vmax.f32 %v1427_v29, 0.0  ;;  %v1217_v43 = vadd.f32 %v5773_v40, %v1216_v31 }
 0x1c2   : > { %v1138_v36 = vpop.f32.mrf.mxu0  ;;  %v1504_v37 = vpop.f32.mrf.mxu3 }
 0x1c3   : > { %v1139_v38 = vadd.f32 %v5773_v40, %v1138_v36  ;;  %v1636_v39 = vpack.c.bf16 %v1576_v35, %v1575_v32  ;;  %v1505_v46 = vadd.f32 %v5827_v59, %v1504_v37  ;;  %v1292_v48 = vmax.f32 %v1217_v43, 0.0  ;;  %v4928_v43 = vld [vmem:[#allocation7] sm:$0xff] }
 0x1c4   : > { %2073 = vmatpush.bf16.msrb.mxu3 %v4928_v43 }
 0x1c5   : > { %v1261_v42 = vmax.f32 %v1139_v38, 0.0  ;;  %1756 = vmatmul.bf16.gmra.mxu2 %v1636_v39  ;;  %v1607_v53 = vmax.f32 %v1505_v46, 0.0 }
 0x1c6   : > { %v1429_v44 = vpop.f32.mrf.mxu1 }
 0x1c7   : > { %v1312_v45 = vpack.c.bf16 %v1261_v42, %v1260_v41  ;;  %v1430_v56 = vadd.f32 %v5827_v59, %v1429_v44  ;;  %v4943_v44 = vld [vmem:[#allocation9 + $0x38] sm:$0xff] }
 0x1c8   : > { %v1218_v47 = vpop.f32.mrf.mxu2  ;;  %2628 = vmatpush.bf16.msrb.mxu1 %v4943_v44 }
 0x1c9   : > { %1468 = vmatmul.bf16.gmra.mxu1 %v1312_v45  ;;  %v1219_v49 = vadd.f32 %v5773_v40, %v1218_v47  ;;  %v1577_v1 = vmax.f32 %v1430_v56, 0.0 }
 0x1ca   : > { %v1141_v51 = vpop.f32.mrf.mxu0  ;;  %v1506_v52 = vpop.f32.mrf.mxu3 }
 0x1cb   : > { %v1293_v54 = vmax.f32 %v1219_v49, 0.0  ;;  %v1507_v55 = vadd.f32 %v5827_v59, %v1506_v52  ;;  %v1142_v2 = vadd.f32 %v5773_v40, %v1141_v51 }
 0x1cd   : > { %v1608_v57 = vmax.f32 %v1507_v55, 0.0  ;;  %v1328_v58 = vpack.c.bf16 %v1293_v54, %v1292_v48  ;;  %v1262_v8 = vmax.f32 %v1142_v2, 0.0  ;;  %v4957_v2 = vld [vmem:[#allocation10 + $0x28] sm:$0xff] }
 0x1ce   : > { %v1431_v60 = vpop.f32.mrf.mxu1  ;;  %3031 = vmatpush.bf16.msra.mxu2 %v4957_v2 }
 0x1cf   : > { %v1432_v61 = vadd.f32 %v5827_v59, %v1431_v60  ;;  %1548 = vmatmul.bf16.gmra.mxu3 %v1328_v58  ;;  %v5870_v62 = vpack.c.bf16 %v1608_v57, %v1607_v53 }
 0x1d0   : > { %v1221_v63 = vpop.f32.mrf.mxu2 }
 0x1d1   : > { %v1578_v3 = vmax.f32 %v1432_v61, 0.0  ;;  %v1222_v10 = vadd.f32 %v5773_v40, %v1221_v63 }
 0x1d2   : > { %v1143_v4 = vpop.f32.mrf.mxu0  ;;  %v5873_v5 = vpop.f32.mrf.mxu3 }
 0x1d3   : > { %v1144_v6 = vadd.f32 %v5773_v40, %v1143_v4  ;;  %v1637_v7 = vpack.c.bf16 %v1578_v3, %v1577_v1  ;;  %v1294_v14 = vmax.f32 %v1222_v10, 0.0 }
 0x1d5   : > { %v1263_v9 = vmax.f32 %v1144_v6, 0.0  ;;  %1761 = vmatmul.bf16.gmra.mxu2 %v1637_v7 }
 0x1d6   : > { %v1434_v11 = vpop.f32.mrf.mxu1 }
 0x1d7   : > { %v1313_v12 = vpack.c.bf16 %v1263_v9, %v1262_v8  ;;  %v1435_v20 = vadd.f32 %v5827_v59, %v1434_v11  ;;  %v4948_v11 = vld [vmem:[#allocation9 + $0x60] sm:$0xff] }
 0x1d8   : > { %v1223_v13 = vpop.f32.mrf.mxu2  ;;  %2414 = vmatpush.bf16.msrb.mxu0 %v4948_v11 }
 0x1d9   : > { %1473 = vmatmul.bf16.gmra.mxu1 %v1313_v12  ;;  %v1224_v15 = vadd.f32 %v5773_v40, %v1223_v13  ;;  %v1579_v25 = vmax.f32 %v1435_v20, 0.0 }
 0x1da   : > { %v1146_v17 = vpop.f32.mrf.mxu0  ;;  %v5878_v18 = vpop.f32.mrf.mxu3 }
 0x1db   : > { %v1295_v19 = vmax.f32 %v1224_v15, 0.0  ;;  %v1147_v26 = vadd.f32 %v5773_v40, %v1146_v17 }
 0x1dd   : > { %v1329_v21 = vpack.c.bf16 %v1295_v19, %v1294_v14  ;;  %v1264_v34 = vmax.f32 %v1147_v26, 0.0 }
 0x1de   : > { %v1436_v22 = vpop.f32.mrf.mxu1 }
 0x1df   : > { %v1437_v23 = vadd.f32 %v5827_v59, %v1436_v22  ;;  %1553 = vmatmul.bf16.gmra.mxu3 %v1329_v21  ;;  %v4967_v22 = vld [vmem:[#allocation12 + $0x38] sm:$0xff] }
 0x1e0   : > { %v1226_v24 = vpop.f32.mrf.mxu2  ;;  %3362 = vmatpush.bf16.msra.mxu3 %v4967_v22 }
 0x1e1   : > { %v1580_v27 = vmax.f32 %v1437_v23, 0.0  ;;  %v1227_v36 = vadd.f32 %v5773_v40, %v1226_v24 }
 0x1e2   : > { %v1148_v28 = vpop.f32.mrf.mxu0  ;;  %v5883_v29 = vpop.f32.mrf.mxu3 }
 0x1e3   : > { %v1149_v31 = vadd.f32 %v5773_v40, %v1148_v28  ;;  %v1638_v32 = vpack.c.bf16 %v1580_v27, %v1579_v25  ;;  %v1296_v41 = vmax.f32 %v1227_v36, 0.0 }
 0x1e5   : > { %v1265_v35 = vmax.f32 %v1149_v31, 0.0  ;;  %1766 = vmatmul.bf16.gmra.mxu2 %v1638_v32 }
 0x1e6   : > { %v1439_v37 = vpop.f32.mrf.mxu1 }
 0x1e7   : > { %v1314_v38 = vpack.c.bf16 %v1265_v35, %v1264_v34  ;;  %v1440_v48 = vadd.f32 %v5827_v59, %v1439_v37  ;;  %v5915_v37 = vld [vmem:[%s7041_s6] ss:$0 sm:$0xff] }
 0x1e8   : > { %v1228_v39 = vpop.f32.mrf.mxu2 }
 0x1e9   : > { %1478 = vmatmul.bf16.gmra.mxu1 %v1314_v38  ;;  %v1229_v42 = vadd.f32 %v5773_v40, %v1228_v39  ;;  %v1581_v53 = vmax.f32 %v1440_v48, 0.0  ;;  %v4947_v38 = vld [vmem:[#allocation9 + $0x58] sm:$0xff] }
 0x1ea   : > { %v1151_v45 = vpop.f32.mrf.mxu0  ;;  %v5888_v46 = vpop.f32.mrf.mxu3  ;;  %2415 = vmatpush.bf16.msrb.mxu0 %v4947_v38 }
 0x1eb   : > { %v1297_v47 = vmax.f32 %v1229_v42, 0.0  ;;  %v1152_v54 = vadd.f32 %v5773_v40, %v1151_v45 }
 0x1ed   : > { %v1330_v49 = vpack.c.bf16 %v1297_v47, %v1296_v41  ;;  %v1266_v61 = vmax.f32 %v1152_v54, 0.0 }
 0x1ee   : > { %v1441_v50 = vpop.f32.mrf.mxu1 }
 0x1ef   : > { %v1442_v51 = vadd.f32 %v5827_v59, %v1441_v50  ;;  %1558 = vmatmul.bf16.gmra.mxu3 %v1330_v49 }
 0x1f0   : > { %v1231_v52 = vpop.f32.mrf.mxu2 }
 0x1f1   : > { %v1582_v55 = vmax.f32 %v1442_v51, 0.0  ;;  %v1232_v1 = vadd.f32 %v5773_v40, %v1231_v52 }
 0x1f2   : > { %v1153_v56 = vpop.f32.mrf.mxu0  ;;  %v5893_v57 = vpop.f32.mrf.mxu3 }
 0x1f3   : > { %v1154_v58 = vadd.f32 %v5773_v40, %v1153_v56  ;;  %v1639_v60 = vpack.c.bf16 %v1582_v55, %v1581_v53  ;;  %v1298_v7 = vmax.f32 %v1232_v1, 0.0  ;;  %v4941_v56 = vld [vmem:[#allocation9 + $0x28] sm:$0xff] }
 0x1f5   : > { %v1267_v63 = vmax.f32 %v1154_v58, 0.0  ;;  %1771 = vmatmul.bf16.gmra.mxu2 %v1639_v60 }
 0x1f6   : > { %v1444_v3 = vpop.f32.mrf.mxu1 }
 0x1f7   : > { %v1315_v4 = vpack.c.bf16 %v1267_v63, %v1266_v61  ;;  %v1445_v12 = vadd.f32 %v5827_v59, %v1444_v3 }
 0x1f8   : > { %v1233_v6 = vpop.f32.mrf.mxu2 }
 0x1f9   : > { %1483 = vmatmul.bf16.gmra.mxu1 %v1315_v4  ;;  %v1234_v8 = vadd.f32 %v5773_v40, %v1233_v6  ;;  %v1583_v16 = vmax.f32 %v1445_v12, 0.0  ;;  %v4942_v40 = vld [vmem:[#allocation9 + $0x30] sm:$0xff] }
 0x1fa   : > { %v5898_v9 = vpop.f32.mrf.mxu3  ;;  %2629 = vmatpush.bf16.msrb.mxu1 %v4942_v40 }
 0x1fb   : > { %v1299_v10 = vmax.f32 %v1234_v8, 0.0 }
 0x1fd   : > { %v1331_v13 = vpack.c.bf16 %v1299_v10, %v1298_v7 }
 0x1fe   : > { %v1446_v14 = vpop.f32.mrf.mxu1  ;;  %2630 = vmatpush.bf16.msrb.mxu1 %v4941_v56 }
 0x1ff   : > { %v1447_v15 = vadd.f32 %v5827_v59, %v1446_v14  ;;  %1563 = vmatmul.bf16.gmra.mxu3 %v1331_v13  ;;  %v4956_v13 = vld [vmem:[#allocation10 + $0x20] sm:$0xff] }
 0x200   : > { %3032 = vmatpush.bf16.msra.mxu2 %v4956_v13 }
 0x201   : > { %v1584_v17 = vmax.f32 %v1447_v15, 0.0 }
 0x202   : > { %v5902_v19 = vpop.f32.mrf.mxu3 }
 0x203   : > { %v1640_v20 = vpack.c.bf16 %v1584_v17, %v1583_v16  ;;  %v4946_v16 = vld [vmem:[#allocation9 + $0x50] sm:$0xff] }
 0x204   : > { %2416 = vmatpush.bf16.msrb.mxu0 %v4946_v16 }
 0x205   : > { %1776 = vmatmul.bf16.gmra.mxu2 %v1640_v20 }
 0x206   : > { %v1449_v21 = vpop.f32.mrf.mxu1 }
 0x207   : > { %v1450_v24 = vadd.f32 %v5827_v59, %v1449_v21 }
 0x209   : > { %v1585_v27 = vmax.f32 %v1450_v24, 0.0 }
 0x20a   : > { %v5904_v23 = vpop.f32.mrf.mxu3 }
 0x20e   : > { %v1451_v25 = vpop.f32.mrf.mxu1 }
 0x20f   : > { %v1452_v26 = vadd.f32 %v5827_v59, %v1451_v25 }
 0x211   : > { %v1586_v28 = vmax.f32 %v1452_v26, 0.0 }
 0x212   : > { %v5908_v31 = vpop.f32.mrf.mxu3 }
 0x213   : > { %v1641_v32 = vpack.c.bf16 %v1586_v28, %v1585_v27 }
 0x215   : > { %1781 = vmatmul.bf16.gmra.mxu2 %v1641_v32 }
 0x216   : > { %v1454_v34 = vpop.f32.mrf.mxu1 }
 0x217   : > { %v1455_v39 = vadd.f32 %v5827_v59, %v1454_v34 }
 0x218   : > { %v1742_v35 = vpop.f32.mrf.mxu2 }
 0x219   : > { %v1743_v42 = vadd.f32 %v5915_v37, %v1742_v35  ;;  %v1587_v45 = vmax.f32 %v1455_v39, 0.0 }
 0x21a   : > { %v5910_v36 = vpop.f32.mrf.mxu3 }
 0x21b   : > { %v1902_v50 = vmax.f32 %v1743_v42, 0.0  ;;  %v4940_v42 = vld [vmem:[#allocation9 + $0x20] sm:$0xff] }
 0x21c   : > { %2631 = vmatpush.bf16.msrb.mxu1 %v4940_v42 }
 0x21e   : > { %v1456_v41 = vpop.f32.mrf.mxu1 }
 0x21f   : > { %v1457_v43 = vadd.f32 %v5827_v59, %v1456_v41 }
 0x220   : > { %v1744_v44 = vpop.f32.mrf.mxu2 }
 0x221   : > { %v1588_v47 = vmax.f32 %v1457_v43, 0.0  ;;  %v1745_v48 = vadd.f32 %v5915_v37, %v1744_v44  ;;  %v4966_v43 = vld [vmem:[#allocation12 + $0x30] sm:$0xff] }
 0x222   : > { %v5921_v49 = vpop.f32.mrf.mxu3  ;;  %3363 = vmatpush.bf16.msra.mxu3 %v4966_v43 }
 0x223   : > { %v1903_v51 = vmax.f32 %v1745_v48, 0.0  ;;  %v1642_v52 = vpack.c.bf16 %v1588_v47, %v1587_v45 }
 0x225   : > { %v1966_v53 = vpack.c.bf16 %v1903_v51, %v1902_v50  ;;  %1786 = vmatmul.bf16.gmra.mxu2 %v1642_v52 }
 0x226   : > { %v1459_v54 = vpop.f32.mrf.mxu1 }
 0x227   : > { %2074 = vmatmul.bf16.vlgmr.msrb.gmra.mxu3 %v1966_v53  ;;  %v1460_v60 = vadd.f32 %v5827_v59, %v1459_v54 }
 0x228   : > { %v1747_v55 = vpop.f32.mrf.mxu2 }
 0x229   : > { %v1748_v63 = vadd.f32 %v5915_v37, %v1747_v55  ;;  %v1589_v3 = vmax.f32 %v1460_v60, 0.0 }
 0x22a   : > { %v5923_v58 = vpop.f32.mrf.mxu3 }
 0x22b   : > { %v1904_v7 = vmax.f32 %v1748_v63, 0.0 }
 0x22e   : > { %v1461_v61 = vpop.f32.mrf.mxu1 }
 0x22f   : > { %v1462_v1 = vadd.f32 %v5827_v59, %v1461_v61 }
 0x230   : > { %v1749_v2 = vpop.f32.mrf.mxu2 }
 0x231   : > { %v1590_v4 = vmax.f32 %v1462_v1, 0.0  ;;  %v1750_v6 = vadd.f32 %v5915_v37, %v1749_v2  ;;  %v4945_v2 = vld [vmem:[#allocation9 + $0x48] sm:$0xff] }
 0x232   : > { %v5929_v11 = vpop.f32.mrf.mxu3  ;;  %2417 = vmatpush.bf16.msrb.mxu0 %v4945_v2 }
 0x233   : > { %v1905_v8 = vmax.f32 %v1750_v6, 0.0  ;;  %v1643_v10 = vpack.c.bf16 %v1590_v4, %v1589_v3 }
 0x235   : > { %1791 = vmatmul.bf16.gmra.mxu2 %v1643_v10  ;;  %v1967_v12 = vpack.c.bf16 %v1905_v8, %v1904_v7 }
 0x236   : > { %v1464_v14 = vpop.f32.mrf.mxu1 }
 0x237   : > { %2079 = vmatmul.bf16.gmra.mxu3 %v1967_v12  ;;  %v1465_v17 = vadd.f32 %v5827_v59, %v1464_v14 }
 0x238   : > { %v1752_v15 = vpop.f32.mrf.mxu2 }
 0x239   : > { %v1753_v40 = vadd.f32 %v5915_v37, %v1752_v15  ;;  %v1591_v25 = vmax.f32 %v1465_v17, 0.0 }
 0x23a   : > { %v5932_v21 = vpop.f32.mrf.mxu3 }
 0x23b   : > { %v1906_v28 = vmax.f32 %v1753_v40, 0.0 }
 0x23e   : > { %v1466_v20 = vpop.f32.mrf.mxu1 }
 0x23f   : > { %v1467_v22 = vadd.f32 %v5827_v59, %v1466_v20 }
 0x240   : > { %v1754_v24 = vpop.f32.mrf.mxu2 }
 0x241   : > { %v1592_v26 = vmax.f32 %v1467_v22, 0.0  ;;  %v1755_v27 = vadd.f32 %v5915_v37, %v1754_v24  ;;  %v4939_v24 = vld [vmem:[#allocation9 + $0x18] sm:$0xff] }
 0x242   : > { %v5937_v41 = vpop.f32.mrf.mxu3  ;;  %2632 = vmatpush.bf16.msrb.mxu1 %v4939_v24  ;;  %v4937_v24 = vld [vmem:[#allocation9 + $0x8] sm:$0xff] }
 0x243   : > { %v1907_v32 = vmax.f32 %v1755_v27, 0.0  ;;  %v1644_v34 = vpack.c.bf16 %v1592_v26, %v1591_v25 }
 0x245   : > { %1796 = vmatmul.bf16.gmra.mxu2 %v1644_v34  ;;  %v1968_v35 = vpack.c.bf16 %v1907_v32, %v1906_v28 }
 0x246   : > { %v1469_v38 = vpop.f32.mrf.mxu1 }
 0x247   : > { %2084 = vmatmul.bf16.gmra.mxu3 %v1968_v35  ;;  %v1470_v44 = vadd.f32 %v5827_v59, %v1469_v38 }
 0x248   : > { %v1757_v39 = vpop.f32.mrf.mxu2 }
 0x249   : > { %v1758_v47 = vadd.f32 %v5915_v37, %v1757_v39  ;;  %v1593_v51 = vmax.f32 %v1470_v44, 0.0 }
 0x24a   : > { %v5943_v54 = vpop.f32.mrf.mxu3 }
 0x24b   : > { %v1908_v55 = vmax.f32 %v1758_v47, 0.0 }
 0x24e   : > { %v1471_v45 = vpop.f32.mrf.mxu1 }
 0x24f   : > { %v1472_v48 = vadd.f32 %v5827_v59, %v1471_v45 }
 0x250   : > { %v1759_v50 = vpop.f32.mrf.mxu2 }
 0x251   : > { %v1594_v52 = vmax.f32 %v1472_v48, 0.0  ;;  %v1760_v53 = vadd.f32 %v5915_v37, %v1759_v50  ;;  %v4955_v48 = vld [vmem:[#allocation10 + $0x18] sm:$0xff] }
 0x252   : > { %v5945_v3 = vpop.f32.mrf.mxu3  ;;  %3033 = vmatpush.bf16.msra.mxu2 %v4955_v48 }
 0x253   : > { %v1909_v56 = vmax.f32 %v1760_v53, 0.0  ;;  %v1645_v60 = vpack.c.bf16 %v1594_v52, %v1593_v51  ;;  %v4944_v53 = vld [vmem:[#allocation9 + $0x40] sm:$0xff] }
 0x254   : > { %2418 = vmatpush.bf16.msrb.mxu0 %v4944_v53 }
 0x255   : > { %1801 = vmatmul.bf16.gmra.mxu2 %v1645_v60  ;;  %v1969_v61 = vpack.c.bf16 %v1909_v56, %v1908_v55 }
 0x256   : > { %v1474_v63 = vpop.f32.mrf.mxu1 }
 0x257   : > { %2089 = vmatmul.bf16.gmra.mxu3 %v1969_v61  ;;  %v1475_v4 = vadd.f32 %v5827_v59, %v1474_v63 }
 0x258   : > { %v1762_v1 = vpop.f32.mrf.mxu2 }
 0x259   : > { %v1763_v7 = vadd.f32 %v5915_v37, %v1762_v1  ;;  %v1595_v12 = vmax.f32 %v1475_v4, 0.0  ;;  %v5121_v1 = vld [vmem:[%s5706_s2] sm:$0xff] }
 0x25a   : > { %v5951_v40 = vpop.f32.mrf.mxu3  ;;  %2419 = vmatmul.bf16.vlgmr.msrb.gmra.mxu0 %v5121_v1 }
 0x25b   : > { %v1910_v15 = vmax.f32 %v1763_v7, 0.0 }
 0x25e   : > { %v1476_v6 = vpop.f32.mrf.mxu1 }
 0x25f   : > { %v1477_v8 = vadd.f32 %v5827_v59, %v1476_v6 }
 0x260   : > { %v1764_v10 = vpop.f32.mrf.mxu2 }
 0x261   : > { %v1596_v13 = vmax.f32 %v1477_v8, 0.0  ;;  %v1765_v14 = vadd.f32 %v5915_v37, %v1764_v10 }
 0x262   : > { %v5956_v34 = vpop.f32.mrf.mxu3 }
 0x263   : > { %v1911_v16 = vmax.f32 %v1765_v14, 0.0  ;;  %v1646_v17 = vpack.c.bf16 %v1596_v13, %v1595_v12  ;;  %v4938_v14 = vld [vmem:[#allocation9 + $0x10] sm:$0xff] }
 0x264   : > { %2633 = vmatpush.bf16.msrb.mxu1 %v4938_v14  ;;  %v4954_v14 = vld [vmem:[#allocation10 + $0x10] sm:$0xff] }
 0x265   : > { %1806 = vmatmul.bf16.gmra.mxu2 %v1646_v17  ;;  %v1970_v20 = vpack.c.bf16 %v1911_v16, %v1910_v15  ;;  %v4965_v15 = vld [vmem:[#allocation12 + $0x28] sm:$0xff] }
 0x266   : > { %v1479_v22 = vpop.f32.mrf.mxu1  ;;  %3364 = vmatpush.bf16.msra.mxu3 %v4965_v15  ;;  %3034 = vmatpush.bf16.msra.mxu2 %v4954_v14 }
 0x267   : > { %2094 = vmatmul.bf16.gmra.mxu3 %v1970_v20  ;;  %v1480_v26 = vadd.f32 %v5827_v59, %v1479_v22 }
 0x268   : > { %v1767_v25 = vpop.f32.mrf.mxu2  ;;  %2634 = vmatpush.bf16.msrb.mxu1 %v4937_v24 }
 0x269   : > { %v1768_v28 = vadd.f32 %v5915_v37, %v1767_v25  ;;  %v1597_v38 = vmax.f32 %v1480_v26, 0.0  ;;  %v5122_v25 = vld [vmem:[%s5706_s2 + $0x8] sm:$0xff] }
 0x26a   : > { %v5959_v52 = vpop.f32.mrf.mxu3  ;;  %2424 = vmatmul.bf16.gmra.mxu0 %v5122_v25  ;;  %v5125_v25 = vld [vmem:[%s5706_s2 + $0x20] sm:$0xff] }
 0x26b   : > { %v1912_v43 = vmax.f32 %v1768_v28, 0.0 }
 0x26e   : > { %v1481_v27 = vpop.f32.mrf.mxu1 }
 0x26f   : > { %v1482_v32 = vadd.f32 %v5827_v59, %v1481_v27 }
 0x270   : > { %v1769_v35 = vpop.f32.mrf.mxu2 }
 0x271   : > { %v1598_v39 = vmax.f32 %v1482_v32, 0.0  ;;  %v1770_v42 = vadd.f32 %v5915_v37, %v1769_v35  ;;  %v4936_v32 = vld [vmem:[#allocation9] sm:$0xff] }
 0x272   : > { %v5966_v12 = vpop.f32.mrf.mxu3  ;;  %2635 = vmatpush.bf16.msrb.mxu1 %v4936_v32 }
 0x273   : > { %v1913_v44 = vmax.f32 %v1770_v42, 0.0  ;;  %v1647_v45 = vpack.c.bf16 %v1598_v39, %v1597_v38  ;;  %v4975_v42 = vld [vmem:[#allocation13 + $0x38] sm:$0xff] }
 0x274   : > { %3695 = vmatpush.bf16.msra.mxu0 %v4975_v42 }
 0x275   : > { %1811 = vmatmul.bf16.gmra.mxu2 %v1647_v45  ;;  %v1971_v47 = vpack.c.bf16 %v1913_v44, %v1912_v43  ;;  %v5123_v45 = vld [vmem:[%s5706_s2 + $0x10] sm:$0xff] }
 0x276   : > { %v1484_v50 = vpop.f32.mrf.mxu1 }
 0x277   : > { %2099 = vmatmul.bf16.gmra.mxu3 %v1971_v47  ;;  %v1485_v55 = vadd.f32 %v5827_v59, %v1484_v50 }
 0x278   : > { %v1772_v51 = vpop.f32.mrf.mxu2 }
 0x279   : > { %v1773_v60 = vadd.f32 %v5915_v37, %v1772_v51  ;;  %v1599_v2 = vmax.f32 %v1485_v55, 0.0 }
 0x27a   : > { %v5968_v17 = vpop.f32.mrf.mxu3  ;;  %2429 = vmatmul.bf16.gmra.mxu0 %v5123_v45  ;;  %v4964_v45 = vld [vmem:[#allocation12 + $0x20] sm:$0xff] }
 0x27b   : > { %v1914_v7 = vmax.f32 %v1773_v60, 0.0  ;;  %3365 = vmatpush.bf16.msra.mxu3 %v4964_v45 }
 0x27e   : > { %v1486_v56 = vpop.f32.mrf.mxu1 }
 0x27f   : > { %v1487_v61 = vadd.f32 %v5827_v59, %v1486_v56  ;;  %v5985_v56 = vld [vmem:[%s7043_s8] ss:$0 sm:$0xff] }
 0x280   : > { %v1774_v63 = vpop.f32.mrf.mxu2 }
 0x281   : > { %v1600_v4 = vmax.f32 %v1487_v61, 0.0  ;;  %v1775_v6 = vadd.f32 %v5915_v37, %v1774_v63  ;;  %v5124_v63 = vld [vmem:[%s5706_s2 + $0x18] sm:$0xff] }
 0x282   : > { %v5974_v38 = vpop.f32.mrf.mxu3 }
 0x283   : > { %v1915_v8 = vmax.f32 %v1775_v6, 0.0  ;;  %v1648_v10 = vpack.c.bf16 %v1600_v4, %v1599_v2 }
 0x285   : > { %1816 = vmatmul.bf16.gmra.mxu2 %v1648_v10  ;;  %v1972_v13 = vpack.c.bf16 %v1915_v8, %v1914_v7 }
 0x287   : > { %2104 = vmatmul.bf16.gmra.mxu3 %v1972_v13 }
 0x288   : > { %v1777_v16 = vpop.f32.mrf.mxu2 }
 0x289   : > { %v1778_v20 = vadd.f32 %v5915_v37, %v1777_v16 }
 0x28a   : > { %v5979_v48 = vpop.f32.mrf.mxu3  ;;  %2434 = vmatmul.bf16.gmra.mxu0 %v5124_v63 }
 0x28b   : > { %v1916_v27 = vmax.f32 %v1778_v20, 0.0 }
 0x290   : > { %v1779_v22 = vpop.f32.mrf.mxu2 }
 0x291   : > { %v1780_v26 = vadd.f32 %v5915_v37, %v1779_v22 }
 0x293   : > { %v1917_v28 = vmax.f32 %v1780_v26, 0.0 }
 0x295   : > { %1821 = vmatmul.bf16.gmra.mxu2 %v5840_v33  ;;  %v1973_v35 = vpack.c.bf16 %v1917_v28, %v1916_v27 }
 0x297   : > { %2109 = vmatmul.bf16.gmra.mxu3 %v1973_v35 }
 0x298   : > { %v1782_v39 = vpop.f32.mrf.mxu2 }
 0x299   : > { %v1783_v43 = vadd.f32 %v5915_v37, %v1782_v39 }
 0x29a   : > { %2439 = vmatmul.bf16.gmra.mxu0 %v5125_v25 }
 0x29b   : > { %v1918_v50 = vmax.f32 %v1783_v43, 0.0 }
 0x2a0   : > { %v1784_v44 = vpop.f32.mrf.mxu2 }
 0x2a1   : > { %v1785_v47 = vadd.f32 %v5915_v37, %v1784_v44 }
 0x2a3   : > { %v1919_v33 = vmax.f32 %v1785_v47, 0.0 }
 0x2a5   : > { %1826 = vmatmul.bf16.gmra.mxu2 %v5850_v0  ;;  %v1974_v51 = vpack.c.bf16 %v1919_v33, %v1918_v50  ;;  %v1510_v33 = vadd.f32 %v5827_v59, %v5873_v5 }
 0x2a7   : > { %2114 = vmatmul.bf16.gmra.mxu3 %v1974_v51  ;;  %v1512_v51 = vadd.f32 %v5827_v59, %v5878_v18 }
 0x2a8   : > { %v1787_v53 = vpop.f32.mrf.mxu2 }
 0x2a9   : > { %v1788_v60 = vadd.f32 %v5915_v37, %v1787_v53  ;;  %v1609_v53 = vmax.f32 %v1510_v33, 0.0 }
 0x2aa   : > { %v2075_v55 = vpop.f32.mrf.mxu3 }
 0x2ab   : > { %v2076_v1 = vadd.f32 %v5985_v56, %v2075_v55  ;;  %v1920_v0 = vmax.f32 %v1788_v60, 0.0  ;;  %v1610_v55 = vmax.f32 %v1512_v51, 0.0 }
 0x2ad   : > { %v2235_v8 = vmax.f32 %v2076_v1, 0.0  ;;  %v1653_v5 = vpack.c.bf16 %v1610_v55, %v1609_v53 }
 0x2b0   : > { %v1789_v61 = vpop.f32.mrf.mxu2 }
 0x2b1   : > { %v1790_v2 = vadd.f32 %v5915_v37, %v1789_v61 }
 0x2b2   : > { %v2077_v4 = vpop.f32.mrf.mxu3 }
 0x2b3   : > { %v1921_v6 = vmax.f32 %v1790_v2, 0.0  ;;  %v2078_v7 = vadd.f32 %v5985_v56, %v2077_v4 }
 0x2b5   : > { %v2236_v10 = vmax.f32 %v2078_v7, 0.0  ;;  %1831 = vmatmul.bf16.gmra.mxu2 %v5860_v30  ;;  %v1975_v13 = vpack.c.bf16 %v1921_v6, %v1920_v0 }
 0x2b7   : > { %v2299_v15 = vpack.c.bf16 %v2236_v10, %v2235_v8  ;;  %2119 = vmatmul.bf16.gmra.mxu3 %v1975_v13 }
 0x2b8   : > { %v1792_v16 = vpop.f32.mrf.mxu2 }
 0x2b9   : > { %2636 = vmatmul.bf16.vlgmr.msrb.gmra.mxu1 %v2299_v15  ;;  %v1793_v22 = vadd.f32 %v5915_v37, %v1792_v16  ;;  %v1515_v15 = vadd.f32 %v5827_v59, %v5883_v29  ;;  %v1517_v16 = vadd.f32 %v5827_v59, %v5888_v46 }
 0x2ba   : > { %v2080_v20 = vpop.f32.mrf.mxu3 }
 0x2bb   : > { %v2081_v26 = vadd.f32 %v5985_v56, %v2080_v20  ;;  %v1922_v32 = vmax.f32 %v1793_v22, 0.0  ;;  %v4974_v20 = vld [vmem:[#allocation13 + $0x30] sm:$0xff]  ;;  %v1611_v22 = vmax.f32 %v1515_v15, 0.0 }
 0x2bc   : > { %3696 = vmatpush.bf16.msra.mxu0 %v4974_v20 }
 0x2bd   : > { %v2237_v39 = vmax.f32 %v2081_v26, 0.0 }
 0x2c0   : > { %v1794_v24 = vpop.f32.mrf.mxu2 }
 0x2c1   : > { %v1795_v27 = vadd.f32 %v5915_v37, %v1794_v24  ;;  %v1612_v24 = vmax.f32 %v1517_v16, 0.0 }
 0x2c2   : > { %v2082_v28 = vpop.f32.mrf.mxu3 }
 0x2c3   : > { %v1923_v30 = vmax.f32 %v1795_v27, 0.0  ;;  %v2083_v35 = vadd.f32 %v5985_v56, %v2082_v28  ;;  %v5127_v27 = vld [vmem:[%s5706_s2 + $0x30] sm:$0xff] }
 0x2c5   : > { %v2238_v42 = vmax.f32 %v2083_v35, 0.0  ;;  %1836 = vmatmul.bf16.gmra.mxu2 %v5870_v62  ;;  %v1976_v43 = vpack.c.bf16 %v1923_v30, %v1922_v32  ;;  %v5126_v62 = vld [vmem:[%s5706_s2 + $0x28] sm:$0xff] }
 0x2c6   : > { %2444 = vmatmul.bf16.gmra.mxu0 %v5126_v62  ;;  %v5129_v62 = vld [vmem:[%s5706_s2 + $0x38] sm:$0xff] }
 0x2c7   : > { %2124 = vmatmul.bf16.gmra.mxu3 %v1976_v43  ;;  %v2300_v44 = vpack.c.bf16 %v2238_v42, %v2237_v39  ;;  %v1654_v42 = vpack.c.bf16 %v1612_v24, %v1611_v22 }
 0x2c8   : > { %v1797_v47 = vpop.f32.mrf.mxu2 }
 0x2c9   : > { %2641 = vmatmul.bf16.gmra.mxu1 %v2300_v44  ;;  %v1798_v60 = vadd.f32 %v5915_v37, %v1797_v47 }
 0x2ca   : > { %v2085_v50 = vpop.f32.mrf.mxu3 }
 0x2cb   : > { %v2086_v63 = vadd.f32 %v5985_v56, %v2085_v50  ;;  %v1924_v4 = vmax.f32 %v1798_v60, 0.0  ;;  %v6020_v50 = vld [vmem:[%s7039_s4] ss:$0 sm:$0xff] }
 0x2cc   : > { %v1520_v33 = vadd.f32 %v6020_v50, %v5893_v57  ;;  %v1522_v51 = vadd.f32 %v6020_v50, %v5898_v9  ;;  %v1527_v15 = vadd.f32 %v6020_v50, %v5904_v23 }
 0x2cd   : > { %v2239_v7 = vmax.f32 %v2086_v63, 0.0 }
 0x2ce   : > { %v1613_v53 = vmax.f32 %v1520_v33, 0.0  ;;  %v1614_v55 = vmax.f32 %v1522_v51, 0.0  ;;  %v1616_v20 = vmax.f32 %v1527_v15, 0.0 }
 0x2d0   : > { %v1799_v61 = vpop.f32.mrf.mxu2  ;;  %v1655_v57 = vpack.c.bf16 %v1614_v55, %v1613_v53 }
 0x2d1   : > { %v1800_v1 = vadd.f32 %v5915_v37, %v1799_v61 }
 0x2d2   : > { %v2087_v2 = vpop.f32.mrf.mxu3 }
 0x2d3   : > { %v1925_v0 = vmax.f32 %v1800_v1, 0.0  ;;  %v2088_v6 = vadd.f32 %v5985_v56, %v2087_v2 }
 0x2d5   : > { %v2240_v8 = vmax.f32 %v2088_v6, 0.0  ;;  %1841 = vmatmul.bf16.gmra.mxu2 %v1653_v5  ;;  %v1977_v18 = vpack.c.bf16 %v1925_v0, %v1924_v4 }
 0x2d6   : > { %2449 = vmatmul.bf16.gmra.mxu0 %v5127_v27 }
 0x2d7   : > { %2129 = vmatmul.bf16.gmra.mxu3 %v1977_v18  ;;  %v2301_v10 = vpack.c.bf16 %v2240_v8, %v2239_v7  ;;  %v4953_v8 = vld [vmem:[#allocation10 + $0x8] sm:$0xff] }
 0x2d8   : > { %v1802_v13 = vpop.f32.mrf.mxu2  ;;  %3035 = vmatpush.bf16.msra.mxu2 %v4953_v8  ;;  %v1535_v8 = vadd.f32 %v6020_v50, %v5921_v49 }
 0x2d9   : > { %2646 = vmatmul.bf16.gmra.mxu1 %v2301_v10  ;;  %v1803_v25 = vadd.f32 %v5915_v37, %v1802_v13 }
 0x2da   : > { %v2090_v14 = vpop.f32.mrf.mxu3 }
 0x2db   : > { %v2091_v28 = vadd.f32 %v5985_v56, %v2090_v14  ;;  %v1926_v35 = vmax.f32 %v1803_v25, 0.0  ;;  %v1525_v14 = vadd.f32 %v6020_v50, %v5902_v19  ;;  %v5130_v25 = vld [vmem:[%s5706_s2 + $0x40] sm:$0xff] }
 0x2dd   : > { %v2241_v59 = vmax.f32 %v2091_v28, 0.0  ;;  %v1615_v16 = vmax.f32 %v1525_v14, 0.0  ;;  %v1619_v14 = vmax.f32 %v1535_v8, 0.0 }
 0x2df   : > { %v1656_v19 = vpack.c.bf16 %v1616_v20, %v1615_v16 }
 0x2e0   : > { %v1804_v26 = vpop.f32.mrf.mxu2 }
 0x2e1   : > { %v1805_v32 = vadd.f32 %v5915_v37, %v1804_v26 }
 0x2e2   : > { %v2092_v30 = vpop.f32.mrf.mxu3 }
 0x2e3   : > { %v1927_v39 = vmax.f32 %v1805_v32, 0.0  ;;  %v2093_v29 = vadd.f32 %v5985_v56, %v2092_v30 }
 0x2e5   : > { %v2242_v46 = vmax.f32 %v2093_v29, 0.0  ;;  %1846 = vmatmul.bf16.gmra.mxu2 %v1654_v42  ;;  %v1978_v43 = vpack.c.bf16 %v1927_v39, %v1926_v35 }
 0x2e6   : > { %2454 = vmatmul.bf16.gmra.mxu0 %v5129_v62 }
 0x2e7   : > { %2134 = vmatmul.bf16.gmra.mxu3 %v1978_v43  ;;  %v2302_v44 = vpack.c.bf16 %v2242_v46, %v2241_v59  ;;  %v4963_v59 = vld [vmem:[#allocation12 + $0x18] sm:$0xff] }
 0x2e8   : > { %v1807_v45 = vpop.f32.mrf.mxu2  ;;  %3366 = vmatpush.bf16.msra.mxu3 %v4963_v59  ;;  %v1540_v59 = vadd.f32 %v6020_v50, %v5929_v11 }
 0x2e9   : > { %2651 = vmatmul.bf16.gmra.mxu1 %v2302_v44  ;;  %v1808_v60 = vadd.f32 %v5915_v37, %v1807_v45  ;;  %v1530_v44 = vadd.f32 %v6020_v50, %v5908_v31  ;;  %v1532_v45 = vadd.f32 %v6020_v50, %v5910_v36 }
 0x2ea   : > { %v2095_v47 = vpop.f32.mrf.mxu3 }
 0x2eb   : > { %v2096_v63 = vadd.f32 %v5985_v56, %v2095_v47  ;;  %v1928_v4 = vmax.f32 %v1808_v60, 0.0  ;;  %v6044_v47 = vpop.f32.mrf.mxu0  ;;  %v1617_v33 = vmax.f32 %v1530_v44, 0.0  ;;  %v1618_v51 = vmax.f32 %v1532_v45, 0.0  ;;  %v5131_v60 = vld [vmem:[%s5706_s2 + $0x48] sm:$0xff] }
 0x2ec   : > { %v1621_v44 = vmax.f32 %v1540_v59, 0.0 }
 0x2ed   : > { %v2243_v5 = vmax.f32 %v2096_v63, 0.0 }
 0x2f0   : > { %v1809_v61 = vpop.f32.mrf.mxu2 }
 0x2f1   : > { %v1810_v1 = vadd.f32 %v5915_v37, %v1809_v61 }
 0x2f2   : > { %v2097_v2 = vpop.f32.mrf.mxu3 }
 0x2f3   : > { %v1929_v0 = vmax.f32 %v1810_v1, 0.0  ;;  %v2098_v6 = vadd.f32 %v5985_v56, %v2097_v2 }
 0x2f5   : > { %v2244_v7 = vmax.f32 %v2098_v6, 0.0  ;;  %1851 = vmatmul.bf16.gmra.mxu2 %v1655_v57  ;;  %v1979_v9 = vpack.c.bf16 %v1929_v0, %v1928_v4  ;;  %v1657_v4 = vpack.c.bf16 %v1618_v51, %v1617_v33  ;;  %v6051_v57 = vpop.f32.mrf.mxu0 }
 0x2f6   : > { %2459 = vmatmul.bf16.gmra.mxu0 %v5130_v25 }
 0x2f7   : > { %2139 = vmatmul.bf16.gmra.mxu3 %v1979_v9  ;;  %v2303_v18 = vpack.c.bf16 %v2244_v7, %v2243_v5 }
 0x2f8   : > { %v1812_v10 = vpop.f32.mrf.mxu2 }
 0x2f9   : > { %2656 = vmatmul.bf16.gmra.mxu1 %v2303_v18  ;;  %v1813_v22 = vadd.f32 %v5915_v37, %v1812_v10  ;;  %v1537_v18 = vadd.f32 %v6020_v50, %v5923_v58  ;;  %v4973_v10 = vld [vmem:[#allocation13 + $0x28] sm:$0xff] }
 0x2fa   : > { %v2100_v13 = vpop.f32.mrf.mxu3  ;;  %3697 = vmatpush.bf16.msra.mxu0 %v4973_v10 }
 0x2fb   : > { %v2101_v26 = vadd.f32 %v5985_v56, %v2100_v13  ;;  %v1930_v32 = vmax.f32 %v1813_v22, 0.0  ;;  %v1620_v15 = vmax.f32 %v1537_v18, 0.0  ;;  %v5132_v22 = vld [vmem:[%s5706_s2 + $0x50] sm:$0xff]  ;;  %v6090_v18 = vld [vmem:[%s7045_s10] ss:$0 sm:$0xff] }
 0x2fd   : > { %v2245_v39 = vmax.f32 %v2101_v26, 0.0  ;;  %v6057_v13 = vpop.f32.mrf.mxu0 }
 0x300   : > { %v1814_v24 = vpop.f32.mrf.mxu2 }
 0x301   : > { %v1815_v27 = vadd.f32 %v5915_v37, %v1814_v24 }
 0x302   : > { %v2102_v28 = vpop.f32.mrf.mxu3 }
 0x303   : > { %v1931_v30 = vmax.f32 %v1815_v27, 0.0  ;;  %v2103_v35 = vadd.f32 %v5985_v56, %v2102_v28  ;;  %v1658_v28 = vpack.c.bf16 %v1620_v15, %v1619_v14 }
 0x305   : > { %v2246_v29 = vmax.f32 %v2103_v35, 0.0  ;;  %1856 = vmatmul.bf16.gmra.mxu2 %v1656_v19  ;;  %v1980_v23 = vpack.c.bf16 %v1931_v30, %v1930_v32  ;;  %v4983_v19 = vld [vmem:[%s7052_s17 + $0x38] sm:$0xff] }
 0x306   : > { %2464 = vmatmul.bf16.gmra.mxu0 %v5131_v60  ;;  %4028 = vmatpush.bf16.msra.mxu1 %v4983_v19 }
 0x307   : > { %2144 = vmatmul.bf16.gmra.mxu3 %v1980_v23  ;;  %v2304_v42 = vpack.c.bf16 %v2246_v29, %v2245_v39  ;;  %v6067_v39 = vpop.f32.mrf.mxu0 }
 0x308   : > { %v1817_v46 = vpop.f32.mrf.mxu2 }
 0x309   : > { %2661 = vmatmul.bf16.gmra.mxu1 %v2304_v42  ;;  %v1818_v53 = vadd.f32 %v5915_v37, %v1817_v46  ;;  %v1542_v46 = vadd.f32 %v6020_v50, %v5932_v21 }
 0x30a   : > { %v2105_v43 = vpop.f32.mrf.mxu3 }
 0x30b   : > { %v2106_v61 = vadd.f32 %v5985_v56, %v2105_v43  ;;  %v1932_v1 = vmax.f32 %v1818_v53, 0.0  ;;  %v1622_v45 = vmax.f32 %v1542_v46, 0.0  ;;  %v5133_v53 = vld [vmem:[%s5706_s2 + $0x58] sm:$0xff] }
 0x30d   : > { %v2247_v36 = vmax.f32 %v2106_v61, 0.0 }
 0x30f   : > { %v6073_v43 = vpop.f32.mrf.mxu0 }
 0x310   : > { %v1819_v55 = vpop.f32.mrf.mxu2 }
 0x311   : > { %v1820_v62 = vadd.f32 %v5915_v37, %v1819_v55 }
 0x312   : > { %v2107_v63 = vpop.f32.mrf.mxu3 }
 0x313   : > { %v1933_v2 = vmax.f32 %v1820_v62, 0.0  ;;  %v2108_v31 = vadd.f32 %v5985_v56, %v2107_v63 }
 0x315   : > { %v2248_v0 = vmax.f32 %v2108_v31, 0.0  ;;  %1861 = vmatmul.bf16.gmra.mxu2 %v1657_v4  ;;  %v1981_v6 = vpack.c.bf16 %v1933_v2, %v1932_v1  ;;  %v1659_v1 = vpack.c.bf16 %v1622_v45, %v1621_v44  ;;  %v4952_v4 = vld [vmem:[#allocation10] sm:$0xff] }
 0x316   : > { %2469 = vmatmul.bf16.gmra.mxu0 %v5132_v22  ;;  %3036 = vmatpush.bf16.msra.mxu2 %v4952_v4 }
 0x317   : > { %2149 = vmatmul.bf16.gmra.mxu3 %v1981_v6  ;;  %v2305_v5 = vpack.c.bf16 %v2248_v0, %v2247_v36  ;;  %v6080_v36 = vpop.f32.mrf.mxu0 }
 0x318   : > { %v1822_v7 = vpop.f32.mrf.mxu2 }
 0x319   : > { %2666 = vmatmul.bf16.gmra.mxu1 %v2305_v5  ;;  %v1823_v16 = vadd.f32 %v5915_v37, %v1822_v7  ;;  %v1545_v7 = vadd.f32 %v6020_v50, %v5937_v41 }
 0x31a   : > { %v2110_v9 = vpop.f32.mrf.mxu3 }
 0x31b   : > { %v2111_v24 = vadd.f32 %v5985_v56, %v2110_v9  ;;  %v1934_v49 = vmax.f32 %v1823_v16, 0.0  ;;  %v1547_v9 = vadd.f32 %v6020_v50, %v5943_v54  ;;  %v1623_v15 = vmax.f32 %v1545_v7, 0.0 }
 0x31d   : > { %v2249_v32 = vmax.f32 %v2111_v24, 0.0  ;;  %v1624_v16 = vmax.f32 %v1547_v9, 0.0 }
 0x31f   : > { %v6092_v14 = vpop.f32.mrf.mxu0 }
 0x320   : > { %v1824_v20 = vpop.f32.mrf.mxu2 }
 0x321   : > { %v1825_v25 = vadd.f32 %v5915_v37, %v1824_v20 }
 0x322   : > { %v2112_v26 = vpop.f32.mrf.mxu3 }
 0x323   : > { %v1935_v27 = vmax.f32 %v1825_v25, 0.0  ;;  %v2113_v58 = vadd.f32 %v5985_v56, %v2112_v26  ;;  %v5134_v25 = vld [vmem:[%s5706_s2 + $0x60] sm:$0xff] }
 0x325   : > { %v2250_v30 = vmax.f32 %v2113_v58, 0.0  ;;  %1866 = vmatmul.bf16.gmra.mxu2 %v1658_v28  ;;  %v1982_v35 = vpack.c.bf16 %v1935_v27, %v1934_v49  ;;  %v1660_v28 = vpack.c.bf16 %v1624_v16, %v1623_v15 }
 0x326   : > { %2474 = vmatmul.bf16.gmra.mxu0 %v5133_v53 }
 0x327   : > { %2154 = vmatmul.bf16.gmra.mxu3 %v1982_v35  ;;  %v2306_v29 = vpack.c.bf16 %v2250_v30, %v2249_v32  ;;  %v6104_v59 = vpop.f32.mrf.mxu0 }
 0x328   : > { %v1827_v23 = vpop.f32.mrf.mxu2 }
 0x329   : > { %2671 = vmatmul.bf16.gmra.mxu1 %v2306_v29  ;;  %v1828_v33 = vadd.f32 %v5915_v37, %v1827_v23 }
 0x32a   : > { %v2115_v42 = vpop.f32.mrf.mxu3 }
 0x32b   : > { %v2116_v55 = vadd.f32 %v5985_v56, %v2115_v42  ;;  %v1936_v62 = vmax.f32 %v1828_v33, 0.0  ;;  %v1550_v33 = vadd.f32 %v6020_v50, %v5945_v3 }
 0x32d   : > { %v2251_v21 = vmax.f32 %v2116_v55, 0.0 }
 0x330   : > { %v1829_v51 = vpop.f32.mrf.mxu2 }
 0x331   : > { %v1830_v60 = vadd.f32 %v5915_v37, %v1829_v51  ;;  %v1552_v51 = vadd.f32 %v6020_v50, %v5951_v40 }
 0x332   : > { %v2117_v61 = vpop.f32.mrf.mxu3 }
 0x333   : > { %v1937_v63 = vmax.f32 %v1830_v60, 0.0  ;;  %v2118_v11 = vadd.f32 %v5985_v56, %v2117_v61  ;;  %v4962_v60 = vld [vmem:[#allocation12 + $0x10] sm:$0xff]  ;;  %v6111_v61 = vpop.f32.mrf.mxu0 }
 0x334   : > { %3367 = vmatpush.bf16.msra.mxu3 %v4962_v60 }
 0x335   : > { %v2252_v2 = vmax.f32 %v2118_v11, 0.0  ;;  %1871 = vmatmul.bf16.gmra.mxu2 %v1659_v1  ;;  %v1983_v31 = vpack.c.bf16 %v1937_v63, %v1936_v62  ;;  %v1625_v62 = vmax.f32 %v1550_v33, 0.0  ;;  %v1626_v63 = vmax.f32 %v1552_v51, 0.0 }
 0x336   : > { %v2637_v0 = vpop.f32.mrf.mxu1  ;;  %2479 = vmatmul.bf16.gmra.mxu0 %v5134_v25  ;;  %v1555_v25 = vadd.f32 %v6020_v50, %v5956_v34 }
 0x337   : > { %2159 = vmatmul.bf16.gmra.mxu3 %v1983_v31  ;;  %v2307_v6 = vpack.c.bf16 %v2252_v2, %v2251_v21  ;;  %v2638_v8 = vadd.f32 %v2637_v0, %v6044_v47  ;;  %v5135_v31 = vld [vmem:[%s5706_s2 + $0x68] sm:$0xff] }
 0x338   : > { %v1832_v5 = vpop.f32.mrf.mxu2 }
 0x339   : > { %2676 = vmatmul.bf16.gmra.mxu1 %v2307_v6  ;;  %v2801_v20 = vadd.f32 %v6090_v18, %v2638_v8  ;;  %v1833_v41 = vadd.f32 %v5915_v37, %v1832_v5  ;;  %v1661_v5 = vpack.c.bf16 %v1626_v63, %v1625_v62  ;;  %v4982_v63 = vld [vmem:[%s7052_s17 + $0x30] sm:$0xff] }
 0x33a   : > { %v2120_v10 = vpop.f32.mrf.mxu3  ;;  %4029 = vmatpush.bf16.msra.mxu1 %v4982_v63 }
 0x33b   : > { %v2121_v47 = vadd.f32 %v5985_v56, %v2120_v10  ;;  %v2865_v27 = vmax.f32 %v2801_v20, 0.0  ;;  %v1938_v32 = vmax.f32 %v1833_v41, 0.0  ;;  %v6121_v20 = vpop.f32.mrf.mxu0 }
 0x33d   : > { %v2253_v29 = vmax.f32 %v2121_v47, 0.0  ;;  %v1557_v47 = vadd.f32 %v6020_v50, %v5959_v52 }
 0x33e   : > { %v2639_v22 = vpop.f32.mrf.mxu1 }
 0x33f   : > { %v2640_v24 = vadd.f32 %v2639_v22, %v6051_v57 }
 0x340   : > { %v1834_v54 = vpop.f32.mrf.mxu2 }
 0x341   : > { %v2802_v26 = vadd.f32 %v6090_v18, %v2640_v24  ;;  %v1835_v49 = vadd.f32 %v5915_v37, %v1834_v54 }
 0x342   : > { %v2122_v58 = vpop.f32.mrf.mxu3 }
 0x343   : > { %v2866_v30 = vmax.f32 %v2802_v26, 0.0  ;;  %v1939_v35 = vmax.f32 %v1835_v49, 0.0  ;;  %v2123_v19 = vadd.f32 %v5985_v56, %v2122_v58  ;;  %v6130_v58 = vpop.f32.mrf.mxu0 }
 0x345   : > { %v6102_v23 = vpack.c.bf16 %v2866_v30, %v2865_v27  ;;  %v2254_v57 = vmax.f32 %v2123_v19, 0.0  ;;  %1876 = vmatmul.bf16.gmra.mxu2 %v1660_v28  ;;  %v1984_v42 = vpack.c.bf16 %v1939_v35, %v1938_v32  ;;  %v4972_v27 = vld [vmem:[#allocation13 + $0x20] sm:$0xff]  ;;  %v1627_v28 = vmax.f32 %v1555_v25, 0.0 }
 0x346   : > { %v2642_v46 = vpop.f32.mrf.mxu1  ;;  %2484 = vmatmul.bf16.gmra.mxu0 %v5135_v31  ;;  %v1628_v32 = vmax.f32 %v1557_v47, 0.0  ;;  %v1562_v31 = vadd.f32 %v6020_v50, %v5968_v17 }
 0x347   : > { %2164 = vmatmul.bf16.gmra.mxu3 %v1984_v42  ;;  %v2308_v44 = vpack.c.bf16 %v2254_v57, %v2253_v29  ;;  %v2643_v53 = vadd.f32 %v2642_v46, %v6057_v13  ;;  %3698 = vmatpush.bf16.msra.mxu0 %v4972_v27  ;;  %v5136_v57 = vld [vmem:[%s5706_s2 + $0x70] sm:$0xff] }
 0x348   : > { %v1837_v45 = vpop.f32.mrf.mxu2 }
 0x349   : > { %2681 = vmatmul.bf16.gmra.mxu1 %v2308_v44  ;;  %v2803_v11 = vadd.f32 %v6090_v18, %v2643_v53  ;;  %v1838_v21 = vadd.f32 %v5915_v37, %v1837_v45  ;;  %v1662_v45 = vpack.c.bf16 %v1628_v32, %v1627_v28 }
 0x34a   : > { %v2125_v55 = vpop.f32.mrf.mxu3 }
 0x34b   : > { %v2126_v40 = vadd.f32 %v5985_v56, %v2125_v55  ;;  %v2867_v0 = vmax.f32 %v2803_v11, 0.0  ;;  %v1940_v7 = vmax.f32 %v1838_v21, 0.0  ;;  %v6143_v11 = vpop.f32.mrf.mxu0 }
 0x34d   : > { %v2255_v15 = vmax.f32 %v2126_v40, 0.0 }
 0x34e   : > { %v2644_v1 = vpop.f32.mrf.mxu1 }
 0x34f   : > { %v2645_v2 = vadd.f32 %v2644_v1, %v6067_v39 }
 0x350   : > { %v1839_v3 = vpop.f32.mrf.mxu2 }
 0x351   : > { %v2804_v13 = vadd.f32 %v6090_v18, %v2645_v2  ;;  %v1840_v4 = vadd.f32 %v5915_v37, %v1839_v3  ;;  %v1560_v3 = vadd.f32 %v6020_v50, %v5966_v12 }
 0x352   : > { %v2127_v6 = vpop.f32.mrf.mxu3 }
 0x353   : > { %v2868_v9 = vmax.f32 %v2804_v13, 0.0  ;;  %v1941_v8 = vmax.f32 %v1840_v4, 0.0  ;;  %v2128_v10 = vadd.f32 %v5985_v56, %v2127_v6  ;;  %v6152_v4 = vpop.f32.mrf.mxu0  ;;  %v1630_v6 = vmax.f32 %v1562_v31, 0.0 }
 0x355   : > { %v2256_v16 = vmax.f32 %v2128_v10, 0.0  ;;  %1881 = vmatmul.bf16.gmra.mxu2 %v1661_v5  ;;  %v1985_v39 = vpack.c.bf16 %v1941_v8, %v1940_v7  ;;  %v6123_v22 = vpack.c.bf16 %v2868_v9, %v2867_v0  ;;  %v1629_v0 = vmax.f32 %v1560_v3, 0.0  ;;  %v6158_v9 = vld [vmem:[%s7041_s6] ss:$0 sm:$0xff]  ;;  %v5138_v10 = vld [vmem:[%s5706_s2 + $0x78] sm:$0xff] }
 0x356   : > { %v2647_v41 = vpop.f32.mrf.mxu1  ;;  %2489 = vmatmul.bf16.gmra.mxu0 %v5136_v57 }
 0x357   : > { %2169 = vmatmul.bf16.gmra.mxu3 %v1985_v39  ;;  %v2309_v24 = vpack.c.bf16 %v2256_v16, %v2255_v15  ;;  %v2648_v26 = vadd.f32 %v2647_v41, %v6073_v43 }
 0x358   : > { %v1842_v54 = vpop.f32.mrf.mxu2 }
 0x359   : > { %2686 = vmatmul.bf16.gmra.mxu1 %v2309_v24  ;;  %v2805_v30 = vadd.f32 %v6090_v18, %v2648_v26  ;;  %v1843_v19 = vadd.f32 %v5915_v37, %v1842_v54  ;;  %v1663_v24 = vpack.c.bf16 %v1630_v6, %v1629_v0 }
 0x35a   : > { %v2130_v49 = vpop.f32.mrf.mxu3 }
 0x35b   : > { %v2131_v52 = vadd.f32 %v5985_v56, %v2130_v49  ;;  %v2869_v46 = vmax.f32 %v2805_v30, 0.0  ;;  %v1942_v33 = vmax.f32 %v1843_v19, 0.0  ;;  %v6167_v28 = vpop.f32.mrf.mxu0 }
 0x35d   : > { %v2257_v60 = vmax.f32 %v2131_v52, 0.0 }
 0x35e   : > { %v2649_v35 = vpop.f32.mrf.mxu1 }
 0x35f   : > { %v2650_v29 = vadd.f32 %v2649_v35, %v6080_v36 }
 0x360   : > { %v1844_v34 = vpop.f32.mrf.mxu2 }
 0x361   : > { %v2806_v43 = vadd.f32 %v6090_v18, %v2650_v29  ;;  %v1845_v42 = vadd.f32 %v5915_v37, %v1844_v34  ;;  %v1565_v29 = vadd.f32 %v6020_v50, %v5974_v38  ;;  %v1567_v34 = vadd.f32 %v6020_v50, %v5979_v48 }
 0x362   : > { %v2132_v44 = vpop.f32.mrf.mxu3 }
 0x363   : > { %v2870_v51 = vmax.f32 %v2806_v43, 0.0  ;;  %v1943_v53 = vmax.f32 %v1845_v42, 0.0  ;;  %v2133_v55 = vadd.f32 %v5985_v56, %v2132_v44  ;;  %v6176_v43 = vpop.f32.mrf.mxu0  ;;  %v1631_v42 = vmax.f32 %v1565_v29, 0.0 }
 0x365   : > { %v2258_v62 = vmax.f32 %v2133_v55, 0.0  ;;  %1886 = vmatmul.bf16.gmra.mxu2 %v1662_v45  ;;  %v1986_v36 = vpack.c.bf16 %v1943_v53, %v1942_v33  ;;  %v6145_v1 = vpack.c.bf16 %v2870_v51, %v2869_v46  ;;  %v1632_v46 = vmax.f32 %v1567_v34, 0.0  ;;  %v5139_v55 = vld [vmem:[%s5706_s2 + $0x80] sm:$0xff] }
 0x366   : > { %v2652_v37 = vpop.f32.mrf.mxu1  ;;  %2494 = vmatmul.bf16.gmra.mxu0 %v5138_v10 }
 0x367   : > { %2174 = vmatmul.bf16.gmra.mxu3 %v1986_v36  ;;  %v2310_v21 = vpack.c.bf16 %v2258_v62, %v2257_v60  ;;  %v2653_v40 = vadd.f32 %v2652_v37, %v6092_v14  ;;  %v1664_v62 = vpack.c.bf16 %v1632_v46, %v1631_v42  ;;  %v4971_v46 = vld [vmem:[#allocation13 + $0x18] sm:$0xff] }
 0x368   : > { %v1847_v2 = vpop.f32.mrf.mxu2  ;;  %3699 = vmatpush.bf16.msra.mxu0 %v4971_v46 }
 0x369   : > { %2691 = vmatmul.bf16.gmra.mxu1 %v2310_v21  ;;  %v2807_v5 = vadd.f32 %v6090_v18, %v2653_v40  ;;  %v1848_v12 = vadd.f32 %v6158_v9, %v1847_v2 }
 0x36a   : > { %v2135_v13 = vpop.f32.mrf.mxu3 }
 0x36b   : > { %v2136_v14 = vadd.f32 %v5985_v56, %v2135_v13  ;;  %v2871_v39 = vmax.f32 %v2807_v5, 0.0  ;;  %v1944_v54 = vmax.f32 %v1848_v12, 0.0  ;;  %v6186_v31 = vpop.f32.mrf.mxu0  ;;  %v4961_v12 = vld [vmem:[#allocation12 + $0x8] sm:$0xff] }
 0x36c   : > { %3368 = vmatpush.bf16.msra.mxu3 %v4961_v12 }
 0x36d   : > { %v2259_v49 = vmax.f32 %v2136_v14, 0.0 }
 0x36e   : > { %v2654_v7 = vpop.f32.mrf.mxu1 }
 0x36f   : > { %v2655_v8 = vadd.f32 %v2654_v7, %v6104_v59 }
 0x370   : > { %v1849_v17 = vpop.f32.mrf.mxu2 }
 0x371   : > { %v2808_v15 = vadd.f32 %v6090_v18, %v2655_v8  ;;  %v1850_v16 = vadd.f32 %v6158_v9, %v1849_v17 }
 0x372   : > { %v2137_v41 = vpop.f32.mrf.mxu3 }
 0x373   : > { %v2872_v25 = vmax.f32 %v2808_v15, 0.0  ;;  %v1945_v47 = vmax.f32 %v1850_v16, 0.0  ;;  %v2138_v26 = vadd.f32 %v5985_v56, %v2137_v41  ;;  %v6191_v8 = vpop.f32.mrf.mxu0 }
 0x375   : > { %v2260_v27 = vmax.f32 %v2138_v26, 0.0  ;;  %1891 = vmatmul.bf16.gmra.mxu2 %v1663_v24  ;;  %v1987_v59 = vpack.c.bf16 %v1945_v47, %v1944_v54  ;;  %v6169_v32 = vpack.c.bf16 %v2872_v25, %v2871_v39  ;;  %v5140_v39 = vld [vmem:[%s5706_s2 + $0x88] sm:$0xff] }
 0x376   : > { %v2657_v30 = vpop.f32.mrf.mxu1  ;;  %2499 = vmatmul.bf16.gmra.mxu0 %v5139_v55  ;;  %v5141_v55 = vld [vmem:[%s5706_s2 + $0x90] sm:$0xff] }
 0x377   : > { %2179 = vmatmul.bf16.gmra.mxu3 %v1987_v59  ;;  %v2311_v35 = vpack.c.bf16 %v2260_v27, %v2259_v49  ;;  %v2658_v57 = vadd.f32 %v2657_v30, %v6111_v61 }
 0x378   : > { %v1852_v19 = vpop.f32.mrf.mxu2 }
 0x379   : > { %2696 = vmatmul.bf16.gmra.mxu1 %v2311_v35  ;;  %v2809_v44 = vadd.f32 %v6090_v18, %v2658_v57  ;;  %v1853_v33 = vadd.f32 %v6158_v9, %v1852_v19 }
 0x37a   : > { %v2140_v52 = vpop.f32.mrf.mxu3 }
 0x37b   : > { %v2141_v38 = vadd.f32 %v5985_v56, %v2140_v52  ;;  %v2873_v61 = vmax.f32 %v2809_v44, 0.0  ;;  %v1946_v36 = vmax.f32 %v1853_v33, 0.0  ;;  %v6202_v35 = vpop.f32.mrf.mxu0 }
 0x37d   : > { %v2261_v2 = vmax.f32 %v2141_v38, 0.0 }
 0x37e   : > { %v2659_v45 = vpop.f32.mrf.mxu1 }
 0x37f   : > { %v2660_v51 = vadd.f32 %v2659_v45, %v6121_v20 }
 0x380   : > { %v1854_v53 = vpop.f32.mrf.mxu2 }
 0x381   : > { %v2810_v48 = vadd.f32 %v6090_v18, %v2660_v51  ;;  %v1855_v50 = vadd.f32 %v6158_v9, %v1854_v53 }
 0x382   : > { %v2142_v60 = vpop.f32.mrf.mxu3 }
 0x383   : > { %v2874_v63 = vmax.f32 %v2810_v48, 0.0  ;;  %v1947_v37 = vmax.f32 %v1855_v50, 0.0  ;;  %v2143_v21 = vadd.f32 %v5985_v56, %v2142_v60  ;;  %v6207_v44 = vpop.f32.mrf.mxu0 }
 0x385   : > { %v2262_v3 = vmax.f32 %v2143_v21, 0.0  ;;  %1896 = vmatmul.bf16.gmra.mxu2 %v1664_v62  ;;  %v1988_v20 = vpack.c.bf16 %v1947_v37, %v1946_v36  ;;  %v6188_v40 = vpack.c.bf16 %v2874_v63, %v2873_v61 }
 0x386   : > { %v2662_v13 = vpop.f32.mrf.mxu1  ;;  %2504 = vmatmul.bf16.gmra.mxu0 %v5140_v39 }
 0x387   : > { %2184 = vmatmul.bf16.gmra.mxu3 %v1988_v20  ;;  %v2312_v0 = vpack.c.bf16 %v2262_v3, %v2261_v2  ;;  %v2663_v5 = vadd.f32 %v2662_v13, %v6130_v58  ;;  %v4981_v2 = vld [vmem:[%s7052_s17 + $0x28] sm:$0xff] }
 0x388   : > { %v1857_v6 = vpop.f32.mrf.mxu2  ;;  %4030 = vmatpush.bf16.msra.mxu1 %v4981_v2 }
 0x389   : > { %2701 = vmatmul.bf16.gmra.mxu1 %v2312_v0  ;;  %v2811_v17 = vadd.f32 %v6090_v18, %v2663_v5  ;;  %v1858_v14 = vadd.f32 %v6158_v9, %v1857_v6 }
 0x38a   : > { %v2145_v7 = vpop.f32.mrf.mxu3 }
 0x38b   : > { %v2146_v41 = vadd.f32 %v5985_v56, %v2145_v7  ;;  %v2875_v54 = vmax.f32 %v2811_v17, 0.0  ;;  %v1948_v47 = vmax.f32 %v1858_v14, 0.0  ;;  %v6221_v3 = vpop.f32.mrf.mxu0 }
 0x38d   : > { %v2263_v59 = vmax.f32 %v2146_v41, 0.0 }
 0x38e   : > { %v2664_v10 = vpop.f32.mrf.mxu1 }
 0x38f   : > { %v2665_v15 = vadd.f32 %v2664_v10, %v6143_v11 }
 0x390   : > { %v1859_v16 = vpop.f32.mrf.mxu2 }
 0x391   : > { %v2812_v24 = vadd.f32 %v6090_v18, %v2665_v15  ;;  %v1860_v58 = vadd.f32 %v6158_v9, %v1859_v16  ;;  %v5142_v16 = vld [vmem:[%s5706_s2 + $0x98] sm:$0xff] }
 0x392   : > { %v2147_v25 = vpop.f32.mrf.mxu3 }
 0x393   : > { %v2876_v26 = vmax.f32 %v2812_v24, 0.0  ;;  %v1949_v49 = vmax.f32 %v1860_v58, 0.0  ;;  %v2148_v27 = vadd.f32 %v5985_v56, %v2147_v25 }
 0x395   : > { %v2264_v30 = vmax.f32 %v2148_v27, 0.0  ;;  %3037 = vmatmul.bf16.vlgmr.msra.gmra.mxu2 %v6102_v23  ;;  %v1989_v11 = vpack.c.bf16 %v1949_v49, %v1948_v47  ;;  %v6204_v19 = vpack.c.bf16 %v2876_v26, %v2875_v54 }
 0x396   : > { %v2667_v29 = vpop.f32.mrf.mxu1  ;;  %2509 = vmatmul.bf16.gmra.mxu0 %v5141_v55 }
 0x397   : > { %2189 = vmatmul.bf16.gmra.mxu3 %v1989_v11  ;;  %v2313_v34 = vpack.c.bf16 %v2264_v30, %v2263_v59  ;;  %v2668_v52 = vadd.f32 %v2667_v29, %v6152_v4 }
 0x398   : > { %v1862_v57 = vpop.f32.mrf.mxu2 }
 0x399   : > { %2706 = vmatmul.bf16.gmra.mxu1 %v2313_v34  ;;  %v2813_v23 = vadd.f32 %v6090_v18, %v2668_v52  ;;  %v1863_v33 = vadd.f32 %v6158_v9, %v1862_v57 }
 0x39a   : > { %v2150_v42 = vpop.f32.mrf.mxu3 }
 0x39b   : > { %v2151_v38 = vadd.f32 %v5985_v56, %v2150_v42  ;;  %v2877_v50 = vmax.f32 %v2813_v23, 0.0  ;;  %v1950_v60 = vmax.f32 %v1863_v33, 0.0 }
 0x39d   : > { %v2265_v37 = vmax.f32 %v2151_v38, 0.0 }
 0x39e   : > { %v2669_v45 = vpop.f32.mrf.mxu1 }
 0x39f   : > { %v2670_v51 = vadd.f32 %v2669_v45, %v6167_v28 }
 0x3a0   : > { %v1864_v53 = vpop.f32.mrf.mxu2 }
 0x3a1   : > { %v2814_v48 = vadd.f32 %v6090_v18, %v2670_v51  ;;  %v1865_v4 = vadd.f32 %v6158_v9, %v1864_v53  ;;  %v5143_v51 = vld [vmem:[%s5706_s2 + $0xa0] sm:$0xff] }
 0x3a2   : > { %v2152_v61 = vpop.f32.mrf.mxu3 }
 0x3a3   : > { %v2878_v62 = vmax.f32 %v2814_v48, 0.0  ;;  %v1951_v36 = vmax.f32 %v1865_v4, 0.0  ;;  %v2153_v63 = vadd.f32 %v5985_v56, %v2152_v61 }
 0x3a5   : > { %v2266_v21 = vmax.f32 %v2153_v63, 0.0  ;;  %3042 = vmatmul.bf16.gmra.mxu2 %v6123_v22  ;;  %v1990_v28 = vpack.c.bf16 %v1951_v36, %v1950_v60  ;;  %v6223_v20 = vpack.c.bf16 %v2878_v62, %v2877_v50  ;;  %v6226_v22 = vpop.f32.mrf.mxu0 }
 0x3a6   : > { %v2672_v13 = vpop.f32.mrf.mxu1  ;;  %2514 = vmatmul.bf16.gmra.mxu0 %v5142_v16 }
 0x3a7   : > { %2194 = vmatmul.bf16.gmra.mxu3 %v1990_v28  ;;  %v2314_v0 = vpack.c.bf16 %v2266_v21, %v2265_v37  ;;  %v2673_v5 = vadd.f32 %v2672_v13, %v6176_v43 }
 0x3a8   : > { %v1867_v6 = vpop.f32.mrf.mxu2 }
 0x3a9   : > { %2711 = vmatmul.bf16.gmra.mxu1 %v2314_v0  ;;  %v2815_v12 = vadd.f32 %v6090_v18, %v2673_v5  ;;  %v1868_v10 = vadd.f32 %v6158_v9, %v1867_v6  ;;  %v4960_v6 = vld [vmem:[#allocation12] sm:$0xff] }
 0x3aa   : > { %v2155_v7 = vpop.f32.mrf.mxu3  ;;  %3369 = vmatpush.bf16.msra.mxu3 %v4960_v6 }
 0x3ab   : > { %v2156_v39 = vadd.f32 %v5985_v56, %v2155_v7  ;;  %v2879_v43 = vmax.f32 %v2815_v12, 0.0  ;;  %v1952_v54 = vmax.f32 %v1868_v10, 0.0  ;;  %v5144_v10 = vld [vmem:[%s5706_s2 + $0xa8] sm:$0xff] }
 0x3ad   : > { %v2267_v49 = vmax.f32 %v2156_v39, 0.0  ;;  %v6237_v59 = vpop.f32.mrf.mxu0 }
 0x3ae   : > { %v2674_v17 = vpop.f32.mrf.mxu1 }
 0x3af   : > { %v2675_v14 = vadd.f32 %v2674_v17, %v6186_v31 }
 0x3b0   : > { %v1869_v15 = vpop.f32.mrf.mxu2 }
 0x3b1   : > { %v2816_v41 = vadd.f32 %v6090_v18, %v2675_v14  ;;  %v1870_v24 = vadd.f32 %v6158_v9, %v1869_v15  ;;  %v6267_v14 = vld [vmem:[%s7043_s8] ss:$0 sm:$0xff] }
 0x3b2   : > { %v2157_v58 = vpop.f32.mrf.mxu3 }
 0x3b3   : > { %v2880_v25 = vmax.f32 %v2816_v41, 0.0  ;;  %v1953_v47 = vmax.f32 %v1870_v24, 0.0  ;;  %v2158_v26 = vadd.f32 %v5985_v56, %v2157_v58 }
 0x3b5   : > { %v2268_v27 = vmax.f32 %v2158_v26, 0.0  ;;  %3047 = vmatmul.bf16.gmra.mxu2 %v6145_v1  ;;  %v1991_v31 = vpack.c.bf16 %v1953_v47, %v1952_v54  ;;  %v6239_v30 = vpack.c.bf16 %v2880_v25, %v2879_v43  ;;  %v6242_v42 = vpop.f32.mrf.mxu0 }
 0x3b6   : > { %v2677_v11 = vpop.f32.mrf.mxu1  ;;  %2519 = vmatmul.bf16.gmra.mxu0 %v5143_v51 }
 0x3b7   : > { %2199 = vmatmul.bf16.gmra.mxu3 %v1991_v31  ;;  %v2315_v29 = vpack.c.bf16 %v2268_v27, %v2267_v49  ;;  %v2678_v57 = vadd.f32 %v2677_v11, %v6191_v8 }
 0x3b8   : > { %v1872_v34 = vpop.f32.mrf.mxu2 }
 0x3b9   : > { %2716 = vmatmul.bf16.gmra.mxu1 %v2315_v29  ;;  %v2817_v46 = vadd.f32 %v6090_v18, %v2678_v57  ;;  %v1873_v1 = vadd.f32 %v6158_v9, %v1872_v34  ;;  %v4970_v57 = vld [vmem:[#allocation13 + $0x10] sm:$0xff] }
 0x3ba   : > { %v2160_v52 = vpop.f32.mrf.mxu3  ;;  %3700 = vmatpush.bf16.msra.mxu0 %v4970_v57 }
 0x3bb   : > { %v2161_v53 = vadd.f32 %v5985_v56, %v2160_v52  ;;  %v2881_v8 = vmax.f32 %v2817_v46, 0.0  ;;  %v1954_v4 = vmax.f32 %v1873_v1, 0.0 }
 0x3bd   : > { %v2269_v62 = vmax.f32 %v2161_v53, 0.0  ;;  %v6253_v63 = vpop.f32.mrf.mxu0 }
 0x3be   : > { %v2679_v23 = vpop.f32.mrf.mxu1 }
 0x3bf   : > { %v2680_v45 = vadd.f32 %v2679_v23, %v6202_v35 }
 0x3c0   : > { %v1874_v33 = vpop.f32.mrf.mxu2 }
 0x3c1   : > { %v2818_v55 = vadd.f32 %v6090_v18, %v2680_v45  ;;  %v1875_v38 = vadd.f32 %v6158_v9, %v1874_v33  ;;  %v5146_v33 = vld [vmem:[%s5706_s2 + $0xb0] sm:$0xff] }
 0x3c2   : > { %v2162_v48 = vpop.f32.mrf.mxu3 }
 0x3c3   : > { %v2882_v50 = vmax.f32 %v2818_v55, 0.0  ;;  %v1955_v61 = vmax.f32 %v1875_v38, 0.0  ;;  %v2163_v60 = vadd.f32 %v5985_v56, %v2162_v48 }
 0x3c5   : > { %v2270_v36 = vmax.f32 %v2163_v60, 0.0  ;;  %3052 = vmatmul.bf16.gmra.mxu2 %v6169_v32  ;;  %v1992_v35 = vpack.c.bf16 %v1955_v61, %v1954_v4  ;;  %v6255_v37 = vpack.c.bf16 %v2882_v50, %v2881_v8  ;;  %v6258_v56 = vpop.f32.mrf.mxu0 }
 0x3c6   : > { %v2682_v21 = vpop.f32.mrf.mxu1  ;;  %2524 = vmatmul.bf16.gmra.mxu0 %v5144_v10 }
 0x3c7   : > { %2204 = vmatmul.bf16.gmra.mxu3 %v1992_v35  ;;  %v2316_v28 = vpack.c.bf16 %v2270_v36, %v2269_v62  ;;  %v2683_v13 = vadd.f32 %v2682_v21, %v6207_v44  ;;  %v4980_v62 = vld [vmem:[%s7052_s17 + $0x20] sm:$0xff] }
 0x3c8   : > { %v1877_v2 = vpop.f32.mrf.mxu2  ;;  %4031 = vmatpush.bf16.msra.mxu1 %v4980_v62 }
 0x3c9   : > { %2721 = vmatmul.bf16.gmra.mxu1 %v2316_v28  ;;  %v2819_v32 = vadd.f32 %v6090_v18, %v2683_v13  ;;  %v1878_v7 = vadd.f32 %v6158_v9, %v1877_v2 }
 0x3ca   : > { %v2165_v0 = vpop.f32.mrf.mxu3 }
 0x3cb   : > { %v2166_v44 = vadd.f32 %v6267_v14, %v2165_v0  ;;  %v2883_v39 = vmax.f32 %v2819_v32, 0.0  ;;  %v1956_v24 = vmax.f32 %v1878_v7, 0.0 }
 0x3cd   : > { %v2271_v54 = vmax.f32 %v2166_v44, 0.0  ;;  %v6274_v26 = vpop.f32.mrf.mxu0 }
 0x3ce   : > { %v2684_v5 = vpop.f32.mrf.mxu1 }
 0x3cf   : > { %v2685_v12 = vadd.f32 %v2684_v5, %v6221_v3 }
 0x3d0   : > { %v1879_v17 = vpop.f32.mrf.mxu2 }
 0x3d1   : > { %v2820_v15 = vadd.f32 %v6090_v18, %v2685_v12  ;;  %v1880_v16 = vadd.f32 %v6158_v9, %v1879_v17  ;;  %v5147_v17 = vld [vmem:[%s5706_s2 + $0xb8] sm:$0xff] }
 0x3d2   : > { %v2167_v41 = vpop.f32.mrf.mxu3 }
 0x3d3   : > { %v2884_v43 = vmax.f32 %v2820_v15, 0.0  ;;  %v1957_v58 = vmax.f32 %v1880_v16, 0.0  ;;  %v2168_v3 = vadd.f32 %v6267_v14, %v2167_v41 }
 0x3d5   : > { %v2272_v25 = vmax.f32 %v2168_v3, 0.0  ;;  %3057 = vmatmul.bf16.gmra.mxu2 %v6188_v40  ;;  %v1993_v47 = vpack.c.bf16 %v1957_v58, %v1956_v24  ;;  %v6276_v49 = vpack.c.bf16 %v2884_v43, %v2883_v39  ;;  %v6279_v52 = vpop.f32.mrf.mxu0 }
 0x3d6   : > { %v2687_v27 = vpop.f32.mrf.mxu1  ;;  %2529 = vmatmul.bf16.gmra.mxu0 %v5146_v33 }
 0x3d7   : > { %2209 = vmatmul.bf16.gmra.mxu3 %v1993_v47  ;;  %v2317_v31 = vpack.c.bf16 %v2272_v25, %v2271_v54  ;;  %v2688_v29 = vadd.f32 %v2687_v27, %v6226_v22 }
 0x3d8   : > { %v1882_v11 = vpop.f32.mrf.mxu2 }
 0x3d9   : > { %2726 = vmatmul.bf16.gmra.mxu1 %v2317_v31  ;;  %v2821_v40 = vadd.f32 %v6090_v18, %v2688_v29  ;;  %v1883_v23 = vadd.f32 %v6158_v9, %v1882_v11 }
 0x3da   : > { %v2170_v34 = vpop.f32.mrf.mxu3 }
 0x3db   : > { %v2171_v51 = vadd.f32 %v6267_v14, %v2170_v34  ;;  %v2885_v55 = vmax.f32 %v2821_v40, 0.0  ;;  %v1958_v8 = vmax.f32 %v1883_v23, 0.0 }
 0x3dd   : > { %v2273_v61 = vmax.f32 %v2171_v51, 0.0  ;;  %v6293_v36 = vpop.f32.mrf.mxu0 }
 0x3de   : > { %v2689_v46 = vpop.f32.mrf.mxu1 }
 0x3df   : > { %v2690_v1 = vadd.f32 %v2689_v46, %v6237_v59 }
 0x3e0   : > { %v1884_v45 = vpop.f32.mrf.mxu2 }
 0x3e1   : > { %v2822_v53 = vadd.f32 %v6090_v18, %v2690_v1  ;;  %v1885_v22 = vadd.f32 %v6158_v9, %v1884_v45  ;;  %v5148_v1 = vld [vmem:[%s5706_s2 + $0xc0] sm:$0xff] }
 0x3e2   : > { %v2172_v38 = vpop.f32.mrf.mxu3 }
 0x3e3   : > { %v2886_v48 = vmax.f32 %v2822_v53, 0.0  ;;  %v1959_v4 = vmax.f32 %v1885_v22, 0.0  ;;  %v2173_v50 = vadd.f32 %v6267_v14, %v2172_v38 }
 0x3e5   : > { %v2274_v60 = vmax.f32 %v2173_v50, 0.0  ;;  %3062 = vmatmul.bf16.gmra.mxu2 %v6204_v19  ;;  %v1994_v59 = vpack.c.bf16 %v1959_v4, %v1958_v8  ;;  %v6295_v35 = vpack.c.bf16 %v2886_v48, %v2885_v55  ;;  %v6298_v19 = vpop.f32.mrf.mxu0 }
 0x3e6   : > { %v2692_v21 = vpop.f32.mrf.mxu1  ;;  %2534 = vmatmul.bf16.gmra.mxu0 %v5147_v17 }
 0x3e7   : > { %2214 = vmatmul.bf16.gmra.mxu3 %v1994_v59  ;;  %v2318_v28 = vpack.c.bf16 %v2274_v60, %v2273_v61  ;;  %v2693_v13 = vadd.f32 %v2692_v21, %v6242_v42 }
 0x3e8   : > { %v1887_v2 = vpop.f32.mrf.mxu2 }
 0x3e9   : > { %2731 = vmatmul.bf16.gmra.mxu1 %v2318_v28  ;;  %v2823_v6 = vadd.f32 %v6090_v18, %v2693_v13  ;;  %v1888_v5 = vadd.f32 %v6158_v9, %v1887_v2 }
 0x3ea   : > { %v2175_v0 = vpop.f32.mrf.mxu3 }
 0x3eb   : > { %v2176_v10 = vadd.f32 %v6267_v14, %v2175_v0  ;;  %v2887_v42 = vmax.f32 %v2823_v6, 0.0  ;;  %v1960_v39 = vmax.f32 %v1888_v5, 0.0  ;;  %v5149_v5 = vld [vmem:[%s5706_s2 + $0xc8] sm:$0xff] }
 0x3ed   : > { %v2275_v58 = vmax.f32 %v2176_v10, 0.0  ;;  %v6309_v54 = vpop.f32.mrf.mxu0 }
 0x3ee   : > { %v2694_v32 = vpop.f32.mrf.mxu1 }
 0x3ef   : > { %v2695_v7 = vadd.f32 %v2694_v32, %v6253_v63 }
 0x3f0   : > { %v1889_v12 = vpop.f32.mrf.mxu2 }
 0x3f1   : > { %v2824_v44 = vadd.f32 %v6090_v18, %v2695_v7  ;;  %v1890_v15 = vadd.f32 %v6158_v9, %v1889_v12 }
 0x3f2   : > { %v2177_v16 = vpop.f32.mrf.mxu3 }
 0x3f3   : > { %v2888_v41 = vmax.f32 %v2824_v44, 0.0  ;;  %v1961_v24 = vmax.f32 %v1890_v15, 0.0  ;;  %v2178_v43 = vadd.f32 %v6267_v14, %v2177_v16 }
 0x3f5   : > { %v2276_v3 = vmax.f32 %v2178_v43, 0.0  ;;  %3067 = vmatmul.bf16.gmra.mxu2 %v6223_v20  ;;  %v1995_v63 = vpack.c.bf16 %v1961_v24, %v1960_v39  ;;  %v6311_v25 = vpack.c.bf16 %v2888_v41, %v2887_v42  ;;  %v6314_v34 = vpop.f32.mrf.mxu0 }
 0x3f6   : > { %v2697_v47 = vpop.f32.mrf.mxu1  ;;  %2539 = vmatmul.bf16.gmra.mxu0 %v5148_v1 }
 0x3f7   : > { %2219 = vmatmul.bf16.gmra.mxu3 %v1995_v63  ;;  %v2319_v27 = vpack.c.bf16 %v2276_v3, %v2275_v58  ;;  %v2698_v11 = vadd.f32 %v2697_v47, %v6258_v56 }
 0x3f8   : > { %v1892_v31 = vpop.f32.mrf.mxu2 }
 0x3f9   : > { %2736 = vmatmul.bf16.gmra.mxu1 %v2319_v27  ;;  %v2825_v57 = vadd.f32 %v6090_v18, %v2698_v11  ;;  %v1893_v20 = vadd.f32 %v6158_v9, %v1892_v31  ;;  %v6349_v27 = vld [vmem:[%s7047_s12] ss:$0 sm:$0xff] }
 0x3fa   : > { %v2180_v29 = vpop.f32.mrf.mxu3 }
 0x3fb   : > { %v2181_v45 = vadd.f32 %v6267_v14, %v2180_v29  ;;  %v2889_v56 = vmax.f32 %v2825_v57, 0.0  ;;  %v1962_v22 = vmax.f32 %v1893_v20, 0.0 }
 0x3fd   : > { %v2277_v48 = vmax.f32 %v2181_v45, 0.0  ;;  %v6325_v50 = vpop.f32.mrf.mxu0 }
 0x3fe   : > { %v2699_v40 = vpop.f32.mrf.mxu1 }
 0x3ff   : > { %v2700_v46 = vadd.f32 %v2699_v40, %v6274_v26 }
 0x400   : > { %v1894_v23 = vpop.f32.mrf.mxu2 }
 0x401   : > { %v2826_v33 = vadd.f32 %v6090_v18, %v2700_v46  ;;  %v1895_v51 = vadd.f32 %v6158_v9, %v1894_v23  ;;  %v5150_v46 = vld [vmem:[%s5706_s2 + $0xd0] sm:$0xff] }
 0x402   : > { %v2182_v53 = vpop.f32.mrf.mxu3 }
 0x403   : > { %v2890_v55 = vmax.f32 %v2826_v33, 0.0  ;;  %v1963_v38 = vmax.f32 %v1895_v51, 0.0  ;;  %v2183_v8 = vadd.f32 %v6267_v14, %v2182_v53 }
 0x405   : > { %v2278_v4 = vmax.f32 %v2183_v8, 0.0  ;;  %3072 = vmatmul.bf16.gmra.mxu2 %v6239_v30  ;;  %v1996_v26 = vpack.c.bf16 %v1963_v38, %v1962_v22  ;;  %v6327_v61 = vpack.c.bf16 %v2890_v55, %v2889_v56  ;;  %v6330_v2 = vpop.f32.mrf.mxu0 }
 0x406   : > { %v2702_v60 = vpop.f32.mrf.mxu1  ;;  %2544 = vmatmul.bf16.gmra.mxu0 %v5149_v5 }
 0x407   : > { %2224 = vmatmul.bf16.gmra.mxu3 %v1996_v26  ;;  %v2320_v59 = vpack.c.bf16 %v2278_v4, %v2277_v48  ;;  %v2703_v21 = vadd.f32 %v2702_v60, %v6279_v52 }
 0x408   : > { %v1897_v62 = vpop.f32.mrf.mxu2 }
 0x409   : > { %2741 = vmatmul.bf16.gmra.mxu1 %v2320_v59  ;;  %v2827_v13 = vadd.f32 %v6090_v18, %v2703_v21  ;;  %v1898_v30 = vadd.f32 %v6158_v9, %v1897_v62 }
 0x40a   : > { %v2185_v28 = vpop.f32.mrf.mxu3 }
 0x40b   : > { %v2186_v7 = vadd.f32 %v6267_v14, %v2185_v28  ;;  %v2891_v52 = vmax.f32 %v2827_v13, 0.0  ;;  %v1964_v44 = vmax.f32 %v1898_v30, 0.0 }
 0x40d   : > { %v2279_v39 = vmax.f32 %v2186_v7, 0.0  ;;  %v6341_v24 = vpop.f32.mrf.mxu0 }
 0x40e   : > { %v2704_v0 = vpop.f32.mrf.mxu1 }
 0x40f   : > { %v2705_v6 = vadd.f32 %v2704_v0, %v6293_v36 }
 0x410   : > { %v1899_v32 = vpop.f32.mrf.mxu2 }
 0x411   : > { %v2828_v12 = vadd.f32 %v6090_v18, %v2705_v6  ;;  %v1900_v17 = vadd.f32 %v6158_v9, %v1899_v32  ;;  %v5151_v32 = vld [vmem:[%s5706_s2 + $0xd8] sm:$0xff] }
 0x412   : > { %v2187_v10 = vpop.f32.mrf.mxu3 }
 0x413   : > { %v2892_v15 = vmax.f32 %v2828_v12, 0.0  ;;  %v1965_v42 = vmax.f32 %v1900_v17, 0.0  ;;  %v2188_v16 = vadd.f32 %v6267_v14, %v2187_v10 }
 0x415   : > { %v2280_v41 = vmax.f32 %v2188_v16, 0.0  ;;  %3077 = vmatmul.bf16.gmra.mxu2 %v6255_v37  ;;  %v1997_v36 = vpack.c.bf16 %v1965_v42, %v1964_v44  ;;  %v6343_v43 = vpack.c.bf16 %v2892_v15, %v2891_v52  ;;  %v4969_v37 = vld [vmem:[#allocation13 + $0x8] sm:$0xff]  ;;  %v6351_v31 = vpop.f32.mrf.mxu0 }
 0x416   : > { %v2707_v58 = vpop.f32.mrf.mxu1  ;;  %3701 = vmatpush.bf16.msra.mxu0 %v4969_v37 }
 0x417   : > { %2229 = vmatmul.bf16.gmra.mxu3 %v1997_v36  ;;  %v2321_v9 = vpack.c.bf16 %v2280_v41, %v2279_v39  ;;  %v2708_v63 = vadd.f32 %v2707_v58, %v6298_v19  ;;  %2549 = vmatmul.bf16.gmra.mxu0 %v5150_v46 }
 0x418   : > { %v3038_v3 = vpop.f32.mrf.mxu2 }
 0x419   : > { %2746 = vmatmul.bf16.gmra.mxu1 %v2321_v9  ;;  %v2829_v11 = vadd.f32 %v6090_v18, %v2708_v63  ;;  %v3039_v57 = vadd.f32 %v6349_v27, %v3038_v3 }
 0x41a   : > { %v2190_v47 = vpop.f32.mrf.mxu3 }
 0x41b   : > { %v2191_v19 = vadd.f32 %v6267_v14, %v2190_v47  ;;  %v2893_v45 = vmax.f32 %v2829_v11, 0.0  ;;  %v3198_v51 = vmax.f32 %v3039_v57, 0.0 }
 0x41d   : > { %v2281_v55 = vmax.f32 %v2191_v19, 0.0  ;;  %v6365_v48 = vpop.f32.mrf.mxu0 }
 0x41e   : > { %v2709_v29 = vpop.f32.mrf.mxu1 }
 0x41f   : > { %v2710_v40 = vadd.f32 %v2709_v29, %v6309_v54  ;;  %v4979_v54 = vld [vmem:[%s7052_s17 + $0x18] sm:$0xff] }
 0x420   : > { %v3040_v20 = vpop.f32.mrf.mxu2  ;;  %4032 = vmatpush.bf16.msra.mxu1 %v4979_v54 }
 0x421   : > { %v2830_v23 = vadd.f32 %v6090_v18, %v2710_v40  ;;  %v3041_v1 = vadd.f32 %v6349_v27, %v3040_v20  ;;  %v5153_v40 = vld [vmem:[%s5706_s2 + $0xe0] sm:$0xff] }
 0x422   : > { %v2192_v33 = vpop.f32.mrf.mxu3 }
 0x423   : > { %v2894_v56 = vmax.f32 %v2830_v23, 0.0  ;;  %v3199_v53 = vmax.f32 %v3041_v1, 0.0  ;;  %v2193_v22 = vadd.f32 %v6267_v14, %v2192_v33 }
 0x425   : > { %v3262_v38 = vpack.c.bf16 %v3199_v53, %v3198_v51  ;;  %v2282_v8 = vmax.f32 %v2193_v22, 0.0  ;;  %3082 = vmatmul.bf16.gmra.mxu2 %v6276_v49  ;;  %v6367_v4 = vpack.c.bf16 %v2894_v56, %v2893_v45  ;;  %v6370_v28 = vpop.f32.mrf.mxu0 }
 0x426   : > { %v2712_v26 = vpop.f32.mrf.mxu1 }
 0x427   : > { %3370 = vmatmul.bf16.vlgmr.msra.gmra.mxu3 %v3262_v38  ;;  %v2322_v60 = vpack.c.bf16 %v2282_v8, %v2281_v55  ;;  %v2713_v62 = vadd.f32 %v2712_v26, %v6314_v34  ;;  %2554 = vmatmul.bf16.gmra.mxu0 %v5151_v32 }
 0x428   : > { %v3043_v59 = vpop.f32.mrf.mxu2 }
 0x429   : > { %2751 = vmatmul.bf16.gmra.mxu1 %v2322_v60  ;;  %v2831_v49 = vadd.f32 %v6090_v18, %v2713_v62  ;;  %v3044_v0 = vadd.f32 %v6349_v27, %v3043_v59 }
 0x42a   : > { %v2195_v21 = vpop.f32.mrf.mxu3 }
 0x42b   : > { %v2196_v5 = vadd.f32 %v6267_v14, %v2195_v21  ;;  %v2895_v34 = vmax.f32 %v2831_v49, 0.0  ;;  %v3200_v52 = vmax.f32 %v3044_v0, 0.0  ;;  %v5154_v0 = vld [vmem:[%s5706_s2 + $0xe8] sm:$0xff] }
 0x42d   : > { %v2283_v42 = vmax.f32 %v2196_v5, 0.0  ;;  %v6381_v39 = vpop.f32.mrf.mxu0 }
 0x42e   : > { %v2714_v13 = vpop.f32.mrf.mxu1 }
 0x42f   : > { %v2715_v30 = vadd.f32 %v2714_v13, %v6325_v50 }
 0x430   : > { %v3045_v6 = vpop.f32.mrf.mxu2 }
 0x431   : > { %v2832_v7 = vadd.f32 %v6090_v18, %v2715_v30  ;;  %v3046_v12 = vadd.f32 %v6349_v27, %v3045_v6 }
 0x432   : > { %v2197_v17 = vpop.f32.mrf.mxu3 }
 0x433   : > { %v2896_v10 = vmax.f32 %v2832_v7, 0.0  ;;  %v3201_v44 = vmax.f32 %v3046_v12, 0.0  ;;  %v2198_v15 = vadd.f32 %v6267_v14, %v2197_v17 }
 0x435   : > { %v2284_v16 = vmax.f32 %v2198_v15, 0.0  ;;  %3087 = vmatmul.bf16.gmra.mxu2 %v6295_v35  ;;  %v3263_v50 = vpack.c.bf16 %v3201_v44, %v3200_v52  ;;  %v6383_v41 = vpack.c.bf16 %v2896_v10, %v2895_v34  ;;  %v6386_v63 = vpop.f32.mrf.mxu0  ;;  %v6391_v35 = vld [vmem:[%s7045_s10] ss:$0 sm:$0xff] }
 0x436   : > { %v2717_v18 = vpop.f32.mrf.mxu1 }
 0x437   : > { %3375 = vmatmul.bf16.gmra.mxu3 %v3263_v50  ;;  %v2323_v36 = vpack.c.bf16 %v2284_v16, %v2283_v42  ;;  %v2718_v9 = vadd.f32 %v2717_v18, %v6330_v2  ;;  %2559 = vmatmul.bf16.gmra.mxu0 %v5153_v40 }
 0x438   : > { %v3048_v58 = vpop.f32.mrf.mxu2 }
 0x439   : > { %2756 = vmatmul.bf16.gmra.mxu1 %v2323_v36  ;;  %v2833_v47 = vadd.f32 %v6391_v35, %v2718_v9  ;;  %v3049_v11 = vadd.f32 %v6349_v27, %v3048_v58  ;;  %v4968_v58 = vld [vmem:[#allocation13] sm:$0xff] }
 0x43a   : > { %v2200_v3 = vpop.f32.mrf.mxu3  ;;  %3702 = vmatpush.bf16.msra.mxu0 %v4968_v58 }
 0x43b   : > { %v2201_v2 = vadd.f32 %v6267_v14, %v2200_v3  ;;  %v2897_v19 = vmax.f32 %v2833_v47, 0.0  ;;  %v3202_v1 = vmax.f32 %v3049_v11, 0.0 }
 0x43d   : > { %v2285_v56 = vmax.f32 %v2201_v2, 0.0  ;;  %v6402_v22 = vpop.f32.mrf.mxu0 }
 0x43e   : > { %v2719_v37 = vpop.f32.mrf.mxu1 }
 0x43f   : > { %v2720_v29 = vadd.f32 %v2719_v37, %v6341_v24 }
 0x440   : > { %v3050_v57 = vpop.f32.mrf.mxu2 }
 0x441   : > { %v2834_v20 = vadd.f32 %v6391_v35, %v2720_v29  ;;  %v3051_v46 = vadd.f32 %v6349_v27, %v3050_v57  ;;  %v5155_v29 = vld [vmem:[%s5706_s2 + $0xf0] sm:$0xff] }
 0x442   : > { %v2202_v23 = vpop.f32.mrf.mxu3 }
 0x443   : > { %v2898_v45 = vmax.f32 %v2834_v20, 0.0  ;;  %v3203_v33 = vmax.f32 %v3051_v46, 0.0  ;;  %v2203_v51 = vadd.f32 %v6267_v14, %v2202_v23 }
 0x445   : > { %v2286_v53 = vmax.f32 %v2203_v51, 0.0  ;;  %3092 = vmatmul.bf16.gmra.mxu2 %v6311_v25  ;;  %v3264_v24 = vpack.c.bf16 %v3203_v33, %v3202_v1  ;;  %v6404_v55 = vpack.c.bf16 %v2898_v45, %v2897_v19  ;;  %v6407_v59 = vpop.f32.mrf.mxu0  ;;  %v4978_v51 = vld [vmem:[%s7052_s17 + $0x10] sm:$0xff] }
 0x446   : > { %v2722_v38 = vpop.f32.mrf.mxu1  ;;  %4033 = vmatpush.bf16.msra.mxu1 %v4978_v51 }
 0x447   : > { %3380 = vmatmul.bf16.gmra.mxu3 %v3264_v24  ;;  %v2324_v8 = vpack.c.bf16 %v2286_v53, %v2285_v56  ;;  %v2723_v26 = vadd.f32 %v2722_v38, %v6351_v31  ;;  %2564 = vmatmul.bf16.gmra.mxu0 %v5154_v0 }
 0x448   : > { %v3053_v54 = vpop.f32.mrf.mxu2 }
 0x449   : > { %2761 = vmatmul.bf16.gmra.mxu1 %v2324_v8  ;;  %v2835_v62 = vadd.f32 %v6391_v35, %v2723_v26  ;;  %v3054_v25 = vadd.f32 %v6349_v27, %v3053_v54 }
 0x44a   : > { %v2205_v60 = vpop.f32.mrf.mxu3 }
 0x44b   : > { %v2206_v30 = vadd.f32 %v6267_v14, %v2205_v60  ;;  %v2899_v31 = vmax.f32 %v2835_v62, 0.0  ;;  %v3204_v7 = vmax.f32 %v3054_v25, 0.0 }
 0x44d   : > { %v2287_v52 = vmax.f32 %v2206_v30, 0.0  ;;  %v6418_v44 = vpop.f32.mrf.mxu0 }
 0x44e   : > { %v2724_v21 = vpop.f32.mrf.mxu1 }
 0x44f   : > { %v2725_v49 = vadd.f32 %v2724_v21, %v6365_v48 }
 0x450   : > { %v3055_v13 = vpop.f32.mrf.mxu2 }
 0x451   : > { %v2836_v6 = vadd.f32 %v6391_v35, %v2725_v49  ;;  %v3056_v32 = vadd.f32 %v6349_v27, %v3055_v13  ;;  %v5156_v13 = vld [vmem:[%s5706_s2 + $0xf8] sm:$0xff] }
 0x452   : > { %v2207_v5 = vpop.f32.mrf.mxu3 }
 0x453   : > { %v2900_v12 = vmax.f32 %v2836_v6, 0.0  ;;  %v3205_v34 = vmax.f32 %v3056_v32, 0.0  ;;  %v2208_v17 = vadd.f32 %v6267_v14, %v2207_v5 }
 0x455   : > { %v2288_v10 = vmax.f32 %v2208_v17, 0.0  ;;  %3097 = vmatmul.bf16.gmra.mxu2 %v6327_v61  ;;  %v3265_v48 = vpack.c.bf16 %v3205_v34, %v3204_v7  ;;  %v6420_v15 = vpack.c.bf16 %v2900_v12, %v2899_v31  ;;  %v6423_v9 = vpop.f32.mrf.mxu0 }
 0x456   : > { %v2727_v42 = vpop.f32.mrf.mxu1 }
 0x457   : > { %3385 = vmatmul.bf16.gmra.mxu3 %v3265_v48  ;;  %v2325_v16 = vpack.c.bf16 %v2288_v10, %v2287_v52  ;;  %v2728_v18 = vadd.f32 %v2727_v42, %v6370_v28  ;;  %2569 = vmatmul.bf16.gmra.mxu0 %v5155_v29 }
 0x458   : > { %v3058_v50 = vpop.f32.mrf.mxu2 }
 0x459   : > { %2766 = vmatmul.bf16.gmra.mxu1 %v2325_v16  ;;  %v2837_v61 = vadd.f32 %v6391_v35, %v2728_v18  ;;  %v3059_v47 = vadd.f32 %v6349_v27, %v3058_v50 }
 0x45a   : > { %v2210_v36 = vpop.f32.mrf.mxu3 }
 0x45b   : > { %v2211_v57 = vadd.f32 %v6267_v14, %v2210_v36  ;;  %v2901_v2 = vmax.f32 %v2837_v61, 0.0  ;;  %v3206_v46 = vmax.f32 %v3059_v47, 0.0 }
 0x45d   : > { %v2289_v45 = vmax.f32 %v2211_v57, 0.0  ;;  %v6439_v24 = vpop.f32.mrf.mxu0 }
 0x45e   : > { %v2729_v3 = vpop.f32.mrf.mxu1 }
 0x45f   : > { %v2730_v37 = vadd.f32 %v2729_v3, %v6381_v39 }
 0x460   : > { %v3060_v11 = vpop.f32.mrf.mxu2 }
 0x461   : > { %v2838_v40 = vadd.f32 %v6391_v35, %v2730_v37  ;;  %v3061_v28 = vadd.f32 %v6349_v27, %v3060_v11 }
 0x462   : > { %v2212_v20 = vpop.f32.mrf.mxu3 }
 0x463   : > { %v2902_v19 = vmax.f32 %v2838_v40, 0.0  ;;  %v3207_v23 = vmax.f32 %v3061_v28, 0.0  ;;  %v2213_v1 = vadd.f32 %v6267_v14, %v2212_v20 }
 0x465   : > { %v2290_v33 = vmax.f32 %v2213_v1, 0.0  ;;  %3102 = vmatmul.bf16.gmra.mxu2 %v6343_v43  ;;  %v3266_v39 = vpack.c.bf16 %v3207_v23, %v3206_v46  ;;  %v6437_v56 = vpack.c.bf16 %v2902_v19, %v2901_v2  ;;  %v6445_v49 = vpop.f32.mrf.mxu0 }
 0x466   : > { %v2732_v53 = vpop.f32.mrf.mxu1 }
 0x467   : > { %3390 = vmatmul.bf16.gmra.mxu3 %v3266_v39  ;;  %v2326_v38 = vpack.c.bf16 %v2290_v33, %v2289_v45  ;;  %v2733_v54 = vadd.f32 %v2732_v53, %v6386_v63  ;;  %2574 = vmatmul.bf16.gmra.mxu0 %v5156_v13 }
 0x468   : > { %v3063_v8 = vpop.f32.mrf.mxu2 }
 0x469   : > { %2771 = vmatmul.bf16.gmra.mxu1 %v2326_v38  ;;  %v2839_v43 = vadd.f32 %v6391_v35, %v2733_v54  ;;  %v3064_v62 = vadd.f32 %v6349_v27, %v3063_v8 }
 0x46a   : > { %v2215_v26 = vpop.f32.mrf.mxu3 }
 0x46b   : > { %v2216_v0 = vadd.f32 %v6267_v14, %v2215_v26  ;;  %v2903_v63 = vmax.f32 %v2839_v43, 0.0  ;;  %v3208_v31 = vmax.f32 %v3064_v62, 0.0 }
 0x46d   : > { %v2291_v34 = vmax.f32 %v2216_v0, 0.0  ;;  %v6457_v50 = vpop.f32.mrf.mxu0 }
 0x46e   : > { %v2734_v60 = vpop.f32.mrf.mxu1 }
 0x46f   : > { %v2735_v21 = vadd.f32 %v2734_v60, %v6402_v22 }
 0x470   : > { %v3065_v25 = vpop.f32.mrf.mxu2 }
 0x471   : > { %v2840_v30 = vadd.f32 %v6391_v35, %v2735_v21  ;;  %v3066_v6 = vadd.f32 %v6349_v27, %v3065_v25 }
 0x472   : > { %v2217_v32 = vpop.f32.mrf.mxu3 }
 0x473   : > { %v2904_v5 = vmax.f32 %v2840_v30, 0.0  ;;  %v3209_v7 = vmax.f32 %v3066_v6, 0.0  ;;  %v2218_v12 = vadd.f32 %v6267_v14, %v2217_v32 }
 0x475   : > { %v2292_v22 = vmax.f32 %v2218_v12, 0.0  ;;  %3107 = vmatmul.bf16.gmra.mxu2 %v6367_v4  ;;  %v3267_v17 = vpack.c.bf16 %v3209_v7, %v3208_v31  ;;  %v6453_v52 = vpack.c.bf16 %v2904_v5, %v2903_v63  ;;  %v6465_v29 = vpop.f32.mrf.mxu0 }
 0x476   : > { %v6455_v10 = vpop.f32.mrf.mxu1 }
 0x477   : > { %3395 = vmatmul.bf16.gmra.mxu3 %v3267_v17  ;;  %v2327_v48 = vpack.c.bf16 %v2292_v22, %v2291_v34 }
 0x478   : > { %v3068_v42 = vpop.f32.mrf.mxu2 }
 0x479   : > { %2776 = vmatmul.bf16.gmra.mxu1 %v2327_v48  ;;  %v3069_v36 = vadd.f32 %v6349_v27, %v3068_v42  ;;  %v4977_v48 = vld [vmem:[%s7052_s17 + $0x8] sm:$0xff] }
 0x47a   : > { %v2220_v16 = vpop.f32.mrf.mxu3  ;;  %4034 = vmatpush.bf16.msra.mxu1 %v4977_v48 }
 0x47b   : > { %v2221_v61 = vadd.f32 %v6267_v14, %v2220_v16  ;;  %v3210_v47 = vmax.f32 %v3069_v36, 0.0 }
 0x47d   : > { %v2293_v57 = vmax.f32 %v2221_v61, 0.0  ;;  %v6472_v1 = vpop.f32.mrf.mxu0 }
 0x47e   : > { %v6459_v18 = vpop.f32.mrf.mxu1 }
 0x480   : > { %v3070_v58 = vpop.f32.mrf.mxu2 }
 0x481   : > { %v3071_v4 = vadd.f32 %v6349_v27, %v3070_v58 }
 0x482   : > { %v2222_v3 = vpop.f32.mrf.mxu3 }
 0x483   : > { %v3211_v37 = vmax.f32 %v3071_v4, 0.0  ;;  %v2223_v11 = vadd.f32 %v6267_v14, %v2222_v3 }
 0x485   : > { %v2294_v40 = vmax.f32 %v2223_v11, 0.0  ;;  %3112 = vmatmul.bf16.gmra.mxu2 %v6383_v41  ;;  %v3268_v28 = vpack.c.bf16 %v3211_v37, %v3210_v47  ;;  %v6481_v25 = vpop.f32.mrf.mxu0 }
 0x486   : > { %v6468_v2 = vpop.f32.mrf.mxu1 }
 0x487   : > { %3400 = vmatmul.bf16.gmra.mxu3 %v3268_v28  ;;  %v2328_v20 = vpack.c.bf16 %v2294_v40, %v2293_v57 }
 0x488   : > { %v3073_v46 = vpop.f32.mrf.mxu2 }
 0x489   : > { %2781 = vmatmul.bf16.gmra.mxu1 %v2328_v20  ;;  %v3074_v45 = vadd.f32 %v6349_v27, %v3073_v46 }
 0x48a   : > { %v2225_v19 = vpop.f32.mrf.mxu3 }
 0x48b   : > { %v2226_v39 = vadd.f32 %v6267_v14, %v2225_v19  ;;  %v3212_v53 = vmax.f32 %v3074_v45, 0.0 }
 0x48d   : > { %v2295_v54 = vmax.f32 %v2226_v39, 0.0  ;;  %v6488_v31 = vpop.f32.mrf.mxu0 }
 0x48e   : > { %v6470_v23 = vpop.f32.mrf.mxu1 }
 0x490   : > { %v3075_v33 = vpop.f32.mrf.mxu2 }
 0x491   : > { %v3076_v51 = vadd.f32 %v6349_v27, %v3075_v33 }
 0x492   : > { %v2227_v41 = vpop.f32.mrf.mxu3 }
 0x493   : > { %v3213_v38 = vmax.f32 %v3076_v51, 0.0  ;;  %v2228_v8 = vadd.f32 %v6267_v14, %v2227_v41 }
 0x495   : > { %v2296_v26 = vmax.f32 %v2228_v8, 0.0  ;;  %3117 = vmatmul.bf16.gmra.mxu2 %v6404_v55  ;;  %v3269_v43 = vpack.c.bf16 %v3213_v38, %v3212_v53  ;;  %v6497_v61 = vpop.f32.mrf.mxu0 }
 0x496   : > { %v6479_v60 = vpop.f32.mrf.mxu1 }
 0x497   : > { %3405 = vmatmul.bf16.gmra.mxu3 %v3269_v43  ;;  %v2329_v62 = vpack.c.bf16 %v2296_v26, %v2295_v54 }
 0x498   : > { %v3078_v21 = vpop.f32.mrf.mxu2 }
 0x499   : > { %2786 = vmatmul.bf16.gmra.mxu1 %v2329_v62  ;;  %v3079_v30 = vadd.f32 %v6349_v27, %v3078_v21 }
 0x49a   : > { %v2230_v13 = vpop.f32.mrf.mxu3 }
 0x49b   : > { %v2231_v63 = vadd.f32 %v6267_v14, %v2230_v13  ;;  %v3214_v5 = vmax.f32 %v3079_v30, 0.0 }
 0x49d   : > { %v2297_v34 = vmax.f32 %v2231_v63, 0.0  ;;  %v6513_v33 = vpop.f32.mrf.mxu0 }
 0x49e   : > { %v6483_v0 = vpop.f32.mrf.mxu1 }
 0x4a0   : > { %v3080_v6 = vpop.f32.mrf.mxu2 }
 0x4a1   : > { %v3081_v32 = vadd.f32 %v6349_v27, %v3080_v6 }
 0x4a2   : > { %v2232_v55 = vpop.f32.mrf.mxu3 }
 0x4a3   : > { %v3215_v7 = vmax.f32 %v3081_v32, 0.0  ;;  %v2233_v12 = vadd.f32 %v6267_v14, %v2232_v55  ;;  %v6502_v14 = vld [vmem:[%s7090_s25] ss:$0 sm:$0xff]  ;;  %v2740_v55 = vadd.f32 %v6459_v18, %v6418_v44 }
 0x4a5   : > { %v2298_v22 = vmax.f32 %v2233_v12, 0.0  ;;  %3122 = vmatmul.bf16.gmra.mxu2 %v6420_v15  ;;  %v3270_v17 = vpack.c.bf16 %v3215_v7, %v3214_v5  ;;  %v6518_v54 = vpop.f32.mrf.mxu0  ;;  %v2738_v12 = vadd.f32 %v6455_v10, %v6407_v59 }
 0x4a6   : > { %v6495_v42 = vpop.f32.mrf.mxu1 }
 0x4a7   : > { %3410 = vmatmul.bf16.gmra.mxu3 %v3270_v17  ;;  %v2330_v16 = vpack.c.bf16 %v2298_v22, %v2297_v34  ;;  %v2842_v17 = vadd.f32 %v6391_v35, %v2740_v55 }
 0x4a8   : > { %v3083_v36 = vpop.f32.mrf.mxu2 }
 0x4a9   : > { %2791 = vmatmul.bf16.gmra.mxu1 %v2330_v16  ;;  %v3084_v4 = vadd.f32 %v6349_v27, %v3083_v36  ;;  %v2906_v16 = vmax.f32 %v2842_v17, 0.0  ;;  %v2750_v17 = vadd.f32 %v6483_v0, %v6457_v50 }
 0x4aa   : > { %v3371_v58 = vpop.f32.mrf.mxu3 }
 0x4ab   : > { %v3372_v47 = vadd.f32 %v6502_v14, %v3371_v58  ;;  %v3216_v57 = vmax.f32 %v3084_v4, 0.0 }
 0x4ad   : > { %v3531_v20 = vmax.f32 %v3372_v47, 0.0  ;;  %v6530_v22 = vpop.f32.mrf.mxu0 }
 0x4ae   : > { %v6504_v15 = vpop.f32.mrf.mxu1 }
 0x4b0   : > { %v3085_v3 = vpop.f32.mrf.mxu2 }
 0x4b1   : > { %v3086_v37 = vadd.f32 %v6349_v27, %v3085_v3 }
 0x4b2   : > { %v3373_v11 = vpop.f32.mrf.mxu3 }
 0x4b3   : > { %v3217_v40 = vmax.f32 %v3086_v37, 0.0  ;;  %v3374_v28 = vadd.f32 %v6502_v14, %v3373_v11 }
 0x4b5   : > { %v3532_v46 = vmax.f32 %v3374_v28, 0.0  ;;  %3127 = vmatmul.bf16.gmra.mxu2 %v6437_v56  ;;  %v3271_v19 = vpack.c.bf16 %v3217_v40, %v3216_v57  ;;  %v6540_v11 = vpop.f32.mrf.mxu0 }
 0x4b6   : > { %v6511_v45 = vpop.f32.mrf.mxu1 }
 0x4b7   : > { %v3595_v39 = vpack.c.bf16 %v3532_v46, %v3531_v20  ;;  %3415 = vmatmul.bf16.gmra.mxu3 %v3271_v19  ;;  %v2745_v46 = vadd.f32 %v6470_v23, %v6439_v24 }
 0x4b8   : > { %v3088_v51 = vpop.f32.mrf.mxu2 }
 0x4b9   : > { %3703 = vmatmul.bf16.vlgmr.msra.gmra.mxu0 %v3595_v39  ;;  %v3089_v38 = vadd.f32 %v6349_v27, %v3088_v51  ;;  %v2743_v51 = vadd.f32 %v6468_v2, %v6423_v9 }
 0x4ba   : > { %v3376_v41 = vpop.f32.mrf.mxu3 }
 0x4bb   : > { %v3377_v26 = vadd.f32 %v6502_v14, %v3376_v41  ;;  %v3218_v62 = vmax.f32 %v3089_v38, 0.0  ;;  %v2844_v38 = vadd.f32 %v6391_v35, %v2745_v46 }
 0x4bd   : > { %v3533_v30 = vmax.f32 %v3377_v26, 0.0 }
 0x4be   : > { %v6515_v53 = vpop.f32.mrf.mxu1 }
 0x4c0   : > { %v3090_v8 = vpop.f32.mrf.mxu2 }
 0x4c1   : > { %v3091_v56 = vadd.f32 %v6349_v27, %v3090_v8  ;;  %v2843_v8 = vadd.f32 %v6391_v35, %v2743_v51 }
 0x4c2   : > { %v3378_v43 = vpop.f32.mrf.mxu3 }
 0x4c3   : > { %v3219_v21 = vmax.f32 %v3091_v56, 0.0  ;;  %v3379_v13 = vadd.f32 %v6502_v14, %v3378_v43  ;;  %v6552_v56 = vpop.f32.mrf.mxu0  ;;  %v2908_v43 = vmax.f32 %v2844_v38, 0.0  ;;  %v2907_v23 = vmax.f32 %v2843_v8, 0.0 }
 0x4c4   : > { %v2755_v38 = vadd.f32 %v6504_v15, %v6472_v1 }
 0x4c5   : > { %v3534_v6 = vmax.f32 %v3379_v13, 0.0  ;;  %3132 = vmatmul.bf16.gmra.mxu2 %v6453_v52  ;;  %v3272_v63 = vpack.c.bf16 %v3219_v21, %v3218_v62  ;;  %v2841_v52 = vadd.f32 %v6391_v35, %v2738_v12  ;;  %v4976_v12 = vld [vmem:[%s7052_s17] sm:$0xff] }
 0x4c6   : > { %v6524_v32 = vpop.f32.mrf.mxu1  ;;  %4035 = vmatpush.bf16.msra.mxu1 %v4976_v12 }
 0x4c7   : > { %3420 = vmatmul.bf16.gmra.mxu3 %v3272_v63  ;;  %v3596_v5 = vpack.c.bf16 %v3534_v6, %v3533_v30  ;;  %v2905_v18 = vmax.f32 %v2841_v52, 0.0  ;;  %v2950_v63 = vpack.c.bf16 %v2908_v43, %v2907_v23  ;;  %v2848_v23 = vadd.f32 %v6391_v35, %v2755_v38 }
 0x4c8   : > { %v3093_v7 = vpop.f32.mrf.mxu2 }
 0x4c9   : > { %3708 = vmatmul.bf16.gmra.mxu0 %v3596_v5  ;;  %v3094_v36 = vadd.f32 %v6349_v27, %v3093_v7  ;;  %v2949_v37 = vpack.c.bf16 %v2906_v16, %v2905_v18 }
 0x4ca   : > { %v3381_v34 = vpop.f32.mrf.mxu3 }
 0x4cb   : > { %v3382_v58 = vadd.f32 %v6502_v14, %v3381_v34  ;;  %v3220_v10 = vmax.f32 %v3094_v36, 0.0  ;;  %v6565_v36 = vpop.f32.mrf.mxu0 }
 0x4cd   : > { %v3535_v57 = vmax.f32 %v3382_v58, 0.0  ;;  %v2846_v58 = vadd.f32 %v6391_v35, %v2750_v17 }
 0x4ce   : > { %v6534_v48 = vpop.f32.mrf.mxu1 }
 0x4d0   : > { %v3095_v44 = vpop.f32.mrf.mxu2 }
 0x4d1   : > { %v3096_v4 = vadd.f32 %v6349_v27, %v3095_v44  ;;  %v2748_v44 = vadd.f32 %v6479_v60, %v6445_v49 }
 0x4d2   : > { %v3383_v59 = vpop.f32.mrf.mxu3 }
 0x4d3   : > { %v3221_v3 = vmax.f32 %v3096_v4, 0.0  ;;  %v3384_v47 = vadd.f32 %v6502_v14, %v3383_v59  ;;  %v2845_v4 = vadd.f32 %v6391_v35, %v2748_v44 }
 0x4d5   : > { %v3536_v40 = vmax.f32 %v3384_v47, 0.0  ;;  %3137 = vmatmul.bf16.gmra.mxu2 %v2949_v37  ;;  %v3273_v28 = vpack.c.bf16 %v3221_v3, %v3220_v10  ;;  %v2910_v10 = vmax.f32 %v2846_v58, 0.0  ;;  %v2909_v3 = vmax.f32 %v2845_v4, 0.0 }
 0x4d6   : > { %v6542_v20 = vpop.f32.mrf.mxu1 }
 0x4d7   : > { %3425 = vmatmul.bf16.gmra.mxu3 %v3273_v28  ;;  %v3597_v19 = vpack.c.bf16 %v3536_v40, %v3535_v57  ;;  %v6576_v40 = vpop.f32.mrf.mxu0  ;;  %v2951_v46 = vpack.c.bf16 %v2910_v10, %v2909_v3  ;;  %v2758_v10 = vadd.f32 %v6511_v45, %v6481_v25 }
 0x4d8   : > { %v3098_v39 = vpop.f32.mrf.mxu2 }
 0x4d9   : > { %3713 = vmatmul.bf16.gmra.mxu0 %v3597_v19  ;;  %v3099_v62 = vadd.f32 %v6349_v27, %v3098_v39  ;;  %v2849_v3 = vadd.f32 %v6391_v35, %v2758_v10 }
 0x4da   : > { %v3386_v41 = vpop.f32.mrf.mxu3 }
 0x4db   : > { %v3387_v21 = vadd.f32 %v6502_v14, %v3386_v41  ;;  %v3222_v2 = vmax.f32 %v3099_v62, 0.0  ;;  %v2753_v62 = vadd.f32 %v6495_v42, %v6465_v29 }
 0x4dd   : > { %v3537_v55 = vmax.f32 %v3387_v21, 0.0 }
 0x4de   : > { %v6550_v26 = vpop.f32.mrf.mxu1 }
 0x4df   : > { %v6586_v21 = vpop.f32.mrf.mxu0 }
 0x4e0   : > { %v3100_v24 = vpop.f32.mrf.mxu2 }
 0x4e1   : > { %v3101_v13 = vadd.f32 %v6349_v27, %v3100_v24 }
 0x4e2   : > { %v3388_v9 = vpop.f32.mrf.mxu3 }
 0x4e3   : > { %v3223_v30 = vmax.f32 %v3101_v13, 0.0  ;;  %v3389_v6 = vadd.f32 %v6502_v14, %v3388_v9  ;;  %v2847_v13 = vadd.f32 %v6391_v35, %v2753_v62  ;;  %v2765_v62 = vadd.f32 %v6534_v48, %v6513_v33 }
 0x4e5   : > { %v3538_v5 = vmax.f32 %v3389_v6, 0.0  ;;  %3142 = vmatmul.bf16.gmra.mxu2 %v2950_v63  ;;  %v3274_v7 = vpack.c.bf16 %v3223_v30, %v3222_v2  ;;  %v2912_v2 = vmax.f32 %v2848_v23, 0.0  ;;  %v2911_v15 = vmax.f32 %v2847_v13, 0.0 }
 0x4e6   : > { %v6561_v34 = vpop.f32.mrf.mxu1  ;;  %v2763_v13 = vadd.f32 %v6524_v32, %v6497_v61 }
 0x4e7   : > { %3430 = vmatmul.bf16.gmra.mxu3 %v3274_v7  ;;  %v3598_v52 = vpack.c.bf16 %v3538_v5, %v3537_v55  ;;  %v2952_v7 = vpack.c.bf16 %v2912_v2, %v2911_v15 }
 0x4e8   : > { %v3103_v16 = vpop.f32.mrf.mxu2  ;;  %v2851_v15 = vadd.f32 %v6391_v35, %v2763_v13 }
 0x4e9   : > { %3718 = vmatmul.bf16.gmra.mxu0 %v3598_v52  ;;  %v3104_v50 = vadd.f32 %v6349_v27, %v3103_v16  ;;  %v6595_v16 = vpop.f32.mrf.mxu0 }
 0x4ea   : > { %v3391_v18 = vpop.f32.mrf.mxu3  ;;  %v2915_v48 = vmax.f32 %v2851_v15, 0.0 }
 0x4eb   : > { %v3392_v47 = vadd.f32 %v6502_v14, %v3391_v18  ;;  %v3224_v49 = vmax.f32 %v3104_v50, 0.0  ;;  %v2760_v18 = vadd.f32 %v6515_v53, %v6488_v31  ;;  %v2913_v53 = vmax.f32 %v2849_v3, 0.0 }
 0x4ed   : > { %v3539_v19 = vmax.f32 %v3392_v47, 0.0 }
 0x4ee   : > { %v6571_v59 = vpop.f32.mrf.mxu1 }
 0x4f0   : > { %v3105_v0 = vpop.f32.mrf.mxu2 }
 0x4f1   : > { %v3106_v37 = vadd.f32 %v6349_v27, %v3105_v0  ;;  %v2850_v0 = vadd.f32 %v6391_v35, %v2760_v18 }
 0x4f2   : > { %v3393_v57 = vpop.f32.mrf.mxu3 }
 0x4f3   : > { %v3225_v60 = vmax.f32 %v3106_v37, 0.0  ;;  %v3394_v28 = vadd.f32 %v6502_v14, %v3393_v57  ;;  %v2914_v37 = vmax.f32 %v2850_v0, 0.0  ;;  %v2768_v0 = vadd.f32 %v6542_v20, %v6518_v54 }
 0x4f5   : > { %v3540_v39 = vmax.f32 %v3394_v28, 0.0  ;;  %3147 = vmatmul.bf16.gmra.mxu2 %v2951_v46  ;;  %v3275_v51 = vpack.c.bf16 %v3225_v60, %v3224_v49  ;;  %v6608_v49 = vpop.f32.mrf.mxu0 }
 0x4f6   : > { %v6579_v41 = vpop.f32.mrf.mxu1 }
 0x4f7   : > { %3435 = vmatmul.bf16.gmra.mxu3 %v3275_v51  ;;  %v3599_v8 = vpack.c.bf16 %v3540_v39, %v3539_v19  ;;  %v2953_v39 = vpack.c.bf16 %v2914_v37, %v2913_v53  ;;  %v2853_v53 = vadd.f32 %v6391_v35, %v2768_v0 }
 0x4f8   : > { %v3108_v43 = vpop.f32.mrf.mxu2 }
 0x4f9   : > { %3723 = vmatmul.bf16.gmra.mxu0 %v3599_v8  ;;  %v3109_v30 = vadd.f32 %v6349_v27, %v3108_v43 }
 0x4fa   : > { %v3396_v24 = vpop.f32.mrf.mxu3 }
 0x4fb   : > { %v3397_v6 = vadd.f32 %v6502_v14, %v3396_v24  ;;  %v3226_v42 = vmax.f32 %v3109_v30, 0.0 }
 0x4fd   : > { %v3541_v12 = vmax.f32 %v3397_v6, 0.0  ;;  %v6619_v2 = vpop.f32.mrf.mxu0 }
 0x4fe   : > { %v6589_v9 = vpop.f32.mrf.mxu1 }
 0x500   : > { %v3110_v1 = vpop.f32.mrf.mxu2 }
 0x501   : > { %v3111_v63 = vadd.f32 %v6349_v27, %v3110_v1  ;;  %v2852_v1 = vadd.f32 %v6391_v35, %v2765_v62 }
 0x502   : > { %v3398_v29 = vpop.f32.mrf.mxu3 }
 0x503   : > { %v3227_v55 = vmax.f32 %v3111_v63, 0.0  ;;  %v3399_v5 = vadd.f32 %v6502_v14, %v3398_v29  ;;  %v2916_v63 = vmax.f32 %v2852_v1, 0.0 }
 0x505   : > { %v3542_v17 = vmax.f32 %v3399_v5, 0.0  ;;  %3152 = vmatmul.bf16.gmra.mxu2 %v2952_v7  ;;  %v3276_v52 = vpack.c.bf16 %v3227_v55, %v3226_v42 }
 0x506   : > { %v6597_v44 = vpop.f32.mrf.mxu1 }
 0x507   : > { %3440 = vmatmul.bf16.gmra.mxu3 %v3276_v52  ;;  %v3600_v58 = vpack.c.bf16 %v3542_v17, %v3541_v12  ;;  %v2954_v12 = vpack.c.bf16 %v2916_v63, %v2915_v48  ;;  %v2575_v17 = vpop.f32.mrf.mxu0 }
 0x508   : > { %v3113_v4 = vpop.f32.mrf.mxu2 }
 0x509   : > { %3728 = vmatmul.bf16.gmra.mxu0 %v3600_v58  ;;  %v3114_v57 = vadd.f32 %v6349_v27, %v3113_v4  ;;  %v2770_v4 = vadd.f32 %v6550_v26, %v6530_v22 }
 0x50a   : > { %v3401_v50 = vpop.f32.mrf.mxu3 }
 0x50b   : > { %v3402_v60 = vadd.f32 %v6502_v14, %v3401_v50  ;;  %v3228_v45 = vmax.f32 %v3114_v57, 0.0  ;;  %v2854_v37 = vadd.f32 %v6391_v35, %v2770_v4 }
 0x50d   : > { %v3543_v51 = vmax.f32 %v3402_v60, 0.0  ;;  %v2918_v60 = vmax.f32 %v2854_v37, 0.0 }
 0x50e   : > { %v6605_v47 = vpop.f32.mrf.mxu1 }
 0x510   : > { %v3115_v31 = vpop.f32.mrf.mxu2 }
 0x511   : > { %v3116_v28 = vadd.f32 %v6349_v27, %v3115_v31 }
 0x512   : > { %v3403_v25 = vpop.f32.mrf.mxu3 }
 0x513   : > { %v3229_v46 = vmax.f32 %v3116_v28, 0.0  ;;  %v3404_v19 = vadd.f32 %v6502_v14, %v3403_v25  ;;  %v2577_v28 = vpop.f32.mrf.mxu0 }
 0x515   : > { %v3544_v38 = vmax.f32 %v3404_v19, 0.0  ;;  %3157 = vmatmul.bf16.gmra.mxu2 %v2953_v39  ;;  %v3277_v8 = vpack.c.bf16 %v3229_v46, %v3228_v45  ;;  %v2917_v46 = vmax.f32 %v2853_v53, 0.0 }
 0x516   : > { %v6613_v43 = vpop.f32.mrf.mxu1 }
 0x517   : > { %3445 = vmatmul.bf16.gmra.mxu3 %v3277_v8  ;;  %v3601_v24 = vpack.c.bf16 %v3544_v38, %v3543_v51  ;;  %v2955_v8 = vpack.c.bf16 %v2918_v60, %v2917_v46 }
 0x518   : > { %v3118_v23 = vpop.f32.mrf.mxu2 }
 0x519   : > { %3733 = vmatmul.bf16.gmra.mxu0 %v3601_v24  ;;  %v3119_v29 = vadd.f32 %v6349_v27, %v3118_v23 }
 0x51a   : > { %v3406_v30 = vpop.f32.mrf.mxu3 }
 0x51b   : > { %v3407_v42 = vadd.f32 %v6502_v14, %v3406_v30  ;;  %v3230_v32 = vmax.f32 %v3119_v29, 0.0  ;;  %v2775_v29 = vadd.f32 %v6571_v59, %v6552_v56 }
 0x51d   : > { %v3545_v52 = vmax.f32 %v3407_v42, 0.0  ;;  %v2773_v42 = vadd.f32 %v6561_v34, %v6540_v11 }
 0x51e   : > { %v6623_v6 = vpop.f32.mrf.mxu1 }
 0x520   : > { %v3120_v33 = vpop.f32.mrf.mxu2 }
 0x521   : > { %v3121_v55 = vadd.f32 %v6349_v27, %v3120_v33 }
 0x522   : > { %v3408_v61 = vpop.f32.mrf.mxu3 }
 0x523   : > { %v3231_v5 = vmax.f32 %v3121_v55, 0.0  ;;  %v3409_v7 = vadd.f32 %v6502_v14, %v3408_v61  ;;  %v6650_v61 = vld [vmem:[%s7091_s18] ss:$0 sm:$0xff] }
 0x525   : > { %v3546_v18 = vmax.f32 %v3409_v7, 0.0  ;;  %3162 = vmatmul.bf16.gmra.mxu2 %v2954_v12  ;;  %v3278_v58 = vpack.c.bf16 %v3231_v5, %v3230_v32  ;;  %v2856_v32 = vadd.f32 %v6391_v35, %v2775_v29  ;;  %v2855_v7 = vadd.f32 %v6391_v35, %v2773_v42 }
 0x526   : > { %v2792_v10 = vpop.f32.mrf.mxu1 }
 0x527   : > { %3450 = vmatmul.bf16.gmra.mxu3 %v3278_v58  ;;  %v3602_v50 = vpack.c.bf16 %v3546_v18, %v3545_v52  ;;  %v2793_v57 = vadd.f32 %v2792_v10, %v2575_v17  ;;  %v2920_v59 = vmax.f32 %v2856_v32, 0.0  ;;  %v2919_v34 = vmax.f32 %v2855_v7, 0.0 }
 0x528   : > { %v3123_v3 = vpop.f32.mrf.mxu2  ;;  %v2785_v32 = vadd.f32 %v6605_v47, %v6595_v16 }
 0x529   : > { %3738 = vmatmul.bf16.gmra.mxu0 %v3602_v50  ;;  %v2863_v25 = vadd.f32 %v6391_v35, %v2793_v57  ;;  %v3124_v22 = vadd.f32 %v6349_v27, %v3123_v3  ;;  %v2956_v0 = vpack.c.bf16 %v2920_v59, %v2919_v34 }
 0x52a   : > { %v3411_v31 = vpop.f32.mrf.mxu3 }
 0x52b   : > { %v3412_v54 = vadd.f32 %v6502_v14, %v3411_v31  ;;  %v2927_v51 = vmax.f32 %v2863_v25, 0.0  ;;  %v3232_v62 = vmax.f32 %v3124_v22, 0.0  ;;  %v2780_v25 = vadd.f32 %v6589_v9, %v6576_v40  ;;  %v6670_v40 = vld [vmem:[%s7047_s12] ss:$0 sm:$0xff] }
 0x52d   : > { %v3547_v30 = vmax.f32 %v3412_v54, 0.0  ;;  %v2858_v46 = vadd.f32 %v6391_v35, %v2780_v25  ;;  %v2790_v25 = vadd.f32 %v6623_v6, %v6619_v2 }
 0x52e   : > { %v2794_v45 = vpop.f32.mrf.mxu1 }
 0x52f   : > { %v2795_v26 = vadd.f32 %v2794_v45, %v2577_v28 }
 0x530   : > { %v3125_v19 = vpop.f32.mrf.mxu2 }
 0x531   : > { %v2864_v20 = vadd.f32 %v6391_v35, %v2795_v26  ;;  %v3126_v39 = vadd.f32 %v6349_v27, %v3125_v19 }
 0x532   : > { %v3413_v38 = vpop.f32.mrf.mxu3 }
 0x533   : > { %v2928_v24 = vmax.f32 %v2864_v20, 0.0  ;;  %v3233_v23 = vmax.f32 %v3126_v39, 0.0  ;;  %v3414_v13 = vadd.f32 %v6502_v14, %v3413_v38  ;;  %v2922_v39 = vmax.f32 %v2858_v46, 0.0  ;;  %v5158_v46 = vld [vmem:[%s7045_s10] ss:$0 sm:$0xff] }
 0x535   : > { %v3548_v1 = vmax.f32 %v3414_v13, 0.0  ;;  %3167 = vmatmul.bf16.gmra.mxu2 %v2955_v8  ;;  %v3279_v15 = vpack.c.bf16 %v3233_v23, %v3232_v62  ;;  %v6641_v63 = vpack.c.bf16 %v2928_v24, %v2927_v51 }
 0x536   : > { %v3704_v33 = vpop.f32.mrf.mxu0 }
 0x537   : > { %3455 = vmatmul.bf16.gmra.mxu3 %v3279_v15  ;;  %v3603_v48 = vpack.c.bf16 %v3548_v1, %v3547_v30  ;;  %v3705_v56 = vadd.f32 %v6650_v61, %v3704_v33 }
 0x538   : > { %v3128_v55 = vpop.f32.mrf.mxu2 }
 0x539   : > { %3743 = vmatmul.bf16.gmra.mxu0 %v3603_v48  ;;  %v3129_v17 = vadd.f32 %v6349_v27, %v3128_v55  ;;  %v3864_v18 = vmax.f32 %v3705_v56, 0.0  ;;  %v2783_v56 = vadd.f32 %v6597_v44, %v6586_v21 }
 0x53a   : > { %v3416_v5 = vpop.f32.mrf.mxu3 }
 0x53b   : > { %v3417_v58 = vadd.f32 %v6502_v14, %v3416_v5  ;;  %v3234_v3 = vmax.f32 %v3129_v17, 0.0 }
 0x53d   : > { %v3549_v53 = vmax.f32 %v3417_v58, 0.0 }
 0x53e   : > { %v3706_v12 = vpop.f32.mrf.mxu0 }
 0x53f   : > { %v3707_v11 = vadd.f32 %v6650_v61, %v3706_v12  ;;  %v2860_v12 = vadd.f32 %v6391_v35, %v2785_v32 }
 0x540   : > { %v3130_v52 = vpop.f32.mrf.mxu2 }
 0x541   : > { %v3865_v4 = vmax.f32 %v3707_v11, 0.0  ;;  %v3131_v10 = vadd.f32 %v6349_v27, %v3130_v52  ;;  %v2778_v27 = vadd.f32 %v6579_v41, %v6565_v36  ;;  %v2859_v11 = vadd.f32 %v6391_v35, %v2783_v56 }
 0x542   : > { %v3418_v50 = vpop.f32.mrf.mxu3  ;;  %v2924_v52 = vmax.f32 %v2860_v12, 0.0 }
 0x543   : > { %v3928_v37 = vpack.c.bf16 %v3865_v4, %v3864_v18  ;;  %v3235_v57 = vmax.f32 %v3131_v10, 0.0  ;;  %v3419_v31 = vadd.f32 %v6502_v14, %v3418_v50  ;;  %v2857_v54 = vadd.f32 %v6391_v35, %v2778_v27 }
 0x544   : > { %v2923_v47 = vmax.f32 %v2859_v11, 0.0  ;;  %v2788_v27 = vadd.f32 %v6613_v43, %v6608_v49 }
 0x545   : > { %v3550_v60 = vmax.f32 %v3419_v31, 0.0  ;;  %3172 = vmatmul.bf16.gmra.mxu2 %v2956_v0  ;;  %4036 = vmatmul.bf16.vlgmr.msra.gmra.mxu1 %v3928_v37  ;;  %v3280_v28 = vpack.c.bf16 %v3235_v57, %v3234_v3  ;;  %v2921_v41 = vmax.f32 %v2857_v54, 0.0 }
 0x546   : > { %v3709_v45 = vpop.f32.mrf.mxu0  ;;  %v2958_v3 = vpack.c.bf16 %v2924_v52, %v2923_v47 }
 0x547   : > { %3460 = vmatmul.bf16.gmra.mxu3 %v3280_v28  ;;  %v3604_v22 = vpack.c.bf16 %v3550_v60, %v3549_v53  ;;  %v3710_v20 = vadd.f32 %v6650_v61, %v3709_v45  ;;  %v2957_v30 = vpack.c.bf16 %v2922_v39, %v2921_v41 }
 0x548   : > { %v3133_v26 = vpop.f32.mrf.mxu2 }
 0x549   : > { %3748 = vmatmul.bf16.gmra.mxu0 %v3604_v22  ;;  %v3134_v9 = vadd.f32 %v6670_v40, %v3133_v26  ;;  %v3866_v8 = vmax.f32 %v3710_v20, 0.0  ;;  %v2861_v20 = vadd.f32 %v5158_v46, %v2788_v27 }
 0x54a   : > { %v3421_v19 = vpop.f32.mrf.mxu3 }
 0x54b   : > { %v3422_v62 = vadd.f32 %v6502_v14, %v3421_v19  ;;  %v3236_v1 = vmax.f32 %v3134_v9, 0.0  ;;  %v2862_v19 = vadd.f32 %v5158_v46, %v2790_v25 }
 0x54d   : > { %v3551_v48 = vmax.f32 %v3422_v62, 0.0 }
 0x54e   : > { %v3711_v51 = vpop.f32.mrf.mxu0 }
 0x54f   : > { %v3712_v36 = vadd.f32 %v6650_v61, %v3711_v51  ;;  %v2926_v51 = vmax.f32 %v2862_v19, 0.0 }
 0x550   : > { %v3135_v38 = vpop.f32.mrf.mxu2 }
 0x551   : > { %v3867_v24 = vmax.f32 %v3712_v36, 0.0  ;;  %v3136_v23 = vadd.f32 %v6670_v40, %v3135_v38  ;;  %v2925_v36 = vmax.f32 %v2861_v20, 0.0 }
 0x552   : > { %v3423_v13 = vpop.f32.mrf.mxu3 }
 0x553   : > { %v3237_v15 = vmax.f32 %v3136_v23, 0.0  ;;  %v3424_v29 = vadd.f32 %v6502_v14, %v3423_v13  ;;  %v3929_v33 = vpack.c.bf16 %v3867_v24, %v3866_v8  ;;  %v2959_v24 = vpack.c.bf16 %v2926_v51, %v2925_v36 }
 0x555   : > { %v3552_v42 = vmax.f32 %v3424_v29, 0.0  ;;  %3177 = vmatmul.bf16.gmra.mxu2 %v2957_v30  ;;  %4041 = vmatmul.bf16.gmra.mxu1 %v3929_v33  ;;  %v3281_v55 = vpack.c.bf16 %v3237_v15, %v3236_v1 }
 0x556   : > { %v3714_v5 = vpop.f32.mrf.mxu0 }
 0x557   : > { %3465 = vmatmul.bf16.gmra.mxu3 %v3281_v55  ;;  %v3605_v7 = vpack.c.bf16 %v3552_v42, %v3551_v48  ;;  %v3715_v34 = vadd.f32 %v6650_v61, %v3714_v5 }
 0x558   : > { %v3138_v59 = vpop.f32.mrf.mxu2 }
 0x559   : > { %3753 = vmatmul.bf16.gmra.mxu0 %v3605_v7  ;;  %v3139_v58 = vadd.f32 %v6670_v40, %v3138_v59  ;;  %v3868_v10 = vmax.f32 %v3715_v34, 0.0 }
 0x55a   : > { %v3426_v17 = vpop.f32.mrf.mxu3 }
 0x55b   : > { %v3427_v21 = vadd.f32 %v6502_v14, %v3426_v17  ;;  %v3238_v37 = vmax.f32 %v3139_v58, 0.0 }
 0x55d   : > { %v3553_v53 = vmax.f32 %v3427_v21, 0.0 }
 0x55e   : > { %v3716_v18 = vpop.f32.mrf.mxu0 }
 0x55f   : > { %v3717_v16 = vadd.f32 %v6650_v61, %v3716_v18 }
 0x560   : > { %v3140_v4 = vpop.f32.mrf.mxu2 }
 0x561   : > { %v3869_v44 = vmax.f32 %v3717_v16, 0.0  ;;  %v3141_v50 = vadd.f32 %v6670_v40, %v3140_v4 }
 0x562   : > { %v3428_v0 = vpop.f32.mrf.mxu3 }
 0x563   : > { %v3239_v35 = vmax.f32 %v3141_v50, 0.0  ;;  %v3429_v57 = vadd.f32 %v6502_v14, %v3428_v0  ;;  %v3930_v31 = vpack.c.bf16 %v3869_v44, %v3868_v10 }
 0x565   : > { %v3282_v60 = vpack.c.bf16 %v3239_v35, %v3238_v37  ;;  %v3554_v28 = vmax.f32 %v3429_v57, 0.0  ;;  %3182 = vmatmul.bf16.gmra.mxu2 %v2958_v3  ;;  %4046 = vmatmul.bf16.gmra.mxu1 %v3930_v31 }
 0x566   : > { %v3719_v45 = vpop.f32.mrf.mxu0 }
 0x567   : > { %3470 = vmatmul.bf16.gmra.mxu3 %v3282_v60  ;;  %v3606_v22 = vpack.c.bf16 %v3554_v28, %v3553_v53  ;;  %v3720_v39 = vadd.f32 %v6650_v61, %v3719_v45 }
 0x568   : > { %v3143_v26 = vpop.f32.mrf.mxu2 }
 0x569   : > { %3758 = vmatmul.bf16.gmra.mxu0 %v3606_v22  ;;  %v3144_v2 = vadd.f32 %v6670_v40, %v3143_v26  ;;  %v3870_v49 = vmax.f32 %v3720_v39, 0.0 }
 0x56a   : > { %v3431_v54 = vpop.f32.mrf.mxu3 }
 0x56b   : > { %v3432_v43 = vadd.f32 %v6502_v14, %v3431_v54  ;;  %v3240_v23 = vmax.f32 %v3144_v2, 0.0 }
 0x56d   : > { %v3555_v15 = vmax.f32 %v3432_v43, 0.0 }
 0x56e   : > { %v3721_v9 = vpop.f32.mrf.mxu0 }
 0x56f   : > { %v3722_v6 = vadd.f32 %v6650_v61, %v3721_v9 }
 0x570   : > { %v3145_v41 = vpop.f32.mrf.mxu2 }
 0x571   : > { %v3871_v38 = vmax.f32 %v3722_v6, 0.0  ;;  %v3146_v8 = vadd.f32 %v6670_v40, %v3145_v41 }
 0x572   : > { %v3433_v62 = vpop.f32.mrf.mxu3 }
 0x573   : > { %v3241_v13 = vmax.f32 %v3146_v8, 0.0  ;;  %v3434_v30 = vadd.f32 %v6502_v14, %v3433_v62  ;;  %v3931_v1 = vpack.c.bf16 %v3871_v38, %v3870_v49 }
 0x575   : > { %v3283_v29 = vpack.c.bf16 %v3241_v13, %v3240_v23  ;;  %v3556_v33 = vmax.f32 %v3434_v30, 0.0  ;;  %3187 = vmatmul.bf16.gmra.mxu2 %v2959_v24  ;;  %4051 = vmatmul.bf16.gmra.mxu1 %v3931_v1 }
 0x576   : > { %v3724_v48 = vpop.f32.mrf.mxu0 }
 0x577   : > { %3475 = vmatmul.bf16.gmra.mxu3 %v3283_v29  ;;  %v3607_v42 = vpack.c.bf16 %v3556_v33, %v3555_v15  ;;  %v3725_v5 = vadd.f32 %v6650_v61, %v3724_v48 }
 0x578   : > { %v3148_v55 = vpop.f32.mrf.mxu2 }
 0x579   : > { %3763 = vmatmul.bf16.gmra.mxu0 %v3607_v42  ;;  %v3149_v56 = vadd.f32 %v6670_v40, %v3148_v55  ;;  %v3872_v17 = vmax.f32 %v3725_v5, 0.0 }
 0x57a   : > { %v3436_v32 = vpop.f32.mrf.mxu3 }
 0x57b   : > { %v3437_v11 = vadd.f32 %v6502_v14, %v3436_v32  ;;  %v3242_v58 = vmax.f32 %v3149_v56, 0.0 }
 0x57d   : > { %v3557_v10 = vmax.f32 %v3437_v11, 0.0 }
 0x57e   : > { %v3726_v7 = vpop.f32.mrf.mxu0 }
 0x57f   : > { %v3727_v59 = vadd.f32 %v6650_v61, %v3726_v7 }
 0x580   : > { %v3150_v12 = vpop.f32.mrf.mxu2 }
 0x581   : > { %v3873_v34 = vmax.f32 %v3727_v59, 0.0  ;;  %v3151_v52 = vadd.f32 %v6670_v40, %v3150_v12 }
 0x582   : > { %v3438_v18 = vpop.f32.mrf.mxu3 }
 0x583   : > { %v3243_v16 = vmax.f32 %v3151_v52, 0.0  ;;  %v3439_v47 = vadd.f32 %v6502_v14, %v3438_v18  ;;  %v3932_v4 = vpack.c.bf16 %v3873_v34, %v3872_v17 }
 0x585   : > { %v3284_v21 = vpack.c.bf16 %v3243_v16, %v3242_v58  ;;  %v3558_v44 = vmax.f32 %v3439_v47, 0.0  ;;  %3192 = vmatmul.bf16.gmra.mxu2 %v6641_v63  ;;  %4056 = vmatmul.bf16.gmra.mxu1 %v3932_v4 }
 0x586   : > { %v3729_v50 = vpop.f32.mrf.mxu0 }
 0x587   : > { %3480 = vmatmul.bf16.gmra.mxu3 %v3284_v21  ;;  %v3608_v0 = vpack.c.bf16 %v3558_v44, %v3557_v10  ;;  %v3730_v35 = vadd.f32 %v6650_v61, %v3729_v50 }
 0x588   : > { %v3153_v3 = vpop.f32.mrf.mxu2 }
 0x589   : > { %3768 = vmatmul.bf16.gmra.mxu0 %v3608_v0  ;;  %v3154_v31 = vadd.f32 %v6670_v40, %v3153_v3  ;;  %v3874_v28 = vmax.f32 %v3730_v35, 0.0 }
 0x58a   : > { %v3441_v37 = vpop.f32.mrf.mxu3 }
 0x58b   : > { %v3442_v25 = vadd.f32 %v6502_v14, %v3441_v37  ;;  %v3244_v27 = vmax.f32 %v3154_v31, 0.0 }
 0x58d   : > { %v3559_v54 = vmax.f32 %v3442_v25, 0.0  ;;  %v6735_v25 = vld [vmem:[%s7093_s28] ss:$0 sm:$0xff] }
 0x58e   : > { %v3731_v57 = vpop.f32.mrf.mxu0 }
 0x58f   : > { %v3732_v53 = vadd.f32 %v6650_v61, %v3731_v57 }
 0x590   : > { %v3155_v60 = vpop.f32.mrf.mxu2 }
 0x591   : > { %v3875_v45 = vmax.f32 %v3732_v53, 0.0  ;;  %v3156_v63 = vadd.f32 %v6670_v40, %v3155_v60 }
 0x592   : > { %v3443_v22 = vpop.f32.mrf.mxu3 }
 0x593   : > { %v3245_v26 = vmax.f32 %v3156_v63, 0.0  ;;  %v3444_v46 = vadd.f32 %v6502_v14, %v3443_v22  ;;  %v3933_v19 = vpack.c.bf16 %v3875_v45, %v3874_v28 }
 0x595   : > { %v3285_v20 = vpack.c.bf16 %v3245_v26, %v3244_v27  ;;  %v3560_v39 = vmax.f32 %v3444_v46, 0.0  ;;  %4061 = vmatmul.bf16.gmra.mxu1 %v3933_v19 }
 0x596   : > { %v3734_v51 = vpop.f32.mrf.mxu0 }
 0x597   : > { %3485 = vmatmul.bf16.gmra.mxu3 %v3285_v20  ;;  %v3609_v9 = vpack.c.bf16 %v3560_v39, %v3559_v54  ;;  %v3735_v36 = vadd.f32 %v6650_v61, %v3734_v51 }
 0x598   : > { %v3158_v2 = vpop.f32.mrf.mxu2 }
 0x599   : > { %3773 = vmatmul.bf16.gmra.mxu0 %v3609_v9  ;;  %v3159_v49 = vadd.f32 %v6670_v40, %v3158_v2  ;;  %v3876_v8 = vmax.f32 %v3735_v36, 0.0 }
 0x59a   : > { %v3446_v6 = vpop.f32.mrf.mxu3 }
 0x59b   : > { %v3447_v62 = vadd.f32 %v6502_v14, %v3446_v6  ;;  %v3246_v30 = vmax.f32 %v3159_v49, 0.0 }
 0x59d   : > { %v3561_v33 = vmax.f32 %v3447_v62, 0.0 }
 0x59e   : > { %v3736_v41 = vpop.f32.mrf.mxu0 }
 0x59f   : > { %v3737_v43 = vadd.f32 %v6650_v61, %v3736_v41 }
 0x5a0   : > { %v3160_v38 = vpop.f32.mrf.mxu2 }
 0x5a1   : > { %v3877_v24 = vmax.f32 %v3737_v43, 0.0  ;;  %v3161_v23 = vadd.f32 %v6670_v40, %v3160_v38 }
 0x5a2   : > { %v3448_v13 = vpop.f32.mrf.mxu3 }
 0x5a3   : > { %v3247_v1 = vmax.f32 %v3161_v23, 0.0  ;;  %v3449_v15 = vadd.f32 %v6502_v14, %v3448_v13  ;;  %v3934_v29 = vpack.c.bf16 %v3877_v24, %v3876_v8 }
 0x5a5   : > { %v3286_v48 = vpack.c.bf16 %v3247_v1, %v3246_v30  ;;  %v3562_v42 = vmax.f32 %v3449_v15, 0.0  ;;  %4066 = vmatmul.bf16.gmra.mxu1 %v3934_v29  ;;  %v6757_v15 = vld [vmem:[%s7090_s25] ss:$0 sm:$0xff] }
 0x5a6   : > { %v3739_v55 = vpop.f32.mrf.mxu0 }
 0x5a7   : > { %3490 = vmatmul.bf16.gmra.mxu3 %v3286_v48  ;;  %v3610_v32 = vpack.c.bf16 %v3562_v42, %v3561_v33  ;;  %v3740_v56 = vadd.f32 %v6650_v61, %v3739_v55 }
 0x5a8   : > { %v3163_v5 = vpop.f32.mrf.mxu2 }
 0x5a9   : > { %3778 = vmatmul.bf16.gmra.mxu0 %v3610_v32  ;;  %v3164_v12 = vadd.f32 %v6670_v40, %v3163_v5  ;;  %v3878_v34 = vmax.f32 %v3740_v56, 0.0 }
 0x5aa   : > { %v3451_v7 = vpop.f32.mrf.mxu3 }
 0x5ab   : > { %v3452_v52 = vadd.f32 %v6502_v14, %v3451_v7  ;;  %v3248_v47 = vmax.f32 %v3164_v12, 0.0 }
 0x5ad   : > { %v3563_v44 = vmax.f32 %v3452_v52, 0.0 }
 0x5ae   : > { %v3741_v59 = vpop.f32.mrf.mxu0 }
 0x5af   : > { %v3742_v17 = vadd.f32 %v6650_v61, %v3741_v59 }
 0x5b0   : > { %v3165_v11 = vpop.f32.mrf.mxu2 }
 0x5b1   : > { %v3879_v18 = vmax.f32 %v3742_v17, 0.0  ;;  %v3166_v58 = vadd.f32 %v6670_v40, %v3165_v11 }
 0x5b2   : > { %v3453_v16 = vpop.f32.mrf.mxu3 }
 0x5b3   : > { %v3249_v4 = vmax.f32 %v3166_v58, 0.0  ;;  %v3454_v10 = vadd.f32 %v6502_v14, %v3453_v16  ;;  %v3935_v21 = vpack.c.bf16 %v3879_v18, %v3878_v34 }
 0x5b5   : > { %v3287_v50 = vpack.c.bf16 %v3249_v4, %v3248_v47  ;;  %v3564_v0 = vmax.f32 %v3454_v10, 0.0  ;;  %4071 = vmatmul.bf16.gmra.mxu1 %v3935_v21 }
 0x5b6   : > { %v3744_v3 = vpop.f32.mrf.mxu0 }
 0x5b7   : > { %3495 = vmatmul.bf16.gmra.mxu3 %v3287_v50  ;;  %v3611_v37 = vpack.c.bf16 %v3564_v0, %v3563_v44  ;;  %v3745_v31 = vadd.f32 %v6650_v61, %v3744_v3 }
 0x5b8   : > { %v3168_v35 = vpop.f32.mrf.mxu2 }
 0x5b9   : > { %3783 = vmatmul.bf16.gmra.mxu0 %v3611_v37  ;;  %v3169_v53 = vadd.f32 %v6670_v40, %v3168_v35  ;;  %v3880_v63 = vmax.f32 %v3745_v31, 0.0 }
 0x5ba   : > { %v3456_v57 = vpop.f32.mrf.mxu3 }
 0x5bb   : > { %v3457_v22 = vadd.f32 %v6502_v14, %v3456_v57  ;;  %v3250_v46 = vmax.f32 %v3169_v53, 0.0 }
 0x5bd   : > { %v3565_v2 = vmax.f32 %v3457_v22, 0.0 }
 0x5be   : > { %v3746_v60 = vpop.f32.mrf.mxu0 }
 0x5bf   : > { %v3747_v28 = vadd.f32 %v6650_v61, %v3746_v60 }
 0x5c0   : > { %v3170_v45 = vpop.f32.mrf.mxu2 }
 0x5c1   : > { %v3881_v27 = vmax.f32 %v3747_v28, 0.0  ;;  %v3171_v26 = vadd.f32 %v6670_v40, %v3170_v45 }
 0x5c2   : > { %v3458_v19 = vpop.f32.mrf.mxu3  ;;  %v4037_v54 = vpop.f32.mrf.mxu1 }
 0x5c3   : > { %v3251_v20 = vmax.f32 %v3171_v26, 0.0  ;;  %v3459_v39 = vadd.f32 %v6502_v14, %v3458_v19  ;;  %v4038_v51 = vadd.f32 %v6735_v25, %v4037_v54  ;;  %v3936_v9 = vpack.c.bf16 %v3881_v27, %v3880_v63 }
 0x5c5   : > { %v3288_v6 = vpack.c.bf16 %v3251_v20, %v3250_v46  ;;  %v3566_v36 = vmax.f32 %v3459_v39, 0.0  ;;  %4198 = vst.msk [vmem:[%s6742_s27] sm:$0xff] %vm4197_vm0, %v4038_v51  ;;  %4076 = vmatmul.bf16.gmra.mxu1 %v3936_v9 }
 0x5c6   : > { %v3749_v41 = vpop.f32.mrf.mxu0 }
 0x5c7   : > { %3500 = vmatmul.bf16.gmra.mxu3 %v3288_v6  ;;  %v3612_v49 = vpack.c.bf16 %v3566_v36, %v3565_v2  ;;  %v3750_v14 = vadd.f32 %v6650_v61, %v3749_v41 }
 0x5c8   : > { %v3173_v43 = vpop.f32.mrf.mxu2 }
 0x5c9   : > { %3788 = vmatmul.bf16.gmra.mxu0 %v3612_v49  ;;  %v3174_v24 = vadd.f32 %v6670_v40, %v3173_v43  ;;  %v3882_v1 = vmax.f32 %v3750_v14, 0.0 }
 0x5ca   : > { %v3461_v38 = vpop.f32.mrf.mxu3  ;;  %v4039_v8 = vpop.f32.mrf.mxu1 }
 0x5cb   : > { %v4040_v62 = vadd.f32 %v6735_v25, %v4039_v8  ;;  %v3462_v29 = vadd.f32 %v6757_v15, %v3461_v38  ;;  %v3252_v42 = vmax.f32 %v3174_v24, 0.0 }
 0x5cd   : > { %4199 = vst.msk [vmem:[%s6742_s27 + $0x8] sm:$0xff] %vm4197_vm0, %v4040_v62  ;;  %v3567_v12 = vmax.f32 %v3462_v29, 0.0 }
 0x5ce   : > { %v3751_v23 = vpop.f32.mrf.mxu0 }
 0x5cf   : > { %v3752_v13 = vadd.f32 %v6650_v61, %v3751_v23 }
 0x5d0   : > { %v3175_v30 = vpop.f32.mrf.mxu2 }
 0x5d1   : > { %v3883_v33 = vmax.f32 %v3752_v13, 0.0  ;;  %v3176_v48 = vadd.f32 %v6670_v40, %v3175_v30 }
 0x5d2   : > { %v3463_v55 = vpop.f32.mrf.mxu3  ;;  %v4042_v32 = vpop.f32.mrf.mxu1 }
 0x5d3   : > { %v3253_v5 = vmax.f32 %v3176_v48, 0.0  ;;  %v3464_v7 = vadd.f32 %v6757_v15, %v3463_v55  ;;  %v4043_v56 = vadd.f32 %v6735_v25, %v4042_v32  ;;  %v3937_v59 = vpack.c.bf16 %v3883_v33, %v3882_v1 }
 0x5d5   : > { %v3289_v17 = vpack.c.bf16 %v3253_v5, %v3252_v42  ;;  %v3568_v11 = vmax.f32 %v3464_v7, 0.0  ;;  %4200 = vst.msk [vmem:[%s6742_s27 + $0x10] sm:$0xff] %vm4197_vm0, %v4043_v56  ;;  %4081 = vmatmul.bf16.gmra.mxu1 %v3937_v59 }
 0x5d6   : > { %v3754_v34 = vpop.f32.mrf.mxu0 }
 0x5d7   : > { %3505 = vmatmul.bf16.gmra.mxu3 %v3289_v17  ;;  %v3613_v52 = vpack.c.bf16 %v3568_v11, %v3567_v12  ;;  %v3755_v4 = vadd.f32 %v6650_v61, %v3754_v34 }
 0x5d8   : > { %v3178_v18 = vpop.f32.mrf.mxu2 }
 0x5d9   : > { %3793 = vmatmul.bf16.gmra.mxu0 %v3613_v52  ;;  %v3179_v10 = vadd.f32 %v6670_v40, %v3178_v18  ;;  %v3884_v0 = vmax.f32 %v3755_v4, 0.0 }
 0x5da   : > { %v3466_v58 = vpop.f32.mrf.mxu3  ;;  %v4044_v16 = vpop.f32.mrf.mxu1 }
 0x5db   : > { %v4045_v47 = vadd.f32 %v6735_v25, %v4044_v16  ;;  %v3467_v3 = vadd.f32 %v6757_v15, %v3466_v58  ;;  %v3254_v57 = vmax.f32 %v3179_v10, 0.0 }
 0x5dd   : > { %4201 = vst.msk [vmem:[%s6742_s27 + $0x18] sm:$0xff] %vm4197_vm0, %v4045_v47  ;;  %v3569_v22 = vmax.f32 %v3467_v3, 0.0 }
 0x5de   : > { %v3756_v21 = vpop.f32.mrf.mxu0 }
 0x5df   : > { %v3757_v44 = vadd.f32 %v6650_v61, %v3756_v21 }
 0x5e0   : > { %v3180_v50 = vpop.f32.mrf.mxu2 }
 0x5e1   : > { %v3885_v37 = vmax.f32 %v3757_v44, 0.0  ;;  %v3181_v35 = vadd.f32 %v6670_v40, %v3180_v50 }
 0x5e2   : > { %v3468_v31 = vpop.f32.mrf.mxu3  ;;  %v4047_v53 = vpop.f32.mrf.mxu1 }
 0x5e3   : > { %v3255_v60 = vmax.f32 %v3181_v35, 0.0  ;;  %v3469_v28 = vadd.f32 %v6757_v15, %v3468_v31  ;;  %v4048_v45 = vadd.f32 %v6735_v25, %v4047_v53  ;;  %v3938_v63 = vpack.c.bf16 %v3885_v37, %v3884_v0 }
 0x5e5   : > { %v3290_v27 = vpack.c.bf16 %v3255_v60, %v3254_v57  ;;  %v3570_v26 = vmax.f32 %v3469_v28, 0.0  ;;  %4202 = vst.msk [vmem:[%s6742_s27 + $0x20] sm:$0xff] %vm4197_vm0, %v4048_v45  ;;  %4086 = vmatmul.bf16.gmra.mxu1 %v3938_v63 }
 0x5e6   : > { %v3759_v46 = vpop.f32.mrf.mxu0 }
 0x5e7   : > { %3510 = vmatmul.bf16.gmra.mxu3 %v3290_v27  ;;  %v3614_v19 = vpack.c.bf16 %v3570_v26, %v3569_v22  ;;  %v3760_v9 = vadd.f32 %v6650_v61, %v3759_v46 }
 0x5e8   : > { %v3183_v54 = vpop.f32.mrf.mxu2 }
 0x5e9   : > { %3798 = vmatmul.bf16.gmra.mxu0 %v3614_v19  ;;  %v3184_v2 = vadd.f32 %v6670_v40, %v3183_v54  ;;  %v3886_v49 = vmax.f32 %v3760_v9, 0.0 }
 0x5ea   : > { %v3471_v20 = vpop.f32.mrf.mxu3  ;;  %v4049_v39 = vpop.f32.mrf.mxu1 }
 0x5eb   : > { %v4050_v51 = vadd.f32 %v6735_v25, %v4049_v39  ;;  %v3472_v43 = vadd.f32 %v6757_v15, %v3471_v20  ;;  %v3256_v62 = vmax.f32 %v3184_v2, 0.0 }
 0x5ed   : > { %4203 = vst.msk [vmem:[%s6742_s27 + $0x28] sm:$0xff] %vm4197_vm0, %v4050_v51  ;;  %v3571_v29 = vmax.f32 %v3472_v43, 0.0 }
 0x5ee   : > { %v3761_v6 = vpop.f32.mrf.mxu0 }
 0x5ef   : > { %v3762_v36 = vadd.f32 %v6650_v61, %v3761_v6 }
 0x5f0   : > { %v3185_v41 = vpop.f32.mrf.mxu2 }
 0x5f1   : > { %v3887_v38 = vmax.f32 %v3762_v36, 0.0  ;;  %v3186_v8 = vadd.f32 %v6670_v40, %v3185_v41 }
 0x5f2   : > { %v3473_v14 = vpop.f32.mrf.mxu3  ;;  %v4052_v24 = vpop.f32.mrf.mxu1 }
 0x5f3   : > { %v3257_v23 = vmax.f32 %v3186_v8, 0.0  ;;  %v3474_v13 = vadd.f32 %v6757_v15, %v3473_v14  ;;  %v4053_v30 = vadd.f32 %v6735_v25, %v4052_v24  ;;  %v3939_v1 = vpack.c.bf16 %v3887_v38, %v3886_v49 }
 0x5f5   : > { %v3291_v33 = vpack.c.bf16 %v3257_v23, %v3256_v62  ;;  %v3572_v48 = vmax.f32 %v3474_v13, 0.0  ;;  %4204 = vst.msk [vmem:[%s6742_s27 + $0x30] sm:$0xff] %vm4197_vm0, %v4053_v30  ;;  %4091 = vmatmul.bf16.gmra.mxu1 %v3939_v1 }
 0x5f6   : > { %v3764_v42 = vpop.f32.mrf.mxu0 }
 0x5f7   : > { %v3615_v55 = vpack.c.bf16 %v3572_v48, %v3571_v29  ;;  %3515 = vmatmul.bf16.gmra.mxu3 %v3291_v33  ;;  %v3765_v59 = vadd.f32 %v6650_v61, %v3764_v42 }
 0x5f8   : > { %v3188_v32 = vpop.f32.mrf.mxu2 }
 0x5f9   : > { %3803 = vmatmul.bf16.gmra.mxu0 %v3615_v55  ;;  %v3189_v12 = vadd.f32 %v6670_v40, %v3188_v32  ;;  %v3888_v52 = vmax.f32 %v3765_v59, 0.0 }
 0x5fa   : > { %v3476_v5 = vpop.f32.mrf.mxu3  ;;  %v4054_v7 = vpop.f32.mrf.mxu1 }
 0x5fb   : > { %v4055_v56 = vadd.f32 %v6735_v25, %v4054_v7  ;;  %v3477_v18 = vadd.f32 %v6757_v15, %v3476_v5  ;;  %v3258_v47 = vmax.f32 %v3189_v12, 0.0 }
 0x5fd   : > { %4205 = vst.msk [vmem:[%s6742_s27 + $0x38] sm:$0xff] %vm4197_vm0, %v4055_v56  ;;  %v3573_v3 = vmax.f32 %v3477_v18, 0.0 }
 0x5fe   : > { %v3766_v17 = vpop.f32.mrf.mxu0 }
 0x5ff   : > { %v3767_v11 = vadd.f32 %v6650_v61, %v3766_v17 }
 0x600   : > { %v3190_v34 = vpop.f32.mrf.mxu2 }
 0x601   : > { %v3889_v58 = vmax.f32 %v3767_v11, 0.0  ;;  %v3191_v16 = vadd.f32 %v6670_v40, %v3190_v34 }
 0x602   : > { %v3478_v4 = vpop.f32.mrf.mxu3  ;;  %v4057_v10 = vpop.f32.mrf.mxu1 }
 0x603   : > { %v3259_v21 = vmax.f32 %v3191_v16, 0.0  ;;  %v3479_v44 = vadd.f32 %v6757_v15, %v3478_v4  ;;  %v4058_v50 = vadd.f32 %v6735_v25, %v4057_v10  ;;  %v3940_v0 = vpack.c.bf16 %v3889_v58, %v3888_v52 }
 0x605   : > { %v3292_v37 = vpack.c.bf16 %v3259_v21, %v3258_v47  ;;  %v3574_v35 = vmax.f32 %v3479_v44, 0.0  ;;  %4206 = vst.msk [vmem:[%s6742_s27 + $0x40] sm:$0xff] %vm4197_vm0, %v4058_v50  ;;  %4096 = vmatmul.bf16.gmra.mxu1 %v3940_v0 }
 0x606   : > { %v3769_v57 = vpop.f32.mrf.mxu0 }
 0x607   : > { %v3616_v31 = vpack.c.bf16 %v3574_v35, %v3573_v3  ;;  %3520 = vmatmul.bf16.gmra.mxu3 %v3292_v37  ;;  %v3770_v63 = vadd.f32 %v6650_v61, %v3769_v57 }
 0x608   : > { %v3193_v53 = vpop.f32.mrf.mxu2 }
 0x609   : > { %3808 = vmatmul.bf16.gmra.mxu0 %v3616_v31  ;;  %v3194_v22 = vadd.f32 %v6670_v40, %v3193_v53  ;;  %v3890_v19 = vmax.f32 %v3770_v63, 0.0 }
 0x60a   : > { %v3481_v60 = vpop.f32.mrf.mxu3  ;;  %v4059_v28 = vpop.f32.mrf.mxu1 }
 0x60b   : > { %v4060_v45 = vadd.f32 %v6735_v25, %v4059_v28  ;;  %v3482_v54 = vadd.f32 %v6757_v15, %v3481_v60  ;;  %v3260_v51 = vmax.f32 %v3194_v22, 0.0 }
 0x60d   : > { %4207 = vst.msk [vmem:[%s6742_s27 + $0x48] sm:$0xff] %vm4197_vm0, %v4060_v45  ;;  %v3575_v43 = vmax.f32 %v3482_v54, 0.0 }
 0x60e   : > { %v3771_v27 = vpop.f32.mrf.mxu0 }
 0x60f   : > { %v3772_v26 = vadd.f32 %v6650_v61, %v3771_v27 }
 0x610   : > { %v3195_v46 = vpop.f32.mrf.mxu2 }
 0x611   : > { %v3891_v20 = vmax.f32 %v3772_v26, 0.0  ;;  %v3196_v39 = vadd.f32 %v6670_v40, %v3195_v46 }
 0x612   : > { %v3483_v9 = vpop.f32.mrf.mxu3  ;;  %v4062_v2 = vpop.f32.mrf.mxu1 }
 0x613   : > { %v3261_v6 = vmax.f32 %v3196_v39, 0.0  ;;  %v3484_v36 = vadd.f32 %v6757_v15, %v3483_v9  ;;  %v4063_v41 = vadd.f32 %v6735_v25, %v4062_v2  ;;  %v3941_v49 = vpack.c.bf16 %v3891_v20, %v3890_v19 }
 0x615   : > { %v3293_v38 = vpack.c.bf16 %v3261_v6, %v3260_v51  ;;  %v3576_v8 = vmax.f32 %v3484_v36, 0.0  ;;  %4208 = vst.msk [vmem:[%s6742_s27 + $0x50] sm:$0xff] %vm4197_vm0, %v4063_v41  ;;  %4101 = vmatmul.bf16.gmra.mxu1 %v3941_v49 }
 0x616   : > { %v3774_v62 = vpop.f32.mrf.mxu0 }
 0x617   : > { %v3617_v14 = vpack.c.bf16 %v3576_v8, %v3575_v43  ;;  %3525 = vmatmul.bf16.gmra.mxu3 %v3293_v38  ;;  %v3775_v13 = vadd.f32 %v6650_v61, %v3774_v62 }
 0x619   : > { %3813 = vmatmul.bf16.gmra.mxu0 %v3617_v14  ;;  %v3892_v29 = vmax.f32 %v3775_v13, 0.0 }
 0x61a   : > { %v3486_v40 = vpop.f32.mrf.mxu3  ;;  %v4064_v24 = vpop.f32.mrf.mxu1 }
 0x61b   : > { %v4065_v23 = vadd.f32 %v6735_v25, %v4064_v24  ;;  %v3487_v33 = vadd.f32 %v6757_v15, %v3486_v40 }
 0x61d   : > { %4209 = vst.msk [vmem:[%s6742_s27 + $0x58] sm:$0xff] %vm4197_vm0, %v4065_v23  ;;  %v3577_v56 = vmax.f32 %v3487_v33, 0.0 }
 0x61e   : > { %v3776_v30 = vpop.f32.mrf.mxu0 }
 0x61f   : > { %v3777_v1 = vadd.f32 %v6650_v61, %v3776_v30 }
 0x621   : > { %v3893_v48 = vmax.f32 %v3777_v1, 0.0 }
 0x622   : > { %v3488_v42 = vpop.f32.mrf.mxu3  ;;  %v4067_v55 = vpop.f32.mrf.mxu1 }
 0x623   : > { %v3489_v32 = vadd.f32 %v6757_v15, %v3488_v42  ;;  %v4068_v5 = vadd.f32 %v6735_v25, %v4067_v55  ;;  %v3942_v7 = vpack.c.bf16 %v3893_v48, %v3892_v29 }
 0x625   : > { %v3578_v59 = vmax.f32 %v3489_v32, 0.0  ;;  %4210 = vst.msk [vmem:[%s6742_s27 + $0x60] sm:$0xff] %vm4197_vm0, %v4068_v5  ;;  %4106 = vmatmul.bf16.gmra.mxu1 %v3942_v7 }
 0x626   : > { %v3779_v12 = vpop.f32.mrf.mxu0 }
 0x627   : > { %v3618_v17 = vpack.c.bf16 %v3578_v59, %v3577_v56  ;;  %v3780_v18 = vadd.f32 %v6650_v61, %v3779_v12 }
 0x629   : > { %3818 = vmatmul.bf16.gmra.mxu0 %v3618_v17  ;;  %v3894_v47 = vmax.f32 %v3780_v18, 0.0 }
 0x62a   : > { %v3491_v11 = vpop.f32.mrf.mxu3  ;;  %v4069_v34 = vpop.f32.mrf.mxu1 }
 0x62b   : > { %v4070_v52 = vadd.f32 %v6735_v25, %v4069_v34  ;;  %v3492_v4 = vadd.f32 %v6757_v15, %v3491_v11 }
 0x62d   : > { %4211 = vst.msk [vmem:[%s6742_s27 + $0x68] sm:$0xff] %vm4197_vm0, %v4070_v52  ;;  %v3579_v37 = vmax.f32 %v3492_v4, 0.0 }
 0x62e   : > { %v3781_v58 = vpop.f32.mrf.mxu0 }
 0x62f   : > { %v3782_v16 = vadd.f32 %v6650_v61, %v3781_v58 }
 0x631   : > { %v3895_v10 = vmax.f32 %v3782_v16, 0.0 }
 0x632   : > { %v3493_v21 = vpop.f32.mrf.mxu3  ;;  %v4072_v44 = vpop.f32.mrf.mxu1 }
 0x633   : > { %v3494_v50 = vadd.f32 %v6757_v15, %v3493_v21  ;;  %v4073_v0 = vadd.f32 %v6735_v25, %v4072_v44  ;;  %v3943_v3 = vpack.c.bf16 %v3895_v10, %v3894_v47 }
 0x635   : > { %v3580_v35 = vmax.f32 %v3494_v50, 0.0  ;;  %4212 = vst.msk [vmem:[%s6742_s27 + $0x70] sm:$0xff] %vm4197_vm0, %v4073_v0  ;;  %4111 = vmatmul.bf16.gmra.mxu1 %v3943_v3  ;;  %v6867_v3 = vld [vmem:[%s7091_s18] ss:$0 sm:$0xff] }
 0x636   : > { %v3784_v57 = vpop.f32.mrf.mxu0 }
 0x637   : > { %v3619_v31 = vpack.c.bf16 %v3580_v35, %v3579_v37  ;;  %v3785_v45 = vadd.f32 %v6650_v61, %v3784_v57 }
 0x639   : > { %3823 = vmatmul.bf16.gmra.mxu0 %v3619_v31  ;;  %v3896_v27 = vmax.f32 %v3785_v45, 0.0 }
 0x63a   : > { %v3496_v53 = vpop.f32.mrf.mxu3  ;;  %v4074_v60 = vpop.f32.mrf.mxu1 }
 0x63b   : > { %v4075_v28 = vadd.f32 %v6735_v25, %v4074_v60  ;;  %v3497_v26 = vadd.f32 %v6757_v15, %v3496_v53 }
 0x63d   : > { %4213 = vst.msk [vmem:[%s6742_s27 + $0x78] sm:$0xff] %vm4197_vm0, %v4075_v28  ;;  %v3581_v9 = vmax.f32 %v3497_v26, 0.0 }
 0x63e   : > { %v3786_v63 = vpop.f32.mrf.mxu0 }
 0x63f   : > { %v3787_v22 = vadd.f32 %v6650_v61, %v3786_v63 }
 0x641   : > { %v3897_v46 = vmax.f32 %v3787_v22, 0.0 }
 0x642   : > { %v3498_v19 = vpop.f32.mrf.mxu3  ;;  %v4077_v54 = vpop.f32.mrf.mxu1 }
 0x643   : > { %v3499_v20 = vadd.f32 %v6757_v15, %v3498_v19  ;;  %v4078_v39 = vadd.f32 %v6735_v25, %v4077_v54  ;;  %v3944_v51 = vpack.c.bf16 %v3897_v46, %v3896_v27 }
 0x645   : > { %v3582_v2 = vmax.f32 %v3499_v20, 0.0  ;;  %4214 = vst.msk [vmem:[%s6742_s27 + $0x80] sm:$0xff] %vm4197_vm0, %v4078_v39  ;;  %4116 = vmatmul.bf16.gmra.mxu1 %v3944_v51 }
 0x646   : > { %v3789_v6 = vpop.f32.mrf.mxu0 }
 0x647   : > { %v3620_v36 = vpack.c.bf16 %v3582_v2, %v3581_v9  ;;  %v3790_v38 = vadd.f32 %v6650_v61, %v3789_v6 }
 0x649   : > { %3828 = vmatmul.bf16.gmra.mxu0 %v3620_v36  ;;  %v3898_v14 = vmax.f32 %v3790_v38, 0.0 }
 0x64a   : > { %v3501_v41 = vpop.f32.mrf.mxu3  ;;  %v4079_v49 = vpop.f32.mrf.mxu1 }
 0x64b   : > { %v4080_v43 = vadd.f32 %v6735_v25, %v4079_v49  ;;  %v3502_v40 = vadd.f32 %v6757_v15, %v3501_v41 }
 0x64d   : > { %4215 = vst.msk [vmem:[%s6742_s27 + $0x88] sm:$0xff] %vm4197_vm0, %v4080_v43  ;;  %v3583_v33 = vmax.f32 %v3502_v40, 0.0 }
 0x64e   : > { %v3791_v8 = vpop.f32.mrf.mxu0 }
 0x64f   : > { %v3792_v62 = vadd.f32 %v6650_v61, %v3791_v8 }
 0x651   : > { %v3899_v24 = vmax.f32 %v3792_v62, 0.0 }
 0x652   : > { %v3503_v23 = vpop.f32.mrf.mxu3  ;;  %v4082_v13 = vpop.f32.mrf.mxu1 }
 0x653   : > { %v3504_v30 = vadd.f32 %v6757_v15, %v3503_v23  ;;  %v4083_v1 = vadd.f32 %v6735_v25, %v4082_v13  ;;  %v3945_v29 = vpack.c.bf16 %v3899_v24, %v3898_v14 }
 0x655   : > { %v3584_v48 = vmax.f32 %v3504_v30, 0.0  ;;  %4216 = vst.msk [vmem:[%s6742_s27 + $0x90] sm:$0xff] %vm4197_vm0, %v4083_v1  ;;  %4121 = vmatmul.bf16.gmra.mxu1 %v3945_v29 }
 0x656   : > { %v3794_v42 = vpop.f32.mrf.mxu0 }
 0x657   : > { %v3621_v55 = vpack.c.bf16 %v3584_v48, %v3583_v33  ;;  %v3795_v56 = vadd.f32 %v6650_v61, %v3794_v42 }
 0x659   : > { %3833 = vmatmul.bf16.gmra.mxu0 %v3621_v55  ;;  %v3900_v17 = vmax.f32 %v3795_v56, 0.0 }
 0x65a   : > { %v3506_v32 = vpop.f32.mrf.mxu3  ;;  %v4084_v5 = vpop.f32.mrf.mxu1 }
 0x65b   : > { %v4085_v7 = vadd.f32 %v6735_v25, %v4084_v5  ;;  %v3507_v11 = vadd.f32 %v6757_v15, %v3506_v32 }
 0x65d   : > { %4217 = vst.msk [vmem:[%s6742_s27 + $0x98] sm:$0xff] %vm4197_vm0, %v4085_v7  ;;  %v3585_v4 = vmax.f32 %v3507_v11, 0.0 }
 0x65e   : > { %v3796_v59 = vpop.f32.mrf.mxu0 }
 0x65f   : > { %v3797_v12 = vadd.f32 %v6650_v61, %v3796_v59 }
 0x661   : > { %v3901_v34 = vmax.f32 %v3797_v12, 0.0 }
 0x662   : > { %v3508_v52 = vpop.f32.mrf.mxu3  ;;  %v4087_v18 = vpop.f32.mrf.mxu1 }
 0x663   : > { %v3509_v58 = vadd.f32 %v6757_v15, %v3508_v52  ;;  %v4088_v16 = vadd.f32 %v6735_v25, %v4087_v18  ;;  %v3946_v47 = vpack.c.bf16 %v3901_v34, %v3900_v17 }
 0x665   : > { %v3586_v10 = vmax.f32 %v3509_v58, 0.0  ;;  %4218 = vst.msk [vmem:[%s6742_s27 + $0xa0] sm:$0xff] %vm4197_vm0, %v4088_v16  ;;  %4126 = vmatmul.bf16.gmra.mxu1 %v3946_v47 }
 0x666   : > { %v3799_v21 = vpop.f32.mrf.mxu0 }
 0x667   : > { %v3622_v44 = vpack.c.bf16 %v3586_v10, %v3585_v4  ;;  %v3800_v37 = vadd.f32 %v6867_v3, %v3799_v21 }
 0x669   : > { %3838 = vmatmul.bf16.gmra.mxu0 %v3622_v44  ;;  %v3902_v31 = vmax.f32 %v3800_v37, 0.0 }
 0x66a   : > { %v3511_v61 = vpop.f32.mrf.mxu3  ;;  %v4089_v50 = vpop.f32.mrf.mxu1 }
 0x66b   : > { %v4090_v0 = vadd.f32 %v6735_v25, %v4089_v50  ;;  %v3512_v53 = vadd.f32 %v6757_v15, %v3511_v61 }
 0x66d   : > { %4219 = vst.msk [vmem:[%s6742_s27 + $0xa8] sm:$0xff] %vm4197_vm0, %v4090_v0  ;;  %v3587_v26 = vmax.f32 %v3512_v53, 0.0 }
 0x66e   : > { %v3801_v35 = vpop.f32.mrf.mxu0 }
 0x66f   : > { %v3802_v57 = vadd.f32 %v6867_v3, %v3801_v35 }
 0x671   : > { %v3903_v60 = vmax.f32 %v3802_v57, 0.0 }
 0x672   : > { %v3513_v28 = vpop.f32.mrf.mxu3  ;;  %v4092_v45 = vpop.f32.mrf.mxu1 }
 0x673   : > { %v3514_v63 = vadd.f32 %v6757_v15, %v3513_v28  ;;  %v4093_v22 = vadd.f32 %v6735_v25, %v4092_v45  ;;  %v3947_v27 = vpack.c.bf16 %v3903_v60, %v3902_v31 }
 0x675   : > { %v3588_v46 = vmax.f32 %v3514_v63, 0.0  ;;  %4220 = vst.msk [vmem:[%s6742_s27 + $0xb0] sm:$0xff] %vm4197_vm0, %v4093_v22  ;;  %4131 = vmatmul.bf16.gmra.mxu1 %v3947_v27 }
 0x676   : > { %v3804_v19 = vpop.f32.mrf.mxu0 }
 0x677   : > { %v3623_v54 = vpack.c.bf16 %v3588_v46, %v3587_v26  ;;  %v3805_v9 = vadd.f32 %v6867_v3, %v3804_v19 }
 0x679   : > { %3843 = vmatmul.bf16.gmra.mxu0 %v3623_v54  ;;  %v3904_v36 = vmax.f32 %v3805_v9, 0.0 }
 0x67a   : > { %v3516_v20 = vpop.f32.mrf.mxu3  ;;  %v4094_v39 = vpop.f32.mrf.mxu1 }
 0x67b   : > { %v4095_v51 = vadd.f32 %v6735_v25, %v4094_v39  ;;  %v3517_v41 = vadd.f32 %v6757_v15, %v3516_v20 }
 0x67d   : > { %4221 = vst.msk [vmem:[%s6742_s27 + $0xb8] sm:$0xff] %vm4197_vm0, %v4095_v51  ;;  %v3589_v40 = vmax.f32 %v3517_v41, 0.0 }
 0x67e   : > { %v3806_v2 = vpop.f32.mrf.mxu0 }
 0x67f   : > { %v3807_v6 = vadd.f32 %v6867_v3, %v3806_v2 }
 0x681   : > { %v3905_v49 = vmax.f32 %v3807_v6, 0.0 }
 0x682   : > { %v3518_v43 = vpop.f32.mrf.mxu3  ;;  %v4097_v38 = vpop.f32.mrf.mxu1 }
 0x683   : > { %v3948_v8 = vpack.c.bf16 %v3905_v49, %v3904_v36  ;;  %v3519_v62 = vadd.f32 %v6757_v15, %v3518_v43  ;;  %v4098_v14 = vadd.f32 %v6735_v25, %v4097_v38 }
 0x685   : > { %v3590_v24 = vmax.f32 %v3519_v62, 0.0  ;;  %4222 = vst.msk [vmem:[%s6742_s27 + $0xc0] sm:$0xff] %vm4197_vm0, %v4098_v14  ;;  %4136 = vmatmul.bf16.gmra.mxu1 %v3948_v8 }
 0x686   : > { %v3809_v23 = vpop.f32.mrf.mxu0 }
 0x687   : > { %v3624_v13 = vpack.c.bf16 %v3590_v24, %v3589_v40  ;;  %v3810_v33 = vadd.f32 %v6867_v3, %v3809_v23 }
 0x689   : > { %3848 = vmatmul.bf16.gmra.mxu0 %v3624_v13  ;;  %v3906_v55 = vmax.f32 %v3810_v33, 0.0 }
 0x68a   : > { %v3521_v30 = vpop.f32.mrf.mxu3  ;;  %v4099_v1 = vpop.f32.mrf.mxu1 }
 0x68b   : > { %v4100_v29 = vadd.f32 %v6735_v25, %v4099_v1  ;;  %v3522_v32 = vadd.f32 %v6757_v15, %v3521_v30 }
 0x68d   : > { %4223 = vst.msk [vmem:[%s6742_s27 + $0xc8] sm:$0xff] %vm4197_vm0, %v4100_v29  ;;  %v3591_v11 = vmax.f32 %v3522_v32, 0.0 }
 0x68e   : > { %v3811_v48 = vpop.f32.mrf.mxu0 }
 0x68f   : > { %v3812_v42 = vadd.f32 %v6867_v3, %v3811_v48 }
 0x691   : > { %v3907_v5 = vmax.f32 %v3812_v42, 0.0 }
 0x692   : > { %v3523_v7 = vpop.f32.mrf.mxu3  ;;  %v4102_v56 = vpop.f32.mrf.mxu1 }
 0x693   : > { %v3949_v59 = vpack.c.bf16 %v3907_v5, %v3906_v55  ;;  %v3524_v12 = vadd.f32 %v6757_v15, %v3523_v7  ;;  %v4103_v17 = vadd.f32 %v6735_v25, %v4102_v56 }
 0x695   : > { %v3592_v34 = vmax.f32 %v3524_v12, 0.0  ;;  %4224 = vst.msk [vmem:[%s6742_s27 + $0xd0] sm:$0xff] %vm4197_vm0, %v4103_v17  ;;  %4141 = vmatmul.bf16.gmra.mxu1 %v3949_v59 }
 0x696   : > { %v3814_v52 = vpop.f32.mrf.mxu0 }
 0x697   : > { %v3625_v18 = vpack.c.bf16 %v3592_v34, %v3591_v11  ;;  %v3815_v4 = vadd.f32 %v6867_v3, %v3814_v52 }
 0x699   : > { %3853 = vmatmul.bf16.gmra.mxu0 %v3625_v18  ;;  %v3908_v44 = vmax.f32 %v3815_v4, 0.0 }
 0x69a   : > { %v3526_v58 = vpop.f32.mrf.mxu3  ;;  %v4104_v16 = vpop.f32.mrf.mxu1 }
 0x69b   : > { %v4105_v47 = vadd.f32 %v6735_v25, %v4104_v16  ;;  %v3527_v61 = vadd.f32 %v6757_v15, %v3526_v58 }
 0x69d   : > { %4225 = vst.msk [vmem:[%s6742_s27 + $0xd8] sm:$0xff] %vm4197_vm0, %v4105_v47  ;;  %v3593_v53 = vmax.f32 %v3527_v61, 0.0 }
 0x69e   : > { %v3816_v10 = vpop.f32.mrf.mxu0 }
 0x69f   : > { %v3817_v21 = vadd.f32 %v6867_v3, %v3816_v10 }
 0x6a1   : > { %v3909_v50 = vmax.f32 %v3817_v21, 0.0 }
 0x6a2   : > { %v3528_v0 = vpop.f32.mrf.mxu3  ;;  %v4107_v37 = vpop.f32.mrf.mxu1 }
 0x6a3   : > { %v3950_v35 = vpack.c.bf16 %v3909_v50, %v3908_v44  ;;  %v3529_v57 = vadd.f32 %v6757_v15, %v3528_v0  ;;  %v4108_v31 = vadd.f32 %v6735_v25, %v4107_v37 }
 0x6a5   : > { %v3594_v60 = vmax.f32 %v3529_v57, 0.0  ;;  %4226 = vst.msk [vmem:[%s6742_s27 + $0xe0] sm:$0xff] %vm4197_vm0, %v4108_v31  ;;  %4146 = vmatmul.bf16.gmra.mxu1 %v3950_v35 }
 0x6a6   : > { %v3819_v28 = vpop.f32.mrf.mxu0 }
 0x6a7   : > { %v3626_v45 = vpack.c.bf16 %v3594_v60, %v3593_v53  ;;  %v3820_v27 = vadd.f32 %v6867_v3, %v3819_v28 }
 0x6a9   : > { %3858 = vmatmul.bf16.gmra.mxu0 %v3626_v45  ;;  %v3910_v46 = vmax.f32 %v3820_v27, 0.0 }
 0x6aa   : > { %v4109_v63 = vpop.f32.mrf.mxu1 }
 0x6ab   : > { %v4110_v22 = vadd.f32 %v6735_v25, %v4109_v63 }
 0x6ad   : > { %4227 = vst.msk [vmem:[%s6742_s27 + $0xe8] sm:$0xff] %vm4197_vm0, %v4110_v22 }
 0x6ae   : > { %v3821_v15 = vpop.f32.mrf.mxu0 }
 0x6af   : > { %v3822_v26 = vadd.f32 %v6867_v3, %v3821_v15 }
 0x6b1   : > { %v3911_v19 = vmax.f32 %v3822_v26, 0.0 }
 0x6b2   : > { %v4112_v54 = vpop.f32.mrf.mxu1 }
 0x6b3   : > { %v3951_v20 = vpack.c.bf16 %v3911_v19, %v3910_v46  ;;  %v4113_v39 = vadd.f32 %v6735_v25, %v4112_v54 }
 0x6b5   : > { %4228 = vst.msk [vmem:[%s6742_s27 + $0xf0] sm:$0xff] %vm4197_vm0, %v4113_v39  ;;  %4151 = vmatmul.bf16.gmra.mxu1 %v3951_v20 }
 0x6b6   : > { %v3824_v51 = vpop.f32.mrf.mxu0 }
 0x6b7   : > { %v3825_v6 = vadd.f32 %v6867_v3, %v3824_v51 }
 0x6b9   : > { %v3912_v49 = vmax.f32 %v3825_v6, 0.0 }
 0x6ba   : > { %v4114_v9 = vpop.f32.mrf.mxu1 }
 0x6bb   : > { %v4115_v2 = vadd.f32 %v6735_v25, %v4114_v9 }
 0x6bd   : > { %4229 = vst.msk [vmem:[%s6742_s27 + $0xf8] sm:$0xff] %vm4197_vm0, %v4115_v2 }
 0x6be   : > { %v3826_v36 = vpop.f32.mrf.mxu0 }
 0x6bf   : > { %v3827_v41 = vadd.f32 %v6867_v3, %v3826_v36 }
 0x6c1   : > { %v3913_v43 = vmax.f32 %v3827_v41, 0.0 }
 0x6c2   : > { %v4117_v38 = vpop.f32.mrf.mxu1 }
 0x6c3   : > { %v3952_v8 = vpack.c.bf16 %v3913_v43, %v3912_v49  ;;  %v4118_v62 = vadd.f32 %v6735_v25, %v4117_v38 }
 0x6c5   : > { %4230 = vst.msk [vmem:[%s6742_s27 + $0x100] sm:$0xff] %vm4197_vm0, %v4118_v62  ;;  %4156 = vmatmul.bf16.gmra.mxu1 %v3952_v8 }
 0x6c6   : > { %v3829_v14 = vpop.f32.mrf.mxu0 }
 0x6c7   : > { %v3830_v23 = vadd.f32 %v6867_v3, %v3829_v14 }
 0x6c9   : > { %v3914_v1 = vmax.f32 %v3830_v23, 0.0 }
 0x6ca   : > { %v4119_v40 = vpop.f32.mrf.mxu1 }
 0x6cb   : > { %v4120_v24 = vadd.f32 %v6735_v25, %v4119_v40 }
 0x6cd   : > { %4231 = vst.msk [vmem:[%s6742_s27 + $0x108] sm:$0xff] %vm4197_vm0, %v4120_v24 }
 0x6ce   : > { %v3831_v13 = vpop.f32.mrf.mxu0 }
 0x6cf   : > { %v3832_v30 = vadd.f32 %v6867_v3, %v3831_v13 }
 0x6d1   : > { %v3915_v29 = vmax.f32 %v3832_v30, 0.0 }
 0x6d2   : > { %v4122_v33 = vpop.f32.mrf.mxu1 }
 0x6d3   : > { %v3953_v48 = vpack.c.bf16 %v3915_v29, %v3914_v1  ;;  %v4123_v42 = vadd.f32 %v6735_v25, %v4122_v33 }
 0x6d5   : > { %4232 = vst.msk [vmem:[%s6742_s27 + $0x110] sm:$0xff] %vm4197_vm0, %v4123_v42  ;;  %4161 = vmatmul.bf16.gmra.mxu1 %v3953_v48 }
 0x6d6   : > { %v3834_v55 = vpop.f32.mrf.mxu0 }
 0x6d7   : > { %v3835_v7 = vadd.f32 %v6867_v3, %v3834_v55 }
 0x6d9   : > { %v3916_v12 = vmax.f32 %v3835_v7, 0.0 }
 0x6da   : > { %v4124_v32 = vpop.f32.mrf.mxu1 }
 0x6db   : > { %v4125_v5 = vadd.f32 %v6735_v25, %v4124_v32 }
 0x6dd   : > { %4233 = vst.msk [vmem:[%s6742_s27 + $0x118] sm:$0xff] %vm4197_vm0, %v4125_v5 }
 0x6de   : > { %v3836_v56 = vpop.f32.mrf.mxu0 }
 0x6df   : > { %v3837_v59 = vadd.f32 %v6867_v3, %v3836_v56 }
 0x6e1   : > { %v3917_v17 = vmax.f32 %v3837_v59, 0.0 }
 0x6e2   : > { %v4127_v11 = vpop.f32.mrf.mxu1 }
 0x6e3   : > { %v3954_v34 = vpack.c.bf16 %v3917_v17, %v3916_v12  ;;  %v4128_v52 = vadd.f32 %v6735_v25, %v4127_v11 }
 0x6e5   : > { %4234 = vst.msk [vmem:[%s6742_s27 + $0x120] sm:$0xff] %vm4197_vm0, %v4128_v52  ;;  %4166 = vmatmul.bf16.gmra.mxu1 %v3954_v34 }
 0x6e6   : > { %v3839_v18 = vpop.f32.mrf.mxu0 }
 0x6e7   : > { %v3840_v47 = vadd.f32 %v6867_v3, %v3839_v18 }
 0x6e9   : > { %v3918_v21 = vmax.f32 %v3840_v47, 0.0  ;;  %v5161_v47 = vld [vmem:[%s7093_s28] ss:$0 sm:$0xff] }
 0x6ea   : > { %v4129_v58 = vpop.f32.mrf.mxu1 }
 0x6eb   : > { %v4130_v16 = vadd.f32 %v6735_v25, %v4129_v58 }
 0x6ed   : > { %4235 = vst.msk [vmem:[%s6742_s27 + $0x128] sm:$0xff] %vm4197_vm0, %v4130_v16 }
 0x6ee   : > { %v3841_v4 = vpop.f32.mrf.mxu0 }
 0x6ef   : > { %v3842_v10 = vadd.f32 %v6867_v3, %v3841_v4 }
 0x6f1   : > { %v3919_v44 = vmax.f32 %v3842_v10, 0.0 }
 0x6f2   : > { %v4132_v61 = vpop.f32.mrf.mxu1 }
 0x6f3   : > { %v3955_v50 = vpack.c.bf16 %v3919_v44, %v3918_v21  ;;  %v4133_v0 = vadd.f32 %v6735_v25, %v4132_v61 }
 0x6f5   : > { %4236 = vst.msk [vmem:[%s6742_s27 + $0x130] sm:$0xff] %vm4197_vm0, %v4133_v0  ;;  %4171 = vmatmul.bf16.gmra.mxu1 %v3955_v50 }
 0x6f6   : > { %v3844_v37 = vpop.f32.mrf.mxu0 }
 0x6f7   : > { %v3845_v31 = vadd.f32 %v6867_v3, %v3844_v37 }
 0x6f9   : > { %v3920_v28 = vmax.f32 %v3845_v31, 0.0 }
 0x6fa   : > { %v4134_v35 = vpop.f32.mrf.mxu1 }
 0x6fb   : > { %v4135_v57 = vadd.f32 %v6735_v25, %v4134_v35 }
 0x6fd   : > { %4237 = vst.msk [vmem:[%s6742_s27 + $0x138] sm:$0xff] %vm4197_vm0, %v4135_v57 }
 0x6fe   : > { %v3846_v53 = vpop.f32.mrf.mxu0 }
 0x6ff   : > { %v3847_v60 = vadd.f32 %v6867_v3, %v3846_v53 }
 0x701   : > { %v3921_v45 = vmax.f32 %v3847_v60, 0.0 }
 0x702   : > { %v4137_v63 = vpop.f32.mrf.mxu1 }
 0x703   : > { %v3956_v22 = vpack.c.bf16 %v3921_v45, %v3920_v28  ;;  %v4138_v27 = vadd.f32 %v6735_v25, %v4137_v63 }
 0x705   : > { %4238 = vst.msk [vmem:[%s6742_s27 + $0x140] sm:$0xff] %vm4197_vm0, %v4138_v27  ;;  %4176 = vmatmul.bf16.gmra.mxu1 %v3956_v22 }
 0x706   : > { %v3849_v15 = vpop.f32.mrf.mxu0 }
 0x707   : > { %v3850_v19 = vadd.f32 %v6867_v3, %v3849_v15 }
 0x709   : > { %v3922_v39 = vmax.f32 %v3850_v19, 0.0 }
 0x70a   : > { %v4139_v26 = vpop.f32.mrf.mxu1 }
 0x70b   : > { %v4140_v46 = vadd.f32 %v6735_v25, %v4139_v26 }
 0x70d   : > { %4239 = vst.msk [vmem:[%s6742_s27 + $0x148] sm:$0xff] %vm4197_vm0, %v4140_v46 }
 0x70e   : > { %v3851_v54 = vpop.f32.mrf.mxu0 }
 0x70f   : > { %v3852_v20 = vadd.f32 %v6867_v3, %v3851_v54 }
 0x711   : > { %v3923_v51 = vmax.f32 %v3852_v20, 0.0 }
 0x712   : > { %v4142_v9 = vpop.f32.mrf.mxu1 }
 0x713   : > { %v3957_v2 = vpack.c.bf16 %v3923_v51, %v3922_v39  ;;  %v4143_v6 = vadd.f32 %v6735_v25, %v4142_v9 }
 0x715   : > { %4240 = vst.msk [vmem:[%s6742_s27 + $0x150] sm:$0xff] %vm4197_vm0, %v4143_v6  ;;  %4181 = vmatmul.bf16.gmra.mxu1 %v3957_v2 }
 0x716   : > { %v3854_v36 = vpop.f32.mrf.mxu0 }
 0x717   : > { %v3855_v43 = vadd.f32 %v6867_v3, %v3854_v36 }
 0x719   : > { %v3924_v62 = vmax.f32 %v3855_v43, 0.0 }
 0x71a   : > { %v4144_v41 = vpop.f32.mrf.mxu1 }
 0x71b   : > { %v4145_v49 = vadd.f32 %v6735_v25, %v4144_v41 }
 0x71d   : > { %4241 = vst.msk [vmem:[%s6742_s27 + $0x158] sm:$0xff] %vm4197_vm0, %v4145_v49 }
 0x71e   : > { %v3856_v38 = vpop.f32.mrf.mxu0 }
 0x71f   : > { %v3857_v8 = vadd.f32 %v6867_v3, %v3856_v38 }
 0x721   : > { %v3925_v14 = vmax.f32 %v3857_v8, 0.0 }
 0x722   : > { %v4147_v40 = vpop.f32.mrf.mxu1 }
 0x723   : > { %v3958_v24 = vpack.c.bf16 %v3925_v14, %v3924_v62  ;;  %v4148_v23 = vadd.f32 %v6735_v25, %v4147_v40 }
 0x725   : > { %4242 = vst.msk [vmem:[%s6742_s27 + $0x160] sm:$0xff] %vm4197_vm0, %v4148_v23  ;;  %4186 = vmatmul.bf16.gmra.mxu1 %v3958_v24 }
 0x726   : > { %v3859_v13 = vpop.f32.mrf.mxu0 }
 0x727   : > { %v3860_v29 = vadd.f32 %v6867_v3, %v3859_v13 }
 0x729   : > { %v3926_v42 = vmax.f32 %v3860_v29, 0.0 }
 0x72a   : > { %v4149_v30 = vpop.f32.mrf.mxu1 }
 0x72b   : > { %v4150_v1 = vadd.f32 %v6735_v25, %v4149_v30 }
 0x72d   : > { %4243 = vst.msk [vmem:[%s6742_s27 + $0x168] sm:$0xff] %vm4197_vm0, %v4150_v1 }
 0x72e   : > { %v3861_v33 = vpop.f32.mrf.mxu0 }
 0x72f   : > { %v3862_v48 = vadd.f32 %v6867_v3, %v3861_v33 }
 0x731   : > { %v3927_v55 = vmax.f32 %v3862_v48, 0.0 }
 0x732   : > { %v4152_v32 = vpop.f32.mrf.mxu1 }
 0x733   : > { %v3959_v5 = vpack.c.bf16 %v3927_v55, %v3926_v42  ;;  %v4153_v7 = vadd.f32 %v6735_v25, %v4152_v32 }
 0x735   : > { %4244 = vst.msk [vmem:[%s6742_s27 + $0x170] sm:$0xff] %vm4197_vm0, %v4153_v7  ;;  %4191 = vmatmul.bf16.gmra.mxu1 %v3959_v5 }
 0x73a   : > { %v4154_v56 = vpop.f32.mrf.mxu1 }
 0x73b   : > { %v4155_v59 = vadd.f32 %v6735_v25, %v4154_v56 }
 0x73d   : > { %4245 = vst.msk [vmem:[%s6742_s27 + $0x178] sm:$0xff] %vm4197_vm0, %v4155_v59 }
 0x742   : > { %v4157_v12 = vpop.f32.mrf.mxu1 }
 0x743   : > { %v4158_v3 = vadd.f32 %v6735_v25, %v4157_v12 }
 0x745   : > { %4246 = vst.msk [vmem:[%s6742_s27 + $0x180] sm:$0xff] %vm4197_vm0, %v4158_v3 }
 0x74a   : > { %v4159_v17 = vpop.f32.mrf.mxu1 }
 0x74b   : > { %v4160_v11 = vadd.f32 %v6735_v25, %v4159_v17 }
 0x74d   : > { %4247 = vst.msk [vmem:[%s6742_s27 + $0x188] sm:$0xff] %vm4197_vm0, %v4160_v11 }
 0x752   : > { %v4162_v34 = vpop.f32.mrf.mxu1 }
 0x753   : > { %v4163_v52 = vadd.f32 %v6735_v25, %v4162_v34 }
 0x755   : > { %4248 = vst.msk [vmem:[%s6742_s27 + $0x190] sm:$0xff] %vm4197_vm0, %v4163_v52 }
 0x75a   : > { %v4164_v18 = vpop.f32.mrf.mxu1 }
 0x75b   : > { %v4165_v58 = vadd.f32 %v6735_v25, %v4164_v18 }
 0x75d   : > { %4249 = vst.msk [vmem:[%s6742_s27 + $0x198] sm:$0xff] %vm4197_vm0, %v4165_v58 }
 0x762   : > { %v4167_v16 = vpop.f32.mrf.mxu1 }
 0x763   : > { %v4168_v4 = vadd.f32 %v5161_v47, %v4167_v16 }
 0x765   : > { %4250 = vst.msk [vmem:[%s6742_s27 + $0x1a0] sm:$0xff] %vm4197_vm0, %v4168_v4 }
 0x76a   : > { %v4169_v10 = vpop.f32.mrf.mxu1 }
 0x76b   : > { %v4170_v21 = vadd.f32 %v5161_v47, %v4169_v10 }
 0x76d   : > { %4251 = vst.msk [vmem:[%s6742_s27 + $0x1a8] sm:$0xff] %vm4197_vm0, %v4170_v21 }
 0x772   : > { %v4172_v44 = vpop.f32.mrf.mxu1 }
 0x773   : > { %v4173_v61 = vadd.f32 %v5161_v47, %v4172_v44 }
 0x775   : > { %4252 = vst.msk [vmem:[%s6742_s27 + $0x1b0] sm:$0xff] %vm4197_vm0, %v4173_v61 }
 0x77a   : > { %v4174_v25 = vpop.f32.mrf.mxu1 }
 0x77b   : > { %v4175_v50 = vadd.f32 %v5161_v47, %v4174_v25 }
 0x77d   : > { %4253 = vst.msk [vmem:[%s6742_s27 + $0x1b8] sm:$0xff] %vm4197_vm0, %v4175_v50 }
 0x782   : > { %v4177_v0 = vpop.f32.mrf.mxu1 }
 0x783   : > { %v4178_v37 = vadd.f32 %v5161_v47, %v4177_v0 }
 0x785   : > { %4254 = vst.msk [vmem:[%s6742_s27 + $0x1c0] sm:$0xff] %vm4197_vm0, %v4178_v37 }
 0x78a   : > { %v4179_v35 = vpop.f32.mrf.mxu1 }
 0x78b   : > { %v4180_v57 = vadd.f32 %v5161_v47, %v4179_v35 }
 0x78d   : > { %4255 = vst.msk [vmem:[%s6742_s27 + $0x1c8] sm:$0xff] %vm4197_vm0, %v4180_v57 }
 0x792   : > { %v4182_v31 = vpop.f32.mrf.mxu1 }
 0x793   : > { %v4183_v53 = vadd.f32 %v5161_v47, %v4182_v31 }
 0x795   : > { %4256 = vst.msk [vmem:[%s6742_s27 + $0x1d0] sm:$0xff] %vm4197_vm0, %v4183_v53 }
 0x79a   : > { %v4184_v60 = vpop.f32.mrf.mxu1 }
 0x79b   : > { %v4185_v28 = vadd.f32 %v5161_v47, %v4184_v60 }
 0x79d   : > { %4257 = vst.msk [vmem:[%s6742_s27 + $0x1d8] sm:$0xff] %vm4197_vm0, %v4185_v28 }
 0x7a2   : > { %v4187_v45 = vpop.f32.mrf.mxu1 }
 0x7a3   : > { %v4188_v63 = vadd.f32 %v5161_v47, %v4187_v45 }
 0x7a5   : > { %4258 = vst.msk [vmem:[%s6742_s27 + $0x1e0] sm:$0xff] %vm4197_vm0, %v4188_v63 }
 0x7aa   : > { %v4189_v22 = vpop.f32.mrf.mxu1 }
 0x7ab   : > { %v4190_v27 = vadd.f32 %v5161_v47, %v4189_v22 }
 0x7ad   : > { %4259 = vst.msk [vmem:[%s6742_s27 + $0x1e8] sm:$0xff] %vm4197_vm0, %v4190_v27 }
 0x7b2   : > { %v4192_v15 = vpop.f32.mrf.mxu1 }
 0x7b3   : > { %v4193_v26 = vadd.f32 %v5161_v47, %v4192_v15 }
 0x7b5   : > { %4260 = vst.msk [vmem:[%s6742_s27 + $0x1f0] sm:$0xff] %vm4197_vm0, %v4193_v26 }
 0x7ba   : > { %v4194_v46 = vpop.f32.mrf.mxu1 }
 0x7bb   : > { %v4195_v19 = vadd.f32 %v5161_v47, %v4194_v46 }
 0x7bd   : > { %4261 = vst.msk [vmem:[%s6742_s27 + $0x1f8] sm:$0xff] %vm4197_vm0, %v4195_v19 }
 0x7be PF: > { %p33_p3 = scmp.ge.s32.totalorder %s5661_s1, 4   ;;  %s7095_s0 = smov %s5444_s30 }
 0x7bf   : > { %s7096_s30 = smov %s5448_s20  ;;  %s7097_s20 = smov %s5672_s24 }
 0x7c0   : > { %s7098_s21 = smov %s5661_s1  ;;  %35 = sbr.rel (!%p33_p3) target bundleno = 20 (0x14), region = 164 }
 0x7c5   :  { %4284 = vsyncpa [#allocation3], 1 }
 0x7c6   :  { %4286 = vsyncpa [#allocation3 + $0x1], 1 }
 0x7c7   :  { %4287 = vsyncpa [#allocation5], 1 }
 0x7c8   :  { %4288 = vsyncpa [#allocation8], 1 }
 0x7c9   :  { %4289 = vsyncpa [#allocation11], 1 }
 0x7ca   :  { %4290 = vsyncpa [#allocation14], 1 }

</bundles_post_ra>
